<compile_context>
chip_gen: v7x
topology: tpu7x:2x2x1
jax: 0.10.0
libtpu: 0.0.40
codegen_flags: <defaults>
</compile_context>

<pallas_src>
import math
import functools

import jax
import jax.numpy as jnp
from jax.experimental import pallas as pl
from jax.experimental.pallas import tpu as pltpu

NEG_BIG = -1e30  # large finite negative instead of -inf (avoids inf/NaN arithmetic)


# ----------------------------------------------------------------------------
# Fused decoder-stack kernel (one invocation per batch element)
# ----------------------------------------------------------------------------

def _decoder_kernel(emb_ref, enc_ref, tarpad_ref, srcpad_ref,
                    hmask_ref, collapse_ref,
                    wqkv_self_ref, wo_self_ref,
                    wq_cross_ref, wkv_cross_ref, wo_cross_ref,
                    w1_ref, b1_ref, w2_ref, b2_ref,
                    lng_ref, lnb_ref, wout_ref, bout_ref,
                    o_ref, *, n_blocks, n_heads, eps=1e-5):
    _, Lt, Dm = emb_ref.shape
    Ls = enc_ref.shape[1]
    H = n_heads
    d_k = Dm // H
    scale = 1.0 / math.sqrt(d_k)

    x = emb_ref[0]                              # [Lt, Dm] f32 residual stream
    enc_b = enc_ref[0].astype(jnp.bfloat16)     # [Ls, Dm] bf16, reused every block
    hmask = hmask_ref[...]                      # [H*Lt, Dm] f32 0/1 head-lane mask
    collapse = collapse_ref[...]                # [Lt, H*Lt] bf16 0/1 head-collapse

    # ---- additive attention biases (built once; heads stacked on sublanes) --
    def stacked_bias(pad_row, Lv, causal):
        bias = jnp.where(pad_row > 0.5, NEG_BIG, 0.0)            # [1, Lv]
        bias = jnp.broadcast_to(bias, (Lt, Lv))
        if causal:
            r = jax.lax.broadcasted_iota(jnp.int32, (Lt, Lv), 0)
            c = jax.lax.broadcasted_iota(jnp.int32, (Lt, Lv), 1)
            bias = bias + jnp.where(c > r, NEG_BIG, 0.0)
        return jnp.broadcast_to(bias[None], (H, Lt, Lv)).reshape(H * Lt, Lv)

    self_bias = stacked_bias(tarpad_ref[0], Lt, True)            # [H*Lt, Lt]
    cross_bias = stacked_bias(srcpad_ref[0], Ls, False)          # [H*Lt, Ls]

    def mha(q, k, v, bias, wo):
        """q [Lt,Dm] f32 (pre-scaled); k,v [Lv,Dm] f32; bias [H*Lt,Lv]; wo bf16."""
        # Block-diagonal head trick: replicate q along sublanes and zero the
        # lanes of other heads, so ONE matmul + ONE softmax + ONE PV matmul
        # serve all heads (no per-head loop, no d_k-wide slices/concat).
        qs = jnp.broadcast_to(q[None], (H, Lt, Dm)).reshape(H * Lt, Dm) * hmask
        s = jax.lax.dot_general(qs.astype(jnp.bfloat16), k.astype(jnp.bfloat16),
                                (((1,), (1,)), ((), ())),
                                preferred_element_type=jnp.float32)      # [H*Lt, Lv]
        s = s + bias
        m = jnp.max(s, axis=-1, keepdims=True)
        e = jnp.exp(s - m)
        p = e * pl.reciprocal(jnp.sum(e, axis=-1, keepdims=True), approx=True)
        o2 = jnp.dot(p.astype(jnp.bfloat16), v.astype(jnp.bfloat16),
                     preferred_element_type=jnp.float32)                 # [H*Lt, Dm]
        # Keep head-h lanes of row-block h, then collapse the H row-blocks back
        # to [Lt, Dm] with a tiny 0/1 matmul (exact: one nonzero term per slot).
        attn = jnp.dot(collapse, (o2 * hmask).astype(jnp.bfloat16),
                       preferred_element_type=jnp.float32)               # [Lt, Dm]
        return jnp.dot(attn.astype(jnp.bfloat16), wo,
                       preferred_element_type=jnp.float32)               # [Lt, Dm]

    def add_ln(z, res, g, b):
        y = z + res
        mu = jnp.mean(y, axis=-1, keepdims=True)
        c = y - mu
        var = jnp.mean(c * c, axis=-1, keepdims=True)
        return c * jax.lax.rsqrt(var + eps) * g + b

    for blk in range(n_blocks):                  # static unroll, weights VMEM-resident
        gam = lng_ref[blk]                       # [3, Dm]
        bet = lnb_ref[blk]

        # -- masked causal self-attention + residual + LayerNorm --------------
        qkv = jnp.dot(x.astype(jnp.bfloat16), wqkv_self_ref[blk],
                      preferred_element_type=jnp.float32)                # [Lt, 3Dm]
        z = mha(qkv[:, :Dm] * scale, qkv[:, Dm:2 * Dm], qkv[:, 2 * Dm:],
                self_bias, wo_self_ref[blk])
        x = add_ln(z, x, gam[0:1], bet[0:1])

        # -- cross-attention over encoder output + residual + LayerNorm -------
        q = jnp.dot(x.astype(jnp.bfloat16), wq_cross_ref[blk],
                    preferred_element_type=jnp.float32) * scale
        kv = jnp.dot(enc_b, wkv_cross_ref[blk],
                     preferred_element_type=jnp.float32)                 # [Ls, 2Dm]
        z = mha(q, kv[:, :Dm], kv[:, Dm:], cross_bias, wo_cross_ref[blk])
        x = add_ln(z, x, gam[1:2], bet[1:2])

        # -- position-wise FFN + residual + LayerNorm --------------------------
        h = jnp.dot(x.astype(jnp.bfloat16), w1_ref[blk],
                    preferred_element_type=jnp.float32) + b1_ref[blk]
        h = jnp.maximum(h, 0.0)
        z = jnp.dot(h.astype(jnp.bfloat16), w2_ref[blk],
                    preferred_element_type=jnp.float32) + b2_ref[blk]
        x = add_ln(z, x, gam[2:3], bet[2:3])

    # ---- final projection + exact softmax over the vocab ------------------
    logits = jnp.dot(x.astype(jnp.bfloat16), wout_ref[...],
                     preferred_element_type=jnp.float32) + bout_ref[...]
    m = jnp.max(logits, axis=-1, keepdims=True)
    e = jnp.exp(logits - m)
    probs = e / jnp.sum(e, axis=-1, keepdims=True)
    o_ref[...] = probs[None]


# ----------------------------------------------------------------------------
# Wrapper: embedding + positions in plain JAX, one pallas_call for the stack
# ----------------------------------------------------------------------------

def positional_encoding(shape):
    B, L, D = shape
    L_grid = jnp.arange(L, dtype=jnp.float32)[:, None]
    D_grid = jnp.arange(D, dtype=jnp.float32)[None, :]
    i_pairs = jnp.floor(D_grid / 2.0)
    i_alt = D_grid - 2.0 * i_pairs
    phase = L_grid / jnp.power(10000.0, i_pairs / D) + (math.pi / 2.0) * i_alt
    return jnp.broadcast_to(jnp.sin(phase)[None], (B, L, D))


def decoder_forward(params, enc_out, target, src_mask, tar_mask, *, n_heads):
    B, Lt = target.shape
    Ls = enc_out.shape[1]
    Dm = params["embedding"].shape[1]
    Vt = params["wout"].shape[1]
    n_blocks = params["wqkv_self"].shape[0]
    d_k = Dm // n_heads
    assert Dm % n_heads == 0
    assert Lt % 8 == 0 and Ls % 8 == 0, "sublane-stacked heads need 8-aligned seq lens"

    # Embedding gather + sinusoidal positions in plain JAX (tiny).
    # TODO(synk): at realistic sizes do the gather with an in-kernel DMA.
    emb = jnp.take(params["embedding"], target, axis=0) + positional_encoding((B, Lt, Dm))
    # TODO(synk): nn.Dropout is stochastic; treated as identity (eval mode).

    tar3 = tar_mask.reshape(B, 1, Lt)
    src3 = src_mask.reshape(B, 1, Ls)

    # Constant 0/1 helpers for the sublane-stacked multi-head formulation.
    lane_head = jnp.arange(Dm, dtype=jnp.int32)[None, :] // d_k            # [1, Dm]
    row_head = jnp.repeat(jnp.arange(n_heads, dtype=jnp.int32), Lt)[:, None]
    head_lane_mask = (lane_head == row_head).astype(jnp.float32)           # [H*Lt, Dm]
    collapse = jnp.tile(jnp.eye(Lt, dtype=jnp.bfloat16), (1, n_heads))     # [Lt, H*Lt]

    kernel = functools.partial(_decoder_kernel, n_blocks=n_blocks, n_heads=n_heads)

    def batched(shape):
        nd = len(shape)
        def imap(b):
            return (b,) + (0,) * (nd - 1)
        return pl.BlockSpec((1,) + tuple(shape[1:]), imap)

    def resident(arr):
        zeros = (0,) * arr.ndim
        def imap(b):
            return zeros
        return pl.BlockSpec(arr.shape, imap)

    consts = (head_lane_mask, collapse,
              params["wqkv_self"], params["wo_self"], params["wq_cross"],
              params["wkv_cross"], params["wo_cross"], params["w1"], params["b1"],
              params["w2"], params["b2"], params["ln_g"], params["ln_b"],
              params["wout"], params["bout"])

    in_specs = ([batched(emb.shape), batched(enc_out.shape),
                 batched(tar3.shape), batched(src3.shape)]
                + [resident(a) for a in consts])

    return pl.pallas_call(
        kernel,
        out_shape=jax.ShapeDtypeStruct((B, Lt, Vt), jnp.float32),
        grid_spec=pltpu.PrefetchScalarGridSpec(
            num_scalar_prefetch=0,
            grid=(B,),
            in_specs=in_specs,
            out_specs=pl.BlockSpec((1, Lt, Vt), lambda b: (b, 0, 0)),
        ),
        compiler_params=pltpu.CompilerParams(
            dimension_semantics=("parallel",)),  # v7x: one batch element per TC
    )(emb, enc_out, tar3, src3, *consts)


# ----------------------------------------------------------------------------
# Pure-JAX reference (mirrors the kernel's mixed precision for a tight check)
# ----------------------------------------------------------------------------

def _ref_attention_heads(q, k, v, bias, n_heads):
    B, Lq, Dm = q.shape
    d_k = Dm // n_heads
    heads = []
    for h in range(n_heads):
        lo = h * d_k
        qh = q[:, :, lo:lo + d_k].astype(jnp.bfloat16)
        kh = k[:, :, lo:lo + d_k].astype(jnp.bfloat16)
        vh = v[:, :, lo:lo + d_k].astype(jnp.bfloat16)
        s = jnp.einsum("bqd,bvd->bqv", qh, kh,
                       preferred_element_type=jnp.float32) + bias
        w = jax.nn.softmax(s, axis=-1)
        heads.append(jnp.einsum("bqv,bvd->bqd", w.astype(jnp.bfloat16), vh,
                                preferred_element_type=jnp.float32))
    return jnp.concatenate(heads, axis=-1)


def _ref_add_ln(z, res, g, b, eps=1e-5):
    y = z + res
    mu = jnp.mean(y, axis=-1, keepdims=True)
    var = jnp.mean((y - mu) ** 2, axis=-1, keepdims=True)
    return (y - mu) * jax.lax.rsqrt(var + eps) * g + b


def reference_forward(params, enc_out, target, src_mask, tar_mask, *, n_heads):
    B, Lt = target.shape
    Ls = enc_out.shape[1]
    Dm = params["embedding"].shape[1]
    d_k = Dm // n_heads
    scale = 1.0 / math.sqrt(d_k)
    n_blocks = params["wqkv_self"].shape[0]

    x = jnp.take(params["embedding"], target, axis=0) + positional_encoding((B, Lt, Dm))

    self_bias = jnp.where(tar_mask[:, None, :] > 0.5, NEG_BIG, 0.0)
    row = jnp.arange(Lt)[:, None]
    col = jnp.arange(Lt)[None, :]
    self_bias = self_bias + jnp.where(col > row, NEG_BIG, 0.0)[None]
    cross_bias = jnp.broadcast_to(
        jnp.where(src_mask[:, None, :] > 0.5, NEG_BIG, 0.0), (B, Lt, Ls))

    for blk in range(n_blocks):
        gam = params["ln_g"][blk]
        bet = params["ln_b"][blk]

        qkv = jnp.einsum("bld,de->ble", x.astype(jnp.bfloat16),
                         params["wqkv_self"][blk], preferred_element_type=jnp.float32)
        attn = _ref_attention_heads(qkv[..., :Dm] * scale, qkv[..., Dm:2 * Dm],
                                    qkv[..., 2 * Dm:], self_bias, n_heads)
        z = jnp.einsum("bld,de->ble", attn.astype(jnp.bfloat16),
                       params["wo_self"][blk], preferred_element_type=jnp.float32)
        x = _ref_add_ln(z, x, gam[0], bet[0])

        q = jnp.einsum("bld,de->ble", x.astype(jnp.bfloat16),
                       params["wq_cross"][blk], preferred_element_type=jnp.float32) * scale
        kv = jnp.einsum("bld,de->ble", enc_out.astype(jnp.bfloat16),
                        params["wkv_cross"][blk], preferred_element_type=jnp.float32)
        attn = _ref_attention_heads(q, kv[..., :Dm], kv[..., Dm:], cross_bias, n_heads)
        z = jnp.einsum("bld,de->ble", attn.astype(jnp.bfloat16),
                       params["wo_cross"][blk], preferred_element_type=jnp.float32)
        x = _ref_add_ln(z, x, gam[1], bet[1])

        h = jnp.einsum("bld,df->blf", x.astype(jnp.bfloat16), params["w1"][blk],
                       preferred_element_type=jnp.float32) + params["b1"][blk]
        h = jnp.maximum(h, 0.0)
        z = jnp.einsum("blf,fd->bld", h.astype(jnp.bfloat16), params["w2"][blk],
                       preferred_element_type=jnp.float32) + params["b2"][blk]
        x = _ref_add_ln(z, x, gam[2], bet[2])

    logits = jnp.einsum("bld,dv->blv", x.astype(jnp.bfloat16), params["wout"],
                        preferred_element_type=jnp.float32) + params["bout"]
    return jax.nn.softmax(logits, axis=-1)


# ----------------------------------------------------------------------------
# Deterministic parameter init (fused Q/KV weights, stacked over blocks, bf16)
# ----------------------------------------------------------------------------

def init_params(key, n_blocks, d_model, vsize_tar, d_ff, n_heads=8):
    ks = iter(jax.random.split(key, 16))

    def nrm(shape, scl, dtype=jnp.float32):
        return (jax.random.normal(next(ks), shape, jnp.float32) * scl).astype(dtype)

    s_m = 1.0 / math.sqrt(d_model)
    s_f = 1.0 / math.sqrt(d_ff)
    return {
        "embedding": nrm((vsize_tar, d_model), 1.0),
        "wqkv_self": nrm((n_blocks, d_model, 3 * d_model), s_m, jnp.bfloat16),
        "wo_self":   nrm((n_blocks, d_model, d_model), s_m, jnp.bfloat16),
        "wq_cross":  nrm((n_blocks, d_model, d_model), s_m, jnp.bfloat16),
        "wkv_cross": nrm((n_blocks, d_model, 2 * d_model), s_m, jnp.bfloat16),
        "wo_cross":  nrm((n_blocks, d_model, d_model), s_m, jnp.bfloat16),
        "w1":        nrm((n_blocks, d_model, d_ff), s_m, jnp.bfloat16),
        "b1":        nrm((n_blocks, 1, d_ff), 0.01),
        "w2":        nrm((n_blocks, d_ff, d_model), s_f, jnp.bfloat16),
        "b2":        nrm((n_blocks, 1, d_model), 0.01),
        "ln_g":      jnp.ones((n_blocks, 3, d_model), jnp.float32),
        "ln_b":      jnp.zeros((n_blocks, 3, d_model), jnp.float32),
        "wout":      nrm((d_model, vsize_tar), s_m, jnp.bfloat16),
        "bout":      nrm((1, vsize_tar), 0.01),
    }


# ----------------------------------------------------------------------------
# Main
# ----------------------------------------------------------------------------

if __name__ == "__main__":
    B, Ls, Lt = 2, 8, 8
    d_model, d_ff, vsize_tar, n_heads, n_blocks = 32, 64, 16, 8, 2

    key = jax.random.PRNGKey(0)
    kp, ke, kt = jax.random.split(key, 3)

    params = init_params(kp, n_blocks, d_model, vsize_tar, d_ff, n_heads)

    enc_out = jax.random.normal(ke, (B, Ls, d_model), jnp.float32)
    target = jax.random.randint(kt, (B, Lt), 0, vsize_tar, dtype=jnp.int32)

    # 1 = padded/masked position; keep only the last position padded.
    src_mask = jnp.zeros((B, Ls), jnp.float32).at[:, -1].set(1.0)
    tar_mask = jnp.zeros((B, Lt), jnp.float32).at[:, -1].set(1.0)

    out = decoder_forward(params, enc_out, target, src_mask, tar_mask, n_heads=n_heads)
    out = jax.block_until_ready(out)
    assert out.shape == (B, Lt, vsize_tar)

    ref = reference_forward(params, enc_out, target, src_mask, tar_mask, n_heads=n_heads)
    max_err = float(jnp.max(jnp.abs(out - ref)))
    assert jnp.allclose(out, ref, rtol=1e-2, atol=1e-2), max_err

    print("KERNEL_OK")
</pallas_src>

<mosaic_0001>
module attributes {stable_mosaic.version = 11 : i64} {
  func.func @_decoder_kernel(%arg0: i32, %arg1: memref<1x8x32xf32, #tpu.memory_space<vmem>>, %arg2: memref<1x8x32xf32, #tpu.memory_space<vmem>>, %arg3: memref<1x1x8xf32, #tpu.memory_space<vmem>>, %arg4: memref<1x1x8xf32, #tpu.memory_space<vmem>>, %arg5: memref<64x32xf32, #tpu.memory_space<vmem>>, %arg6: memref<8x64xbf16, #tpu.memory_space<vmem>>, %arg7: memref<2x32x96xbf16, #tpu.memory_space<vmem>>, %arg8: memref<2x32x32xbf16, #tpu.memory_space<vmem>>, %arg9: memref<2x32x32xbf16, #tpu.memory_space<vmem>>, %arg10: memref<2x32x64xbf16, #tpu.memory_space<vmem>>, %arg11: memref<2x32x32xbf16, #tpu.memory_space<vmem>>, %arg12: memref<2x32x64xbf16, #tpu.memory_space<vmem>>, %arg13: memref<2x1x64xf32, #tpu.memory_space<vmem>>, %arg14: memref<2x64x32xbf16, #tpu.memory_space<vmem>>, %arg15: memref<2x1x32xf32, #tpu.memory_space<vmem>>, %arg16: memref<2x3x32xf32, #tpu.memory_space<vmem>>, %arg17: memref<2x3x32xf32, #tpu.memory_space<vmem>>, %arg18: memref<32x16xbf16, #tpu.memory_space<vmem>>, %arg19: memref<1x16xf32, #tpu.memory_space<vmem>>, %arg20: memref<1x8x16xf32, #tpu.memory_space<vmem>>) attributes {dimension_semantics = [#tpu.dimension_semantics<parallel>], iteration_bounds = array<i64: 2>, scalar_prefetch = 0 : i64, scratch_operands = 0 : i64, tpu.core_type = #tpu.core_type<tc>, window_params = [{transform_indices = @transform_0, window_bounds = array<i64: 1, 8, 32>}, {transform_indices = @transform_1, window_bounds = array<i64: 1, 8, 32>}, {transform_indices = @transform_2, window_bounds = array<i64: 1, 1, 8>}, {transform_indices = @transform_3, window_bounds = array<i64: 1, 1, 8>}, {pipeline_mode = #tpu.pipeline_mode<synchronous>, transform_indices = @transform_4, window_bounds = array<i64: 64, 32>}, {pipeline_mode = #tpu.pipeline_mode<synchronous>, transform_indices = @transform_5, window_bounds = array<i64: 8, 64>}, {pipeline_mode = #tpu.pipeline_mode<synchronous>, transform_indices = @transform_6, window_bounds = array<i64: 2, 32, 96>}, {pipeline_mode = #tpu.pipeline_mode<synchronous>, transform_indices = @transform_7, window_bounds = array<i64: 2, 32, 32>}, {pipeline_mode = #tpu.pipeline_mode<synchronous>, transform_indices = @transform_8, window_bounds = array<i64: 2, 32, 32>}, {pipeline_mode = #tpu.pipeline_mode<synchronous>, transform_indices = @transform_9, window_bounds = array<i64: 2, 32, 64>}, {pipeline_mode = #tpu.pipeline_mode<synchronous>, transform_indices = @transform_10, window_bounds = array<i64: 2, 32, 32>}, {pipeline_mode = #tpu.pipeline_mode<synchronous>, transform_indices = @transform_11, window_bounds = array<i64: 2, 32, 64>}, {pipeline_mode = #tpu.pipeline_mode<synchronous>, transform_indices = @transform_12, window_bounds = array<i64: 2, 1, 64>}, {pipeline_mode = #tpu.pipeline_mode<synchronous>, transform_indices = @transform_13, window_bounds = array<i64: 2, 64, 32>}, {pipeline_mode = #tpu.pipeline_mode<synchronous>, transform_indices = @transform_14, window_bounds = array<i64: 2, 1, 32>}, {pipeline_mode = #tpu.pipeline_mode<synchronous>, transform_indices = @transform_15, window_bounds = array<i64: 2, 3, 32>}, {pipeline_mode = #tpu.pipeline_mode<synchronous>, transform_indices = @transform_16, window_bounds = array<i64: 2, 3, 32>}, {pipeline_mode = #tpu.pipeline_mode<synchronous>, transform_indices = @transform_17, window_bounds = array<i64: 32, 16>}, {pipeline_mode = #tpu.pipeline_mode<synchronous>, transform_indices = @transform_18, window_bounds = array<i64: 1, 16>}, {transform_indices = @transform_19, window_bounds = array<i64: 1, 8, 16>}]} {
    %c0 = arith.constant 0 : index
    %c0_0 = arith.constant 0 : index
    %c0_1 = arith.constant 0 : index
    %0 = vector.load %arg1[%c0, %c0_0, %c0_1] : memref<1x8x32xf32, #tpu.memory_space<vmem>>, vector<1x8x32xf32>
    %1 = vector.shape_cast %0 : vector<1x8x32xf32> to vector<8x32xf32>
    %c0_2 = arith.constant 0 : index
    %c0_3 = arith.constant 0 : index
    %c0_4 = arith.constant 0 : index
    %2 = vector.load %arg2[%c0_2, %c0_3, %c0_4] : memref<1x8x32xf32, #tpu.memory_space<vmem>>, vector<1x8x32xf32>
    %3 = vector.shape_cast %2 : vector<1x8x32xf32> to vector<8x32xf32>
    %4 = arith.truncf %3 : vector<8x32xf32> to vector<8x32xbf16>
    %c0_5 = arith.constant 0 : index
    %c0_6 = arith.constant 0 : index
    %5 = vector.load %arg5[%c0_5, %c0_6] : memref<64x32xf32, #tpu.memory_space<vmem>>, vector<64x32xf32>
    %c0_7 = arith.constant 0 : index
    %c0_8 = arith.constant 0 : index
    %6 = vector.load %arg6[%c0_7, %c0_8] : memref<8x64xbf16, #tpu.memory_space<vmem>>, vector<8x64xbf16>
    %c0_9 = arith.constant 0 : index
    %c0_10 = arith.constant 0 : index
    %c0_11 = arith.constant 0 : index
    %7 = vector.load %arg3[%c0_9, %c0_10, %c0_11] : memref<1x1x8xf32, #tpu.memory_space<vmem>>, vector<1x1x8xf32>
    %8 = vector.shape_cast %7 : vector<1x1x8xf32> to vector<1x8xf32>
    %cst = arith.constant 5.000000e-01 : f32
    %9 = vector.broadcast %cst : f32 to vector<1x8xf32>
    %10 = arith.cmpf ogt, %8, %9 : vector<1x8xf32>
    %cst_12 = arith.constant -1.000000e+30 : f32
    %cst_13 = arith.constant 0.000000e+00 : f32
    %11 = vector.broadcast %cst_12 : f32 to vector<1x8xf32>
    %12 = vector.broadcast %cst_13 : f32 to vector<1x8xf32>
    %13 = arith.select %10, %11, %12 : vector<1x8xi1>, vector<1x8xf32>
    %14 = vector.shape_cast %13 : vector<1x8xf32> to vector<1x8xf32>
    %15 = vector.broadcast %14 : vector<1x8xf32> to vector<8x8xf32>
    %16 = tpu.iota {dimensions = array<i32: 0>} : vector<8x8xi32>
    %17 = tpu.iota {dimensions = array<i32: 1>} : vector<8x8xi32>
    %18 = arith.cmpi sgt, %17, %16 : vector<8x8xi32>
    %cst_14 = arith.constant -1.000000e+30 : f32
    %cst_15 = arith.constant 0.000000e+00 : f32
    %19 = vector.broadcast %cst_14 : f32 to vector<8x8xf32>
    %20 = vector.broadcast %cst_15 : f32 to vector<8x8xf32>
    %21 = arith.select %18, %19, %20 : vector<8x8xi1>, vector<8x8xf32>
    %22 = arith.addf %15, %21 : vector<8x8xf32>
    %23 = vector.shape_cast %22 : vector<8x8xf32> to vector<1x8x8xf32>
    %24 = vector.shape_cast %23 : vector<1x8x8xf32> to vector<1x8x8xf32>
    %25 = vector.broadcast %24 : vector<1x8x8xf32> to vector<8x8x8xf32>
    %26 = vector.shape_cast %25 : vector<8x8x8xf32> to vector<64x8xf32>
    %c0_16 = arith.constant 0 : index
    %c0_17 = arith.constant 0 : index
    %c0_18 = arith.constant 0 : index
    %27 = vector.load %arg4[%c0_16, %c0_17, %c0_18] : memref<1x1x8xf32, #tpu.memory_space<vmem>>, vector<1x1x8xf32>
    %28 = vector.shape_cast %27 : vector<1x1x8xf32> to vector<1x8xf32>
    %cst_19 = arith.constant 5.000000e-01 : f32
    %29 = vector.broadcast %cst_19 : f32 to vector<1x8xf32>
    %30 = arith.cmpf ogt, %28, %29 : vector<1x8xf32>
    %cst_20 = arith.constant -1.000000e+30 : f32
    %cst_21 = arith.constant 0.000000e+00 : f32
    %31 = vector.broadcast %cst_20 : f32 to vector<1x8xf32>
    %32 = vector.broadcast %cst_21 : f32 to vector<1x8xf32>
    %33 = arith.select %30, %31, %32 : vector<1x8xi1>, vector<1x8xf32>
    %34 = vector.shape_cast %33 : vector<1x8xf32> to vector<1x8xf32>
    %35 = vector.broadcast %34 : vector<1x8xf32> to vector<8x8xf32>
    %36 = vector.shape_cast %35 : vector<8x8xf32> to vector<1x8x8xf32>
    %37 = vector.shape_cast %36 : vector<1x8x8xf32> to vector<1x8x8xf32>
    %38 = vector.broadcast %37 : vector<1x8x8xf32> to vector<8x8x8xf32>
    %39 = vector.shape_cast %38 : vector<8x8x8xf32> to vector<64x8xf32>
    %c0_22 = arith.constant 0 : index
    %c0_23 = arith.constant 0 : index
    %c0_24 = arith.constant 0 : index
    %40 = vector.load %arg16[%c0_22, %c0_23, %c0_24] : memref<2x3x32xf32, #tpu.memory_space<vmem>>, vector<1x3x32xf32>
    %41 = vector.shape_cast %40 : vector<1x3x32xf32> to vector<3x32xf32>
    %c0_25 = arith.constant 0 : index
    %c0_26 = arith.constant 0 : index
    %c0_27 = arith.constant 0 : index
    %42 = vector.load %arg17[%c0_25, %c0_26, %c0_27] : memref<2x3x32xf32, #tpu.memory_space<vmem>>, vector<1x3x32xf32>
    %43 = vector.shape_cast %42 : vector<1x3x32xf32> to vector<3x32xf32>
    %44 = arith.truncf %1 : vector<8x32xf32> to vector<8x32xbf16>
    %c0_28 = arith.constant 0 : index
    %c0_29 = arith.constant 0 : index
    %c0_30 = arith.constant 0 : index
    %45 = vector.load %arg7[%c0_28, %c0_29, %c0_30] : memref<2x32x96xbf16, #tpu.memory_space<vmem>>, vector<1x32x96xbf16>
    %46 = vector.shape_cast %45 : vector<1x32x96xbf16> to vector<32x96xbf16>
    %cst_31 = arith.constant dense<0.000000e+00> : vector<8x96xf32>
    %47 = tpu.matmul %44, %46, %cst_31 {dimension_numbers = #tpu.dot_dimension_numbers<[1], [0], [0], [1], [0, 0, 1, 1], [], []>} : vector<8x32xbf16>, vector<32x96xbf16>, vector<8x96xf32> -> vector<8x96xf32>
    %48 = vector.extract_strided_slice %47 {offsets = [0, 0], sizes = [8, 32], strides = [1, 1]} : vector<8x96xf32> to vector<8x32xf32>
    %cst_32 = arith.constant 5.000000e-01 : f32
    %49 = vector.broadcast %cst_32 : f32 to vector<8x32xf32>
    %50 = arith.mulf %48, %49 : vector<8x32xf32>
    %51 = vector.extract_strided_slice %47 {offsets = [0, 32], sizes = [8, 32], strides = [1, 1]} : vector<8x96xf32> to vector<8x32xf32>
    %52 = vector.extract_strided_slice %47 {offsets = [0, 64], sizes = [8, 32], strides = [1, 1]} : vector<8x96xf32> to vector<8x32xf32>
    %c0_33 = arith.constant 0 : index
    %c0_34 = arith.constant 0 : index
    %c0_35 = arith.constant 0 : index
    %53 = vector.load %arg8[%c0_33, %c0_34, %c0_35] : memref<2x32x32xbf16, #tpu.memory_space<vmem>>, vector<1x32x32xbf16>
    %54 = vector.shape_cast %53 : vector<1x32x32xbf16> to vector<32x32xbf16>
    %55 = vector.shape_cast %50 : vector<8x32xf32> to vector<1x8x32xf32>
    %56 = vector.shape_cast %55 : vector<1x8x32xf32> to vector<1x8x32xf32>
    %57 = vector.broadcast %56 : vector<1x8x32xf32> to vector<8x8x32xf32>
    %58 = vector.shape_cast %57 : vector<8x8x32xf32> to vector<64x32xf32>
    %59 = arith.mulf %58, %5 : vector<64x32xf32>
    %60 = arith.truncf %59 : vector<64x32xf32> to vector<64x32xbf16>
    %61 = arith.truncf %51 : vector<8x32xf32> to vector<8x32xbf16>
    %cst_36 = arith.constant dense<0.000000e+00> : vector<64x8xf32>
    %62 = tpu.matmul %60, %61, %cst_36 {dimension_numbers = #tpu.dot_dimension_numbers<[1], [1], [0], [0], [0, 0, 1, 0], [], []>} : vector<64x32xbf16>, vector<8x32xbf16>, vector<64x8xf32> -> vector<64x8xf32>
    %63 = arith.addf %62, %26 : vector<64x8xf32>
    %cst_37 = arith.constant dense<0xFF800000> : vector<64xf32>
    %64 = vector.multi_reduction <maximumf>, %63, %cst_37 [1] : vector<64x8xf32> to vector<64xf32>
    %65 = vector.shape_cast %64 : vector<64xf32> to vector<64x1xf32>
    %66 = vector.broadcast %65 : vector<64x1xf32> to vector<64x8xf32>
    %67 = arith.subf %63, %66 : vector<64x8xf32>
    %68 = math.exp %67 : vector<64x8xf32>
    %cst_38 = arith.constant dense<0.000000e+00> : vector<64xf32>
    %69 = vector.multi_reduction <add>, %68, %cst_38 [1] : vector<64x8xf32> to vector<64xf32>
    %70 = vector.shape_cast %69 : vector<64xf32> to vector<64x1xf32>
    %71 = tpu.reciprocal %70 {approx = true} : vector<64x1xf32> -> vector<64x1xf32>
    %72 = vector.broadcast %71 : vector<64x1xf32> to vector<64x8xf32>
    %73 = arith.mulf %68, %72 : vector<64x8xf32>
    %74 = arith.truncf %73 : vector<64x8xf32> to vector<64x8xbf16>
    %75 = arith.truncf %52 : vector<8x32xf32> to vector<8x32xbf16>
    %cst_39 = arith.constant dense<0.000000e+00> : vector<64x32xf32>
    %76 = tpu.matmul %74, %75, %cst_39 {dimension_numbers = #tpu.dot_dimension_numbers<[1], [0], [0], [1], [0, 0, 1, 1], [], []>} : vector<64x8xbf16>, vector<8x32xbf16>, vector<64x32xf32> -> vector<64x32xf32>
    %77 = arith.mulf %76, %5 : vector<64x32xf32>
    %78 = arith.truncf %77 : vector<64x32xf32> to vector<64x32xbf16>
    %cst_40 = arith.constant dense<0.000000e+00> : vector<8x32xf32>
    %79 = tpu.matmul %6, %78, %cst_40 {dimension_numbers = #tpu.dot_dimension_numbers<[1], [0], [0], [1], [0, 0, 1, 1], [], []>} : vector<8x64xbf16>, vector<64x32xbf16>, vector<8x32xf32> -> vector<8x32xf32>
    %80 = arith.truncf %79 : vector<8x32xf32> to vector<8x32xbf16>
    %cst_41 = arith.constant dense<0.000000e+00> : vector<8x32xf32>
    %81 = tpu.matmul %80, %54, %cst_41 {dimension_numbers = #tpu.dot_dimension_numbers<[1], [0], [0], [1], [0, 0, 1, 1], [], []>} : vector<8x32xbf16>, vector<32x32xbf16>, vector<8x32xf32> -> vector<8x32xf32>
    %82 = vector.extract_strided_slice %41 {offsets = [0, 0], sizes = [1, 32], strides = [1, 1]} : vector<3x32xf32> to vector<1x32xf32>
    %83 = vector.extract_strided_slice %43 {offsets = [0, 0], sizes = [1, 32], strides = [1, 1]} : vector<3x32xf32> to vector<1x32xf32>
    %84 = arith.addf %81, %1 : vector<8x32xf32>
    %cst_42 = arith.constant dense<0.000000e+00> : vector<8xf32>
    %85 = vector.multi_reduction <add>, %84, %cst_42 [1] : vector<8x32xf32> to vector<8xf32>
    %86 = vector.shape_cast %85 : vector<8xf32> to vector<8x1xf32>
    %cst_43 = arith.constant 3.200000e+01 : f32
    %87 = vector.broadcast %cst_43 : f32 to vector<8x1xf32>
    %88 = arith.divf %86, %87 : vector<8x1xf32>
    %89 = vector.broadcast %88 : vector<8x1xf32> to vector<8x32xf32>
    %90 = arith.subf %84, %89 : vector<8x32xf32>
    %91 = arith.mulf %90, %90 : vector<8x32xf32>
    %cst_44 = arith.constant dense<0.000000e+00> : vector<8xf32>
    %92 = vector.multi_reduction <add>, %91, %cst_44 [1] : vector<8x32xf32> to vector<8xf32>
    %93 = vector.shape_cast %92 : vector<8xf32> to vector<8x1xf32>
    %cst_45 = arith.constant 3.200000e+01 : f32
    %94 = vector.broadcast %cst_45 : f32 to vector<8x1xf32>
    %95 = arith.divf %93, %94 : vector<8x1xf32>
    %cst_46 = arith.constant 9.99999974E-6 : f32
    %96 = vector.broadcast %cst_46 : f32 to vector<8x1xf32>
    %97 = arith.addf %95, %96 : vector<8x1xf32>
    %98 = math.rsqrt %97 : vector<8x1xf32>
    %99 = vector.broadcast %98 : vector<8x1xf32> to vector<8x32xf32>
    %100 = arith.mulf %90, %99 : vector<8x32xf32>
    %101 = vector.broadcast %82 : vector<1x32xf32> to vector<8x32xf32>
    %102 = arith.mulf %100, %101 : vector<8x32xf32>
    %103 = vector.broadcast %83 : vector<1x32xf32> to vector<8x32xf32>
    %104 = arith.addf %102, %103 : vector<8x32xf32>
    %105 = arith.truncf %104 : vector<8x32xf32> to vector<8x32xbf16>
    %c0_47 = arith.constant 0 : index
    %c0_48 = arith.constant 0 : index
    %c0_49 = arith.constant 0 : index
    %106 = vector.load %arg9[%c0_47, %c0_48, %c0_49] : memref<2x32x32xbf16, #tpu.memory_space<vmem>>, vector<1x32x32xbf16>
    %107 = vector.shape_cast %106 : vector<1x32x32xbf16> to vector<32x32xbf16>
    %cst_50 = arith.constant dense<0.000000e+00> : vector<8x32xf32>
    %108 = tpu.matmul %105, %107, %cst_50 {dimension_numbers = #tpu.dot_dimension_numbers<[1], [0], [0], [1], [0, 0, 1, 1], [], []>} : vector<8x32xbf16>, vector<32x32xbf16>, vector<8x32xf32> -> vector<8x32xf32>
    %cst_51 = arith.constant 5.000000e-01 : f32
    %109 = vector.broadcast %cst_51 : f32 to vector<8x32xf32>
    %110 = arith.mulf %108, %109 : vector<8x32xf32>
    %c0_52 = arith.constant 0 : index
    %c0_53 = arith.constant 0 : index
    %c0_54 = arith.constant 0 : index
    %111 = vector.load %arg10[%c0_52, %c0_53, %c0_54] : memref<2x32x64xbf16, #tpu.memory_space<vmem>>, vector<1x32x64xbf16>
    %112 = vector.shape_cast %111 : vector<1x32x64xbf16> to vector<32x64xbf16>
    %cst_55 = arith.constant dense<0.000000e+00> : vector<8x64xf32>
    %113 = tpu.matmul %4, %112, %cst_55 {dimension_numbers = #tpu.dot_dimension_numbers<[1], [0], [0], [1], [0, 0, 1, 1], [], []>} : vector<8x32xbf16>, vector<32x64xbf16>, vector<8x64xf32> -> vector<8x64xf32>
    %114 = vector.extract_strided_slice %113 {offsets = [0, 0], sizes = [8, 32], strides = [1, 1]} : vector<8x64xf32> to vector<8x32xf32>
    %115 = vector.extract_strided_slice %113 {offsets = [0, 32], sizes = [8, 32], strides = [1, 1]} : vector<8x64xf32> to vector<8x32xf32>
    %c0_56 = arith.constant 0 : index
    %c0_57 = arith.constant 0 : index
    %c0_58 = arith.constant 0 : index
    %116 = vector.load %arg11[%c0_56, %c0_57, %c0_58] : memref<2x32x32xbf16, #tpu.memory_space<vmem>>, vector<1x32x32xbf16>
    %117 = vector.shape_cast %116 : vector<1x32x32xbf16> to vector<32x32xbf16>
    %118 = vector.shape_cast %110 : vector<8x32xf32> to vector<1x8x32xf32>
    %119 = vector.shape_cast %118 : vector<1x8x32xf32> to vector<1x8x32xf32>
    %120 = vector.broadcast %119 : vector<1x8x32xf32> to vector<8x8x32xf32>
    %121 = vector.shape_cast %120 : vector<8x8x32xf32> to vector<64x32xf32>
    %122 = arith.mulf %121, %5 : vector<64x32xf32>
    %123 = arith.truncf %122 : vector<64x32xf32> to vector<64x32xbf16>
    %124 = arith.truncf %114 : vector<8x32xf32> to vector<8x32xbf16>
    %cst_59 = arith.constant dense<0.000000e+00> : vector<64x8xf32>
    %125 = tpu.matmul %123, %124, %cst_59 {dimension_numbers = #tpu.dot_dimension_numbers<[1], [1], [0], [0], [0, 0, 1, 0], [], []>} : vector<64x32xbf16>, vector<8x32xbf16>, vector<64x8xf32> -> vector<64x8xf32>
    %126 = arith.addf %125, %39 : vector<64x8xf32>
    %cst_60 = arith.constant dense<0xFF800000> : vector<64xf32>
    %127 = vector.multi_reduction <maximumf>, %126, %cst_60 [1] : vector<64x8xf32> to vector<64xf32>
    %128 = vector.shape_cast %127 : vector<64xf32> to vector<64x1xf32>
    %129 = vector.broadcast %128 : vector<64x1xf32> to vector<64x8xf32>
    %130 = arith.subf %126, %129 : vector<64x8xf32>
    %131 = math.exp %130 : vector<64x8xf32>
    %cst_61 = arith.constant dense<0.000000e+00> : vector<64xf32>
    %132 = vector.multi_reduction <add>, %131, %cst_61 [1] : vector<64x8xf32> to vector<64xf32>
    %133 = vector.shape_cast %132 : vector<64xf32> to vector<64x1xf32>
    %134 = tpu.reciprocal %133 {approx = true} : vector<64x1xf32> -> vector<64x1xf32>
    %135 = vector.broadcast %134 : vector<64x1xf32> to vector<64x8xf32>
    %136 = arith.mulf %131, %135 : vector<64x8xf32>
    %137 = arith.truncf %136 : vector<64x8xf32> to vector<64x8xbf16>
    %138 = arith.truncf %115 : vector<8x32xf32> to vector<8x32xbf16>
    %cst_62 = arith.constant dense<0.000000e+00> : vector<64x32xf32>
    %139 = tpu.matmul %137, %138, %cst_62 {dimension_numbers = #tpu.dot_dimension_numbers<[1], [0], [0], [1], [0, 0, 1, 1], [], []>} : vector<64x8xbf16>, vector<8x32xbf16>, vector<64x32xf32> -> vector<64x32xf32>
    %140 = arith.mulf %139, %5 : vector<64x32xf32>
    %141 = arith.truncf %140 : vector<64x32xf32> to vector<64x32xbf16>
    %cst_63 = arith.constant dense<0.000000e+00> : vector<8x32xf32>
    %142 = tpu.matmul %6, %141, %cst_63 {dimension_numbers = #tpu.dot_dimension_numbers<[1], [0], [0], [1], [0, 0, 1, 1], [], []>} : vector<8x64xbf16>, vector<64x32xbf16>, vector<8x32xf32> -> vector<8x32xf32>
    %143 = arith.truncf %142 : vector<8x32xf32> to vector<8x32xbf16>
    %cst_64 = arith.constant dense<0.000000e+00> : vector<8x32xf32>
    %144 = tpu.matmul %143, %117, %cst_64 {dimension_numbers = #tpu.dot_dimension_numbers<[1], [0], [0], [1], [0, 0, 1, 1], [], []>} : vector<8x32xbf16>, vector<32x32xbf16>, vector<8x32xf32> -> vector<8x32xf32>
    %145 = vector.extract_strided_slice %41 {offsets = [1, 0], sizes = [1, 32], strides = [1, 1]} : vector<3x32xf32> to vector<1x32xf32>
    %146 = vector.extract_strided_slice %43 {offsets = [1, 0], sizes = [1, 32], strides = [1, 1]} : vector<3x32xf32> to vector<1x32xf32>
    %147 = arith.addf %144, %104 : vector<8x32xf32>
    %cst_65 = arith.constant dense<0.000000e+00> : vector<8xf32>
    %148 = vector.multi_reduction <add>, %147, %cst_65 [1] : vector<8x32xf32> to vector<8xf32>
    %149 = vector.shape_cast %148 : vector<8xf32> to vector<8x1xf32>
    %cst_66 = arith.constant 3.200000e+01 : f32
    %150 = vector.broadcast %cst_66 : f32 to vector<8x1xf32>
    %151 = arith.divf %149, %150 : vector<8x1xf32>
    %152 = vector.broadcast %151 : vector<8x1xf32> to vector<8x32xf32>
    %153 = arith.subf %147, %152 : vector<8x32xf32>
    %154 = arith.mulf %153, %153 : vector<8x32xf32>
    %cst_67 = arith.constant dense<0.000000e+00> : vector<8xf32>
    %155 = vector.multi_reduction <add>, %154, %cst_67 [1] : vector<8x32xf32> to vector<8xf32>
    %156 = vector.shape_cast %155 : vector<8xf32> to vector<8x1xf32>
    %cst_68 = arith.constant 3.200000e+01 : f32
    %157 = vector.broadcast %cst_68 : f32 to vector<8x1xf32>
    %158 = arith.divf %156, %157 : vector<8x1xf32>
    %cst_69 = arith.constant 9.99999974E-6 : f32
    %159 = vector.broadcast %cst_69 : f32 to vector<8x1xf32>
    %160 = arith.addf %158, %159 : vector<8x1xf32>
    %161 = math.rsqrt %160 : vector<8x1xf32>
    %162 = vector.broadcast %161 : vector<8x1xf32> to vector<8x32xf32>
    %163 = arith.mulf %153, %162 : vector<8x32xf32>
    %164 = vector.broadcast %145 : vector<1x32xf32> to vector<8x32xf32>
    %165 = arith.mulf %163, %164 : vector<8x32xf32>
    %166 = vector.broadcast %146 : vector<1x32xf32> to vector<8x32xf32>
    %167 = arith.addf %165, %166 : vector<8x32xf32>
    %168 = arith.truncf %167 : vector<8x32xf32> to vector<8x32xbf16>
    %c0_70 = arith.constant 0 : index
    %c0_71 = arith.constant 0 : index
    %c0_72 = arith.constant 0 : index
    %169 = vector.load %arg12[%c0_70, %c0_71, %c0_72] : memref<2x32x64xbf16, #tpu.memory_space<vmem>>, vector<1x32x64xbf16>
    %170 = vector.shape_cast %169 : vector<1x32x64xbf16> to vector<32x64xbf16>
    %cst_73 = arith.constant dense<0.000000e+00> : vector<8x64xf32>
    %171 = tpu.matmul %168, %170, %cst_73 {dimension_numbers = #tpu.dot_dimension_numbers<[1], [0], [0], [1], [0, 0, 1, 1], [], []>} : vector<8x32xbf16>, vector<32x64xbf16>, vector<8x64xf32> -> vector<8x64xf32>
    %c0_74 = arith.constant 0 : index
    %c0_75 = arith.constant 0 : index
    %c0_76 = arith.constant 0 : index
    %172 = vector.load %arg13[%c0_74, %c0_75, %c0_76] : memref<2x1x64xf32, #tpu.memory_space<vmem>>, vector<1x1x64xf32>
    %173 = vector.shape_cast %172 : vector<1x1x64xf32> to vector<1x64xf32>
    %174 = vector.broadcast %173 : vector<1x64xf32> to vector<8x64xf32>
    %175 = arith.addf %171, %174 : vector<8x64xf32>
    %cst_77 = arith.constant 0.000000e+00 : f32
    %176 = vector.broadcast %cst_77 : f32 to vector<8x64xf32>
    %177 = arith.maximumf %175, %176 : vector<8x64xf32>
    %178 = arith.truncf %177 : vector<8x64xf32> to vector<8x64xbf16>
    %c0_78 = arith.constant 0 : index
    %c0_79 = arith.constant 0 : index
    %c0_80 = arith.constant 0 : index
    %179 = vector.load %arg14[%c0_78, %c0_79, %c0_80] : memref<2x64x32xbf16, #tpu.memory_space<vmem>>, vector<1x64x32xbf16>
    %180 = vector.shape_cast %179 : vector<1x64x32xbf16> to vector<64x32xbf16>
    %cst_81 = arith.constant dense<0.000000e+00> : vector<8x32xf32>
    %181 = tpu.matmul %178, %180, %cst_81 {dimension_numbers = #tpu.dot_dimension_numbers<[1], [0], [0], [1], [0, 0, 1, 1], [], []>} : vector<8x64xbf16>, vector<64x32xbf16>, vector<8x32xf32> -> vector<8x32xf32>
    %c0_82 = arith.constant 0 : index
    %c0_83 = arith.constant 0 : index
    %c0_84 = arith.constant 0 : index
    %182 = vector.load %arg15[%c0_82, %c0_83, %c0_84] : memref<2x1x32xf32, #tpu.memory_space<vmem>>, vector<1x1x32xf32>
    %183 = vector.shape_cast %182 : vector<1x1x32xf32> to vector<1x32xf32>
    %184 = vector.broadcast %183 : vector<1x32xf32> to vector<8x32xf32>
    %185 = arith.addf %181, %184 : vector<8x32xf32>
    %186 = vector.extract_strided_slice %41 {offsets = [2, 0], sizes = [1, 32], strides = [1, 1]} : vector<3x32xf32> to vector<1x32xf32>
    %187 = vector.extract_strided_slice %43 {offsets = [2, 0], sizes = [1, 32], strides = [1, 1]} : vector<3x32xf32> to vector<1x32xf32>
    %188 = arith.addf %185, %167 : vector<8x32xf32>
    %cst_85 = arith.constant dense<0.000000e+00> : vector<8xf32>
    %189 = vector.multi_reduction <add>, %188, %cst_85 [1] : vector<8x32xf32> to vector<8xf32>
    %190 = vector.shape_cast %189 : vector<8xf32> to vector<8x1xf32>
    %cst_86 = arith.constant 3.200000e+01 : f32
    %191 = vector.broadcast %cst_86 : f32 to vector<8x1xf32>
    %192 = arith.divf %190, %191 : vector<8x1xf32>
    %193 = vector.broadcast %192 : vector<8x1xf32> to vector<8x32xf32>
    %194 = arith.subf %188, %193 : vector<8x32xf32>
    %195 = arith.mulf %194, %194 : vector<8x32xf32>
    %cst_87 = arith.constant dense<0.000000e+00> : vector<8xf32>
    %196 = vector.multi_reduction <add>, %195, %cst_87 [1] : vector<8x32xf32> to vector<8xf32>
    %197 = vector.shape_cast %196 : vector<8xf32> to vector<8x1xf32>
    %cst_88 = arith.constant 3.200000e+01 : f32
    %198 = vector.broadcast %cst_88 : f32 to vector<8x1xf32>
    %199 = arith.divf %197, %198 : vector<8x1xf32>
    %cst_89 = arith.constant 9.99999974E-6 : f32
    %200 = vector.broadcast %cst_89 : f32 to vector<8x1xf32>
    %201 = arith.addf %199, %200 : vector<8x1xf32>
    %202 = math.rsqrt %201 : vector<8x1xf32>
    %203 = vector.broadcast %202 : vector<8x1xf32> to vector<8x32xf32>
    %204 = arith.mulf %194, %203 : vector<8x32xf32>
    %205 = vector.broadcast %186 : vector<1x32xf32> to vector<8x32xf32>
    %206 = arith.mulf %204, %205 : vector<8x32xf32>
    %207 = vector.broadcast %187 : vector<1x32xf32> to vector<8x32xf32>
    %208 = arith.addf %206, %207 : vector<8x32xf32>
    %c1 = arith.constant 1 : index
    %c0_90 = arith.constant 0 : index
    %c0_91 = arith.constant 0 : index
    %209 = vector.load %arg16[%c1, %c0_90, %c0_91] : memref<2x3x32xf32, #tpu.memory_space<vmem>>, vector<1x3x32xf32>
    %210 = vector.shape_cast %209 : vector<1x3x32xf32> to vector<3x32xf32>
    %c1_92 = arith.constant 1 : index
    %c0_93 = arith.constant 0 : index
    %c0_94 = arith.constant 0 : index
    %211 = vector.load %arg17[%c1_92, %c0_93, %c0_94] : memref<2x3x32xf32, #tpu.memory_space<vmem>>, vector<1x3x32xf32>
    %212 = vector.shape_cast %211 : vector<1x3x32xf32> to vector<3x32xf32>
    %213 = arith.truncf %208 : vector<8x32xf32> to vector<8x32xbf16>
    %c1_95 = arith.constant 1 : index
    %c0_96 = arith.constant 0 : index
    %c0_97 = arith.constant 0 : index
    %214 = vector.load %arg7[%c1_95, %c0_96, %c0_97] : memref<2x32x96xbf16, #tpu.memory_space<vmem>>, vector<1x32x96xbf16>
    %215 = vector.shape_cast %214 : vector<1x32x96xbf16> to vector<32x96xbf16>
    %cst_98 = arith.constant dense<0.000000e+00> : vector<8x96xf32>
    %216 = tpu.matmul %213, %215, %cst_98 {dimension_numbers = #tpu.dot_dimension_numbers<[1], [0], [0], [1], [0, 0, 1, 1], [], []>} : vector<8x32xbf16>, vector<32x96xbf16>, vector<8x96xf32> -> vector<8x96xf32>
    %217 = vector.extract_strided_slice %216 {offsets = [0, 0], sizes = [8, 32], strides = [1, 1]} : vector<8x96xf32> to vector<8x32xf32>
    %cst_99 = arith.constant 5.000000e-01 : f32
    %218 = vector.broadcast %cst_99 : f32 to vector<8x32xf32>
    %219 = arith.mulf %217, %218 : vector<8x32xf32>
    %220 = vector.extract_strided_slice %216 {offsets = [0, 32], sizes = [8, 32], strides = [1, 1]} : vector<8x96xf32> to vector<8x32xf32>
    %221 = vector.extract_strided_slice %216 {offsets = [0, 64], sizes = [8, 32], strides = [1, 1]} : vector<8x96xf32> to vector<8x32xf32>
    %c1_100 = arith.constant 1 : index
    %c0_101 = arith.constant 0 : index
    %c0_102 = arith.constant 0 : index
    %222 = vector.load %arg8[%c1_100, %c0_101, %c0_102] : memref<2x32x32xbf16, #tpu.memory_space<vmem>>, vector<1x32x32xbf16>
    %223 = vector.shape_cast %222 : vector<1x32x32xbf16> to vector<32x32xbf16>
    %224 = vector.shape_cast %219 : vector<8x32xf32> to vector<1x8x32xf32>
    %225 = vector.shape_cast %224 : vector<1x8x32xf32> to vector<1x8x32xf32>
    %226 = vector.broadcast %225 : vector<1x8x32xf32> to vector<8x8x32xf32>
    %227 = vector.shape_cast %226 : vector<8x8x32xf32> to vector<64x32xf32>
    %228 = arith.mulf %227, %5 : vector<64x32xf32>
    %229 = arith.truncf %228 : vector<64x32xf32> to vector<64x32xbf16>
    %230 = arith.truncf %220 : vector<8x32xf32> to vector<8x32xbf16>
    %cst_103 = arith.constant dense<0.000000e+00> : vector<64x8xf32>
    %231 = tpu.matmul %229, %230, %cst_103 {dimension_numbers = #tpu.dot_dimension_numbers<[1], [1], [0], [0], [0, 0, 1, 0], [], []>} : vector<64x32xbf16>, vector<8x32xbf16>, vector<64x8xf32> -> vector<64x8xf32>
    %232 = arith.addf %231, %26 : vector<64x8xf32>
    %cst_104 = arith.constant dense<0xFF800000> : vector<64xf32>
    %233 = vector.multi_reduction <maximumf>, %232, %cst_104 [1] : vector<64x8xf32> to vector<64xf32>
    %234 = vector.shape_cast %233 : vector<64xf32> to vector<64x1xf32>
    %235 = vector.broadcast %234 : vector<64x1xf32> to vector<64x8xf32>
    %236 = arith.subf %232, %235 : vector<64x8xf32>
    %237 = math.exp %236 : vector<64x8xf32>
    %cst_105 = arith.constant dense<0.000000e+00> : vector<64xf32>
    %238 = vector.multi_reduction <add>, %237, %cst_105 [1] : vector<64x8xf32> to vector<64xf32>
    %239 = vector.shape_cast %238 : vector<64xf32> to vector<64x1xf32>
    %240 = tpu.reciprocal %239 {approx = true} : vector<64x1xf32> -> vector<64x1xf32>
    %241 = vector.broadcast %240 : vector<64x1xf32> to vector<64x8xf32>
    %242 = arith.mulf %237, %241 : vector<64x8xf32>
    %243 = arith.truncf %242 : vector<64x8xf32> to vector<64x8xbf16>
    %244 = arith.truncf %221 : vector<8x32xf32> to vector<8x32xbf16>
    %cst_106 = arith.constant dense<0.000000e+00> : vector<64x32xf32>
    %245 = tpu.matmul %243, %244, %cst_106 {dimension_numbers = #tpu.dot_dimension_numbers<[1], [0], [0], [1], [0, 0, 1, 1], [], []>} : vector<64x8xbf16>, vector<8x32xbf16>, vector<64x32xf32> -> vector<64x32xf32>
    %246 = arith.mulf %245, %5 : vector<64x32xf32>
    %247 = arith.truncf %246 : vector<64x32xf32> to vector<64x32xbf16>
    %cst_107 = arith.constant dense<0.000000e+00> : vector<8x32xf32>
    %248 = tpu.matmul %6, %247, %cst_107 {dimension_numbers = #tpu.dot_dimension_numbers<[1], [0], [0], [1], [0, 0, 1, 1], [], []>} : vector<8x64xbf16>, vector<64x32xbf16>, vector<8x32xf32> -> vector<8x32xf32>
    %249 = arith.truncf %248 : vector<8x32xf32> to vector<8x32xbf16>
    %cst_108 = arith.constant dense<0.000000e+00> : vector<8x32xf32>
    %250 = tpu.matmul %249, %223, %cst_108 {dimension_numbers = #tpu.dot_dimension_numbers<[1], [0], [0], [1], [0, 0, 1, 1], [], []>} : vector<8x32xbf16>, vector<32x32xbf16>, vector<8x32xf32> -> vector<8x32xf32>
    %251 = vector.extract_strided_slice %210 {offsets = [0, 0], sizes = [1, 32], strides = [1, 1]} : vector<3x32xf32> to vector<1x32xf32>
    %252 = vector.extract_strided_slice %212 {offsets = [0, 0], sizes = [1, 32], strides = [1, 1]} : vector<3x32xf32> to vector<1x32xf32>
    %253 = arith.addf %250, %208 : vector<8x32xf32>
    %cst_109 = arith.constant dense<0.000000e+00> : vector<8xf32>
    %254 = vector.multi_reduction <add>, %253, %cst_109 [1] : vector<8x32xf32> to vector<8xf32>
    %255 = vector.shape_cast %254 : vector<8xf32> to vector<8x1xf32>
    %cst_110 = arith.constant 3.200000e+01 : f32
    %256 = vector.broadcast %cst_110 : f32 to vector<8x1xf32>
    %257 = arith.divf %255, %256 : vector<8x1xf32>
    %258 = vector.broadcast %257 : vector<8x1xf32> to vector<8x32xf32>
    %259 = arith.subf %253, %258 : vector<8x32xf32>
    %260 = arith.mulf %259, %259 : vector<8x32xf32>
    %cst_111 = arith.constant dense<0.000000e+00> : vector<8xf32>
    %261 = vector.multi_reduction <add>, %260, %cst_111 [1] : vector<8x32xf32> to vector<8xf32>
    %262 = vector.shape_cast %261 : vector<8xf32> to vector<8x1xf32>
    %cst_112 = arith.constant 3.200000e+01 : f32
    %263 = vector.broadcast %cst_112 : f32 to vector<8x1xf32>
    %264 = arith.divf %262, %263 : vector<8x1xf32>
    %cst_113 = arith.constant 9.99999974E-6 : f32
    %265 = vector.broadcast %cst_113 : f32 to vector<8x1xf32>
    %266 = arith.addf %264, %265 : vector<8x1xf32>
    %267 = math.rsqrt %266 : vector<8x1xf32>
    %268 = vector.broadcast %267 : vector<8x1xf32> to vector<8x32xf32>
    %269 = arith.mulf %259, %268 : vector<8x32xf32>
    %270 = vector.broadcast %251 : vector<1x32xf32> to vector<8x32xf32>
    %271 = arith.mulf %269, %270 : vector<8x32xf32>
    %272 = vector.broadcast %252 : vector<1x32xf32> to vector<8x32xf32>
    %273 = arith.addf %271, %272 : vector<8x32xf32>
    %274 = arith.truncf %273 : vector<8x32xf32> to vector<8x32xbf16>
    %c1_114 = arith.constant 1 : index
    %c0_115 = arith.constant 0 : index
    %c0_116 = arith.constant 0 : index
    %275 = vector.load %arg9[%c1_114, %c0_115, %c0_116] : memref<2x32x32xbf16, #tpu.memory_space<vmem>>, vector<1x32x32xbf16>
    %276 = vector.shape_cast %275 : vector<1x32x32xbf16> to vector<32x32xbf16>
    %cst_117 = arith.constant dense<0.000000e+00> : vector<8x32xf32>
    %277 = tpu.matmul %274, %276, %cst_117 {dimension_numbers = #tpu.dot_dimension_numbers<[1], [0], [0], [1], [0, 0, 1, 1], [], []>} : vector<8x32xbf16>, vector<32x32xbf16>, vector<8x32xf32> -> vector<8x32xf32>
    %cst_118 = arith.constant 5.000000e-01 : f32
    %278 = vector.broadcast %cst_118 : f32 to vector<8x32xf32>
    %279 = arith.mulf %277, %278 : vector<8x32xf32>
    %c1_119 = arith.constant 1 : index
    %c0_120 = arith.constant 0 : index
    %c0_121 = arith.constant 0 : index
    %280 = vector.load %arg10[%c1_119, %c0_120, %c0_121] : memref<2x32x64xbf16, #tpu.memory_space<vmem>>, vector<1x32x64xbf16>
    %281 = vector.shape_cast %280 : vector<1x32x64xbf16> to vector<32x64xbf16>
    %cst_122 = arith.constant dense<0.000000e+00> : vector<8x64xf32>
    %282 = tpu.matmul %4, %281, %cst_122 {dimension_numbers = #tpu.dot_dimension_numbers<[1], [0], [0], [1], [0, 0, 1, 1], [], []>} : vector<8x32xbf16>, vector<32x64xbf16>, vector<8x64xf32> -> vector<8x64xf32>
    %283 = vector.extract_strided_slice %282 {offsets = [0, 0], sizes = [8, 32], strides = [1, 1]} : vector<8x64xf32> to vector<8x32xf32>
    %284 = vector.extract_strided_slice %282 {offsets = [0, 32], sizes = [8, 32], strides = [1, 1]} : vector<8x64xf32> to vector<8x32xf32>
    %c1_123 = arith.constant 1 : index
    %c0_124 = arith.constant 0 : index
    %c0_125 = arith.constant 0 : index
    %285 = vector.load %arg11[%c1_123, %c0_124, %c0_125] : memref<2x32x32xbf16, #tpu.memory_space<vmem>>, vector<1x32x32xbf16>
    %286 = vector.shape_cast %285 : vector<1x32x32xbf16> to vector<32x32xbf16>
    %287 = vector.shape_cast %279 : vector<8x32xf32> to vector<1x8x32xf32>
    %288 = vector.shape_cast %287 : vector<1x8x32xf32> to vector<1x8x32xf32>
    %289 = vector.broadcast %288 : vector<1x8x32xf32> to vector<8x8x32xf32>
    %290 = vector.shape_cast %289 : vector<8x8x32xf32> to vector<64x32xf32>
    %291 = arith.mulf %290, %5 : vector<64x32xf32>
    %292 = arith.truncf %291 : vector<64x32xf32> to vector<64x32xbf16>
    %293 = arith.truncf %283 : vector<8x32xf32> to vector<8x32xbf16>
    %cst_126 = arith.constant dense<0.000000e+00> : vector<64x8xf32>
    %294 = tpu.matmul %292, %293, %cst_126 {dimension_numbers = #tpu.dot_dimension_numbers<[1], [1], [0], [0], [0, 0, 1, 0], [], []>} : vector<64x32xbf16>, vector<8x32xbf16>, vector<64x8xf32> -> vector<64x8xf32>
    %295 = arith.addf %294, %39 : vector<64x8xf32>
    %cst_127 = arith.constant dense<0xFF800000> : vector<64xf32>
    %296 = vector.multi_reduction <maximumf>, %295, %cst_127 [1] : vector<64x8xf32> to vector<64xf32>
    %297 = vector.shape_cast %296 : vector<64xf32> to vector<64x1xf32>
    %298 = vector.broadcast %297 : vector<64x1xf32> to vector<64x8xf32>
    %299 = arith.subf %295, %298 : vector<64x8xf32>
    %300 = math.exp %299 : vector<64x8xf32>
    %cst_128 = arith.constant dense<0.000000e+00> : vector<64xf32>
    %301 = vector.multi_reduction <add>, %300, %cst_128 [1] : vector<64x8xf32> to vector<64xf32>
    %302 = vector.shape_cast %301 : vector<64xf32> to vector<64x1xf32>
    %303 = tpu.reciprocal %302 {approx = true} : vector<64x1xf32> -> vector<64x1xf32>
    %304 = vector.broadcast %303 : vector<64x1xf32> to vector<64x8xf32>
    %305 = arith.mulf %300, %304 : vector<64x8xf32>
    %306 = arith.truncf %305 : vector<64x8xf32> to vector<64x8xbf16>
    %307 = arith.truncf %284 : vector<8x32xf32> to vector<8x32xbf16>
    %cst_129 = arith.constant dense<0.000000e+00> : vector<64x32xf32>
    %308 = tpu.matmul %306, %307, %cst_129 {dimension_numbers = #tpu.dot_dimension_numbers<[1], [0], [0], [1], [0, 0, 1, 1], [], []>} : vector<64x8xbf16>, vector<8x32xbf16>, vector<64x32xf32> -> vector<64x32xf32>
    %309 = arith.mulf %308, %5 : vector<64x32xf32>
    %310 = arith.truncf %309 : vector<64x32xf32> to vector<64x32xbf16>
    %cst_130 = arith.constant dense<0.000000e+00> : vector<8x32xf32>
    %311 = tpu.matmul %6, %310, %cst_130 {dimension_numbers = #tpu.dot_dimension_numbers<[1], [0], [0], [1], [0, 0, 1, 1], [], []>} : vector<8x64xbf16>, vector<64x32xbf16>, vector<8x32xf32> -> vector<8x32xf32>
    %312 = arith.truncf %311 : vector<8x32xf32> to vector<8x32xbf16>
    %cst_131 = arith.constant dense<0.000000e+00> : vector<8x32xf32>
    %313 = tpu.matmul %312, %286, %cst_131 {dimension_numbers = #tpu.dot_dimension_numbers<[1], [0], [0], [1], [0, 0, 1, 1], [], []>} : vector<8x32xbf16>, vector<32x32xbf16>, vector<8x32xf32> -> vector<8x32xf32>
    %314 = vector.extract_strided_slice %210 {offsets = [1, 0], sizes = [1, 32], strides = [1, 1]} : vector<3x32xf32> to vector<1x32xf32>
    %315 = vector.extract_strided_slice %212 {offsets = [1, 0], sizes = [1, 32], strides = [1, 1]} : vector<3x32xf32> to vector<1x32xf32>
    %316 = arith.addf %313, %273 : vector<8x32xf32>
    %cst_132 = arith.constant dense<0.000000e+00> : vector<8xf32>
    %317 = vector.multi_reduction <add>, %316, %cst_132 [1] : vector<8x32xf32> to vector<8xf32>
    %318 = vector.shape_cast %317 : vector<8xf32> to vector<8x1xf32>
    %cst_133 = arith.constant 3.200000e+01 : f32
    %319 = vector.broadcast %cst_133 : f32 to vector<8x1xf32>
    %320 = arith.divf %318, %319 : vector<8x1xf32>
    %321 = vector.broadcast %320 : vector<8x1xf32> to vector<8x32xf32>
    %322 = arith.subf %316, %321 : vector<8x32xf32>
    %323 = arith.mulf %322, %322 : vector<8x32xf32>
    %cst_134 = arith.constant dense<0.000000e+00> : vector<8xf32>
    %324 = vector.multi_reduction <add>, %323, %cst_134 [1] : vector<8x32xf32> to vector<8xf32>
    %325 = vector.shape_cast %324 : vector<8xf32> to vector<8x1xf32>
    %cst_135 = arith.constant 3.200000e+01 : f32
    %326 = vector.broadcast %cst_135 : f32 to vector<8x1xf32>
    %327 = arith.divf %325, %326 : vector<8x1xf32>
    %cst_136 = arith.constant 9.99999974E-6 : f32
    %328 = vector.broadcast %cst_136 : f32 to vector<8x1xf32>
    %329 = arith.addf %327, %328 : vector<8x1xf32>
    %330 = math.rsqrt %329 : vector<8x1xf32>
    %331 = vector.broadcast %330 : vector<8x1xf32> to vector<8x32xf32>
    %332 = arith.mulf %322, %331 : vector<8x32xf32>
    %333 = vector.broadcast %314 : vector<1x32xf32> to vector<8x32xf32>
    %334 = arith.mulf %332, %333 : vector<8x32xf32>
    %335 = vector.broadcast %315 : vector<1x32xf32> to vector<8x32xf32>
    %336 = arith.addf %334, %335 : vector<8x32xf32>
    %337 = arith.truncf %336 : vector<8x32xf32> to vector<8x32xbf16>
    %c1_137 = arith.constant 1 : index
    %c0_138 = arith.constant 0 : index
    %c0_139 = arith.constant 0 : index
    %338 = vector.load %arg12[%c1_137, %c0_138, %c0_139] : memref<2x32x64xbf16, #tpu.memory_space<vmem>>, vector<1x32x64xbf16>
    %339 = vector.shape_cast %338 : vector<1x32x64xbf16> to vector<32x64xbf16>
    %cst_140 = arith.constant dense<0.000000e+00> : vector<8x64xf32>
    %340 = tpu.matmul %337, %339, %cst_140 {dimension_numbers = #tpu.dot_dimension_numbers<[1], [0], [0], [1], [0, 0, 1, 1], [], []>} : vector<8x32xbf16>, vector<32x64xbf16>, vector<8x64xf32> -> vector<8x64xf32>
    %c1_141 = arith.constant 1 : index
    %c0_142 = arith.constant 0 : index
    %c0_143 = arith.constant 0 : index
    %341 = vector.load %arg13[%c1_141, %c0_142, %c0_143] : memref<2x1x64xf32, #tpu.memory_space<vmem>>, vector<1x1x64xf32>
    %342 = vector.shape_cast %341 : vector<1x1x64xf32> to vector<1x64xf32>
    %343 = vector.broadcast %342 : vector<1x64xf32> to vector<8x64xf32>
    %344 = arith.addf %340, %343 : vector<8x64xf32>
    %cst_144 = arith.constant 0.000000e+00 : f32
    %345 = vector.broadcast %cst_144 : f32 to vector<8x64xf32>
    %346 = arith.maximumf %344, %345 : vector<8x64xf32>
    %347 = arith.truncf %346 : vector<8x64xf32> to vector<8x64xbf16>
    %c1_145 = arith.constant 1 : index
    %c0_146 = arith.constant 0 : index
    %c0_147 = arith.constant 0 : index
    %348 = vector.load %arg14[%c1_145, %c0_146, %c0_147] : memref<2x64x32xbf16, #tpu.memory_space<vmem>>, vector<1x64x32xbf16>
    %349 = vector.shape_cast %348 : vector<1x64x32xbf16> to vector<64x32xbf16>
    %cst_148 = arith.constant dense<0.000000e+00> : vector<8x32xf32>
    %350 = tpu.matmul %347, %349, %cst_148 {dimension_numbers = #tpu.dot_dimension_numbers<[1], [0], [0], [1], [0, 0, 1, 1], [], []>} : vector<8x64xbf16>, vector<64x32xbf16>, vector<8x32xf32> -> vector<8x32xf32>
    %c1_149 = arith.constant 1 : index
    %c0_150 = arith.constant 0 : index
    %c0_151 = arith.constant 0 : index
    %351 = vector.load %arg15[%c1_149, %c0_150, %c0_151] : memref<2x1x32xf32, #tpu.memory_space<vmem>>, vector<1x1x32xf32>
    %352 = vector.shape_cast %351 : vector<1x1x32xf32> to vector<1x32xf32>
    %353 = vector.broadcast %352 : vector<1x32xf32> to vector<8x32xf32>
    %354 = arith.addf %350, %353 : vector<8x32xf32>
    %355 = vector.extract_strided_slice %210 {offsets = [2, 0], sizes = [1, 32], strides = [1, 1]} : vector<3x32xf32> to vector<1x32xf32>
    %356 = vector.extract_strided_slice %212 {offsets = [2, 0], sizes = [1, 32], strides = [1, 1]} : vector<3x32xf32> to vector<1x32xf32>
    %357 = arith.addf %354, %336 : vector<8x32xf32>
    %cst_152 = arith.constant dense<0.000000e+00> : vector<8xf32>
    %358 = vector.multi_reduction <add>, %357, %cst_152 [1] : vector<8x32xf32> to vector<8xf32>
    %359 = vector.shape_cast %358 : vector<8xf32> to vector<8x1xf32>
    %cst_153 = arith.constant 3.200000e+01 : f32
    %360 = vector.broadcast %cst_153 : f32 to vector<8x1xf32>
    %361 = arith.divf %359, %360 : vector<8x1xf32>
    %362 = vector.broadcast %361 : vector<8x1xf32> to vector<8x32xf32>
    %363 = arith.subf %357, %362 : vector<8x32xf32>
    %364 = arith.mulf %363, %363 : vector<8x32xf32>
    %cst_154 = arith.constant dense<0.000000e+00> : vector<8xf32>
    %365 = vector.multi_reduction <add>, %364, %cst_154 [1] : vector<8x32xf32> to vector<8xf32>
    %366 = vector.shape_cast %365 : vector<8xf32> to vector<8x1xf32>
    %cst_155 = arith.constant 3.200000e+01 : f32
    %367 = vector.broadcast %cst_155 : f32 to vector<8x1xf32>
    %368 = arith.divf %366, %367 : vector<8x1xf32>
    %cst_156 = arith.constant 9.99999974E-6 : f32
    %369 = vector.broadcast %cst_156 : f32 to vector<8x1xf32>
    %370 = arith.addf %368, %369 : vector<8x1xf32>
    %371 = math.rsqrt %370 : vector<8x1xf32>
    %372 = vector.broadcast %371 : vector<8x1xf32> to vector<8x32xf32>
    %373 = arith.mulf %363, %372 : vector<8x32xf32>
    %374 = vector.broadcast %355 : vector<1x32xf32> to vector<8x32xf32>
    %375 = arith.mulf %373, %374 : vector<8x32xf32>
    %376 = vector.broadcast %356 : vector<1x32xf32> to vector<8x32xf32>
    %377 = arith.addf %375, %376 : vector<8x32xf32>
    %378 = arith.truncf %377 : vector<8x32xf32> to vector<8x32xbf16>
    %c0_157 = arith.constant 0 : index
    %c0_158 = arith.constant 0 : index
    %379 = vector.load %arg18[%c0_157, %c0_158] : memref<32x16xbf16, #tpu.memory_space<vmem>>, vector<32x16xbf16>
    %cst_159 = arith.constant dense<0.000000e+00> : vector<8x16xf32>
    %380 = tpu.matmul %378, %379, %cst_159 {dimension_numbers = #tpu.dot_dimension_numbers<[1], [0], [0], [1], [0, 0, 1, 1], [], []>} : vector<8x32xbf16>, vector<32x16xbf16>, vector<8x16xf32> -> vector<8x16xf32>
    %c0_160 = arith.constant 0 : index
    %c0_161 = arith.constant 0 : index
    %381 = vector.load %arg19[%c0_160, %c0_161] : memref<1x16xf32, #tpu.memory_space<vmem>>, vector<1x16xf32>
    %382 = vector.broadcast %381 : vector<1x16xf32> to vector<8x16xf32>
    %383 = arith.addf %380, %382 : vector<8x16xf32>
    %cst_162 = arith.constant dense<0xFF800000> : vector<8xf32>
    %384 = vector.multi_reduction <maximumf>, %383, %cst_162 [1] : vector<8x16xf32> to vector<8xf32>
    %385 = vector.shape_cast %384 : vector<8xf32> to vector<8x1xf32>
    %386 = vector.broadcast %385 : vector<8x1xf32> to vector<8x16xf32>
    %387 = arith.subf %383, %386 : vector<8x16xf32>
    %388 = math.exp %387 : vector<8x16xf32>
    %cst_163 = arith.constant dense<0.000000e+00> : vector<8xf32>
    %389 = vector.multi_reduction <add>, %388, %cst_163 [1] : vector<8x16xf32> to vector<8xf32>
    %390 = vector.shape_cast %389 : vector<8xf32> to vector<8x1xf32>
    %391 = vector.broadcast %390 : vector<8x1xf32> to vector<8x16xf32>
    %392 = arith.divf %388, %391 : vector<8x16xf32>
    %393 = vector.shape_cast %392 : vector<8x16xf32> to vector<1x8x16xf32>
    %c0_164 = arith.constant 0 : index
    %c0_165 = arith.constant 0 : index
    %c0_166 = arith.constant 0 : index
    %394 = vector.load %arg20[%c0_164, %c0_165, %c0_166] : memref<1x8x16xf32, #tpu.memory_space<vmem>>, vector<1x8x16xf32>
    tpu.vector_store %arg20[%c0_164, %c0_165, %c0_166], %393 {strides = array<i32>} : memref<1x8x16xf32, #tpu.memory_space<vmem>>, vector<1x8x16xf32>,
    return
  }
  func.func @transform_0(%arg0: i32) -> (i32, i32, i32) {
    %c0_i32 = arith.constant 0 : i32
    %c0_i32_0 = arith.constant 0 : i32
    %c0_i32_1 = arith.constant 0 : i32
    return %arg0, %c0_i32, %c0_i32_0 : i32, i32, i32
  }
  func.func @transform_1(%arg0: i32) -> (i32, i32, i32) {
    %c0_i32 = arith.constant 0 : i32
    %c0_i32_0 = arith.constant 0 : i32
    %c0_i32_1 = arith.constant 0 : i32
    return %arg0, %c0_i32, %c0_i32_0 : i32, i32, i32
  }
  func.func @transform_2(%arg0: i32) -> (i32, i32, i32) {
    %c0_i32 = arith.constant 0 : i32
    %c0_i32_0 = arith.constant 0 : i32
    %c0_i32_1 = arith.constant 0 : i32
    return %arg0, %c0_i32, %c0_i32_0 : i32, i32, i32
  }
  func.func @transform_3(%arg0: i32) -> (i32, i32, i32) {
    %c0_i32 = arith.constant 0 : i32
    %c0_i32_0 = arith.constant 0 : i32
    %c0_i32_1 = arith.constant 0 : i32
    return %arg0, %c0_i32, %c0_i32_0 : i32, i32, i32
  }
  func.func @transform_4(%arg0: i32) -> (i32, i32) {
    %c0_i32 = arith.constant 0 : i32
    %c0_i32_0 = arith.constant 0 : i32
    %c0_i32_1 = arith.constant 0 : i32
    return %c0_i32, %c0_i32_0 : i32, i32
  }
  func.func @transform_5(%arg0: i32) -> (i32, i32) {
    %c0_i32 = arith.constant 0 : i32
    %c0_i32_0 = arith.constant 0 : i32
    %c0_i32_1 = arith.constant 0 : i32
    return %c0_i32, %c0_i32_0 : i32, i32
  }
  func.func @transform_6(%arg0: i32) -> (i32, i32, i32) {
    %c0_i32 = arith.constant 0 : i32
    %c0_i32_0 = arith.constant 0 : i32
    %c0_i32_1 = arith.constant 0 : i32
    %c0_i32_2 = arith.constant 0 : i32
    return %c0_i32, %c0_i32_0, %c0_i32_1 : i32, i32, i32
  }
  func.func @transform_7(%arg0: i32) -> (i32, i32, i32) {
    %c0_i32 = arith.constant 0 : i32
    %c0_i32_0 = arith.constant 0 : i32
    %c0_i32_1 = arith.constant 0 : i32
    %c0_i32_2 = arith.constant 0 : i32
    return %c0_i32, %c0_i32_0, %c0_i32_1 : i32, i32, i32
  }
  func.func @transform_8(%arg0: i32) -> (i32, i32, i32) {
    %c0_i32 = arith.constant 0 : i32
    %c0_i32_0 = arith.constant 0 : i32
    %c0_i32_1 = arith.constant 0 : i32
    %c0_i32_2 = arith.constant 0 : i32
    return %c0_i32, %c0_i32_0, %c0_i32_1 : i32, i32, i32
  }
  func.func @transform_9(%arg0: i32) -> (i32, i32, i32) {
    %c0_i32 = arith.constant 0 : i32
    %c0_i32_0 = arith.constant 0 : i32
    %c0_i32_1 = arith.constant 0 : i32
    %c0_i32_2 = arith.constant 0 : i32
    return %c0_i32, %c0_i32_0, %c0_i32_1 : i32, i32, i32
  }
  func.func @transform_10(%arg0: i32) -> (i32, i32, i32) {
    %c0_i32 = arith.constant 0 : i32
    %c0_i32_0 = arith.constant 0 : i32
    %c0_i32_1 = arith.constant 0 : i32
    %c0_i32_2 = arith.constant 0 : i32
    return %c0_i32, %c0_i32_0, %c0_i32_1 : i32, i32, i32
  }
  func.func @transform_11(%arg0: i32) -> (i32, i32, i32) {
    %c0_i32 = arith.constant 0 : i32
    %c0_i32_0 = arith.constant 0 : i32
    %c0_i32_1 = arith.constant 0 : i32
    %c0_i32_2 = arith.constant 0 : i32
    return %c0_i32, %c0_i32_0, %c0_i32_1 : i32, i32, i32
  }
  func.func @transform_12(%arg0: i32) -> (i32, i32, i32) {
    %c0_i32 = arith.constant 0 : i32
    %c0_i32_0 = arith.constant 0 : i32
    %c0_i32_1 = arith.constant 0 : i32
    %c0_i32_2 = arith.constant 0 : i32
    return %c0_i32, %c0_i32_0, %c0_i32_1 : i32, i32, i32
  }
  func.func @transform_13(%arg0: i32) -> (i32, i32, i32) {
    %c0_i32 = arith.constant 0 : i32
    %c0_i32_0 = arith.constant 0 : i32
    %c0_i32_1 = arith.constant 0 : i32
    %c0_i32_2 = arith.constant 0 : i32
    return %c0_i32, %c0_i32_0, %c0_i32_1 : i32, i32, i32
  }
  func.func @transform_14(%arg0: i32) -> (i32, i32, i32) {
    %c0_i32 = arith.constant 0 : i32
    %c0_i32_0 = arith.constant 0 : i32
    %c0_i32_1 = arith.constant 0 : i32
    %c0_i32_2 = arith.constant 0 : i32
    return %c0_i32, %c0_i32_0, %c0_i32_1 : i32, i32, i32
  }
  func.func @transform_15(%arg0: i32) -> (i32, i32, i32) {
    %c0_i32 = arith.constant 0 : i32
    %c0_i32_0 = arith.constant 0 : i32
    %c0_i32_1 = arith.constant 0 : i32
    %c0_i32_2 = arith.constant 0 : i32
    return %c0_i32, %c0_i32_0, %c0_i32_1 : i32, i32, i32
  }
  func.func @transform_16(%arg0: i32) -> (i32, i32, i32) {
    %c0_i32 = arith.constant 0 : i32
    %c0_i32_0 = arith.constant 0 : i32
    %c0_i32_1 = arith.constant 0 : i32
    %c0_i32_2 = arith.constant 0 : i32
    return %c0_i32, %c0_i32_0, %c0_i32_1 : i32, i32, i32
  }
  func.func @transform_17(%arg0: i32) -> (i32, i32) {
    %c0_i32 = arith.constant 0 : i32
    %c0_i32_0 = arith.constant 0 : i32
    %c0_i32_1 = arith.constant 0 : i32
    return %c0_i32, %c0_i32_0 : i32, i32
  }
  func.func @transform_18(%arg0: i32) -> (i32, i32) {
    %c0_i32 = arith.constant 0 : i32
    %c0_i32_0 = arith.constant 0 : i32
    %c0_i32_1 = arith.constant 0 : i32
    return %c0_i32, %c0_i32_0 : i32, i32
  }
  func.func @transform_19(%arg0: i32) -> (i32, i32, i32) {
    %c0_i32 = arith.constant 0 : i32
    %c0_i32_0 = arith.constant 0 : i32
    %c0_i32_1 = arith.constant 0 : i32
    return %arg0, %c0_i32, %c0_i32_0 : i32, i32, i32
  }
}

</mosaic_0001>

<bundles_post_ra>
// kernel: tpu_custom_call.1
= control target key start
LH: loop header
LB: loop body
LE: loop exit
PB: predicated region body
PF: predicated region fallthrough
CT: control target
= control target key end

     0   :  { %s5434_s0 = inlined_call_operand.hbm [shape: f32[2,8,32], index: 0, kind: input, shape index: {}]   ;;  %s5435_s1 = inlined_call_operand.hbm [shape: f32[2,8,32], index: 1, kind: input, shape index: {}]   ;;  %s5436_s2 = inlined_call_operand.hbm [shape: f32[2,1,8], index: 2, kind: input, shape index: {}]   ;;  %s5437_s3 = inlined_call_operand.hbm [shape: f32[2,1,8], index: 3, kind: input, shape index: {}]   ;;  %s5438_s4 = inlined_call_operand.vmem [shape: f32[64,32], index: 4, kind: input, shape index: {}]   ;;  %s5439_s5 = inlined_call_operand.hbm [shape: bf16[8,64], index: 5, kind: input, shape index: {}]   ;;  %s5440_s6 = inlined_call_operand.vmem [shape: bf16[2,32,96], index: 6, kind: input, shape index: {}]   ;;  %s5441_s7 = inlined_call_operand.vmem [shape: bf16[2,32,32], index: 7, kind: input, shape index: {}]   ;;  %s5442_s8 = inlined_call_operand.vmem [shape: bf16[2,32,32], index: 8, kind: input, shape index: {}]   ;;  %s5443_s9 = inlined_call_operand.vmem [shape: bf16[2,32,64], index: 9, kind: input, shape index: {}]   ;;  %s5444_s10 = inlined_call_operand.vmem [shape: bf16[2,32,32], index: 10, kind: input, shape index: {}]   ;;  %s5445_s11 = inlined_call_operand.vmem [shape: bf16[2,32,64], index: 11, kind: input, shape index: {}]   ;;  %s5446_s12 = inlined_call_operand.vmem [shape: f32[2,1,64], index: 12, kind: input, shape index: {}]   ;;  %s5447_s13 = inlined_call_operand.vmem [shape: bf16[2,64,32], index: 13, kind: input, shape index: {}]   ;;  %s5448_s14 = inlined_call_operand.vmem [shape: f32[2,1,32], index: 14, kind: input, shape index: {}]   ;;  %s5449_s15 = inlined_call_operand.vmem [shape: f32[2,3,32], index: 15, kind: input, shape index: {}]   ;;  %s5450_s16 = inlined_call_operand.vmem [shape: f32[2,3,32], index: 16, kind: input, shape index: {}]   ;;  %s5451_s17 = inlined_call_operand.vmem [shape: bf16[32,16], index: 17, kind: input, shape index: {}]   ;;  %s5452_s18 = inlined_call_operand.vmem [shape: f32[1,16], index: 18, kind: input, shape index: {}]   ;;  %s5453_s19 = inlined_call_operand.hbm [shape: f32[2,8,16], index: 19, kind: output, shape index: {}]  }
   0x1   :  { %5482 = sst [smem:[#allocation23_spill]] %s5434_s0 }
   0x2   :  { %5483 = sst [smem:[#allocation24_spill]] %s5435_s1 }
   0x3   :  { %5484 = sst [smem:[#allocation25_spill]] %s5436_s2 }
   0x4   :  { %5485 = sst [smem:[#allocation26_spill]] %s5437_s3 }
   0x5   :  { %5486 = sst [smem:[#allocation27_spill]] %s5438_s4 }
   0x6   :  { %5487 = sst [smem:[#allocation28_spill]] %s5439_s5 }
   0x7   :  { %5488 = sst [smem:[#allocation29_spill]] %s5444_s10 }
   0x8   :  { %5489 = sst [smem:[#allocation30_spill]] %s5445_s11 }
   0x9   :  { %5490 = sst [smem:[#allocation31_spill]] %s5446_s12 }
   0xa   :  { %5491 = sst [smem:[#allocation32_spill]] %s5447_s13 }
   0xb   :  { %5492 = sst [smem:[#allocation33_spill]] %s5448_s14 }
   0xc   :  { %5493 = sst [smem:[#allocation34_spill]] %s5451_s17 }
   0xd   :  { %5494 = sst [smem:[#allocation35_spill]] %s5452_s18 }
   0xe   :  { %5495 = sst [smem:[#allocation36_spill]] %s5453_s19 }
   0xf   :  { %24 = vsyncpa [#allocation3], 0 }
  0x10   :  { %26 = vsyncpa [#allocation3 + $0x1], 0 }
  0x11   :  { %27 = vsyncpa [#allocation6], 0 }
  0x12   :  { %29 = vsyncpa [#allocation6 + $0x1], 0 }
  0x13   :  { %30 = vsyncpa [#allocation9], 0 }
  0x14   :  { %32 = vsyncpa [#allocation9 + $0x1], 0 }
  0x15   :  { %33 = vsyncpa [#allocation4], 0 }
  0x16   :  { %35 = vsyncpa [#allocation4 + $0x1], 0  ;;  %s4470_s0 = smov 0   ;;  %s4472_s30 = smov 0  }
  0x17   :  { %s4474_s20 = smov 0   ;;  %s4476_s21 = smov 0  }
  0x18 LB: > { %5496 = sst [smem:[#allocation17_spill]] %s4346_s0  ;;  %s4491_s1 = sadd.s32 4294967295, %s4358_s21   ;;  %s4358_s21 = sphi %s4476_s21, %s5546_s21   ;;  %s4354_s20 = sphi %s4474_s20, %s5548_s20   ;;  %s4350_s30 = sphi %s4472_s30, %s5550_s30   ;;  %s4346_s0 = sphi %s4470_s0, %s5549_s0  }
  0x19   : > { %5497 = sst [smem:[#allocation18_spill]] %s4354_s20  ;;  %s3351_s22 = sadd.s32 4294967294, %s4358_s21  }
  0x1a   : > { %s4495_s2 = sadd.s32 1, %s4358_s21   ;;  %s48_s23 = sadd.s32 1, %s4354_s20 }
  0x1b   : > { %5498 = sst [smem:[#allocation19_spill]] %s4495_s2  ;;  %s45_s24 = ssub.s32 %s4358_s21, %s4495_s2 }
  0x1c   : > { %p55_p0 = scmp.ne.s32.totalorder %s4354_s20, %s4350_s30  ;;  %p46_p1 = scmp.eq.s32.totalorder %s45_s24, 0 }
  0x1d   : > { %p56_p2 = scmp.eq.s32.totalorder %s4358_s21, 0  ;;  %p61_p3 = scmp.ne.s32.totalorder %s4350_s30, %s4346_s0 }
  0x1e   : > { %p5458_p4 = scmp.eq.s32.totalorder %s4491_s1, 0  ;;  %p478_p7 = scmp.eq.s32.totalorder %s4491_s1, 1 }
  0x1f   : > { %s4507_s25 = scalar_select %p46_p1, %s4354_s20, %s48_s23  }
  0x20   : > { %p4509_p5 = por %p56_p2, %p55_p0  ;;  %p4515_p6 = por %p5458_p4, %p61_p3 }
  0x21   : > { %5499 = sst [smem:[#allocation20_spill]] %s4507_s25  ;;  %p484_p8 = scmp.eq.s32.totalorder %s3351_s22, 1 }
  0x22   : > { %s5501_s26 = scalar_select %p4515_p6, 1, 0 }
  0x23   : > { %p3352_p9 = scmp.ge.s32.totalorder %s4358_s21, 1  ;;  %p491_p10 = scmp.lt.s32.totalorder %s4358_s21, 3 }
  0x24   : > { %p4522_p11 = por %p478_p7, %p55_p0  ;;  %p4526_p12 = por %p484_p8, %p61_p3 }
  0x25   : > { %p4530_p13 = pnand %p3352_p9, %p491_p10  ;;  %s4360_s22 = smov [#allocation10]  }
  0x26   : > { %s5502_s27 = scalar_select %p4522_p11, 1, 0 }
  0x27   : > { %s5504_s28 = scalar_select %p4526_p12, 1, 0 }
  0x28   : > { %5503 = sst [smem:[#allocation21_spill]] %s5502_s27  ;;  %p3883_p2 = pneg %p4530_p13 }
  0x29   : > { %5505 = sst [smem:[#allocation22_spill]] %s5504_s28  ;;  %s507_s23 = sshll.u32 %s4360_s22, 4  ;;  %s508_s23 = int_to_ptr.vmem [resolvable:$true] %s507_s23 }
  0x2a   : > { %s5506_s29 = scalar_select %p4530_p13, 1, 0 }
  0x2b   : > { %p3905_p4 = scmp.lt.s32.totalorder %s4358_s21, 2  ;;  %p5507_p0 = scmp.eq.s32.totalorder %s4491_s1, 0 }
  0x2c   : > { %s4545_s25 = sand.u32 1, %s4354_s20   ;;  %s5472_s28 = sshll.u32 %s4358_s21, 7 }
  0x2d   : > { %p4540_p7 = pnand %p3883_p2, %p5507_p0  ;;  %p4551_p3 = pnand %p3905_p4, %p4509_p5 }
  0x2e   : > { %s5510_s5 = sld [smem:[#allocation28_spill]] }
  0x2f   : > { %s5509_s0 = scalar_select %p4551_p3, 1, 0 }
  0x30   : > { %p4134_p9 = pneg %p4540_p7 }
  0x34   : > { %s4132_s27 = scalar_lea.hbm %s5510_s5, 64 }
  0x35   : > { %p4133_p8 = scmp.ne.s32.totalorder %s5510_s5, %s4132_s27  ;;  %p4139_p0 = scmp.lt.u32.totalorder %s4132_s27, %s5510_s5 }
  0x37   : > { %p4135_p10 = pnand %p4134_p9, %p4133_p8 }
  0x39   : > { %p4136_p2 = pneg %p4135_p10 }
  0x3b   : > { %p4141_p4 = pnand %p4139_p0, %p4136_p2 }
  0x3d   : > { %4144 = shalt.err (!%p4141_p4)
}
  0x3e   : > { %s4145_s3 = scalar_lea.vmem %s508_s23, 64  ;;  %p4153_p11 = scmp.lt.s32.totalorder %s508_s23, %s508_s23 }
  0x3f   : > { %p4146_p5 = scmp.ne.s32.totalorder %s508_s23, %s4145_s3  ;;  %p4154_p6 = scmp.lt.s32.totalorder %s4145_s3, %s4145_s3 }
  0x41   : > { %p4148_p1 = pnand %p4146_p5, %p4134_p9  ;;  %p4155_p13 = por %p4154_p6, %p4153_p11 }
  0x43   : > { %p4149_p12 = pneg %p4148_p1 }
  0x45   : > { %p4156_p3 = pnand %p4155_p13, %p4149_p12 }
  0x47   : > { %4159 = shalt.err (!%p4156_p3)
}
  0x48   : > { %3886 = dma.hbm_to_vmem [thread:$0]  (!%p4540_p7), %s5510_s5, 64, %s508_s23, [#allocation9]  }
  0x49   : > { %s5473_s19 = sand.u32 1, %s4358_s21   ;;  %s5511_s27 = sld [smem:[#allocation24_spill]] }
  0x4a   : > { %s5512_s3 = sshll.u32 %s4545_s25, 3  ;;  %s4585_s18 = scalar_lea.sflag [#allocation6], %s5473_s19 }
  0x4b   : > { %s579_s24 = scalar_lea.vmem [#allocation5], %s5512_s3  ;;  %p5513_p11 = scmp.ne.s32.totalorder %s5509_s0, 0 }
  0x4c   : > { %s586_s17 = sshll.u32 %s579_s24, 4  ;;  %s4581_s17 = int_to_ptr.vmem [resolvable:$true] %s586_s17 }
  0x4d   : > { %p4591_p12 = pneg %p5513_p11 }
  0x4f   : > { %s4577_s22 = scalar_lea.hbm %s5511_s27, %s5472_s28  ;;  %s4165_s3 = scalar_lea.hbm %s5511_s27, 256 }
  0x50   : > { %s4160_s23 = scalar_lea.hbm %s4577_s22, 128  ;;  %p4166_p7 = scmp.lt.u32.totalorder %s4577_s22, %s5511_s27 }
  0x51   : > { %p4161_p6 = scmp.ne.s32.totalorder %s4577_s22, %s4160_s23  ;;  %p4167_p3 = scmp.lt.u32.totalorder %s4165_s3, %s4160_s23 }
  0x52   : > { %p4169_p9 = scmp.lt.u32.totalorder %s4160_s23, %s4577_s22 }
  0x53   : > { %p4163_p13 = pnand %p4591_p12, %p4161_p6  ;;  %p4168_p8 = por %p4167_p3, %p4166_p7 }
  0x55   : > { %p4164_p1 = pneg %p4163_p13  ;;  %p4170_p10 = por %p4169_p9, %p4168_p8 }
  0x57   : > { %p4171_p2 = pnand %p4170_p10, %p4164_p1 }
  0x59   : > { %4174 = shalt.err (!%p4171_p2)
}
  0x5a   : > { %s4175_s19 = scalar_lea.vmem %s4581_s17, 128  ;;  %s4361_s20 = smov [#allocation5]  }
  0x5b   : > { %p4176_p0 = scmp.ne.s32.totalorder %s4581_s17, %s4175_s19  ;;  %s4180_s2 = sshll.u32 %s4361_s20, 4  ;;  %s4181_s2 = int_to_ptr.vmem [resolvable:$false] %s4180_s2 }
  0x5c   : > { %s4182_s28 = scalar_lea.vmem %s4181_s2, 256  ;;  %p4183_p6 = scmp.lt.s32.totalorder %s4581_s17, %s4181_s2 }
  0x5d   : > { %p4178_p4 = pnand %p4176_p0, %p4591_p12  ;;  %p4184_p13 = scmp.lt.s32.totalorder %s4182_s28, %s4175_s19 }
  0x5f   : > { %p4179_p5 = pneg %p4178_p4  ;;  %p4185_p7 = por %p4184_p13, %p4183_p6 }
  0x61   : > { %p4186_p3 = pnand %p4185_p7, %p4179_p5 }
  0x63   : > { %4189 = shalt.err (!%p4186_p3)
}
  0x64   : > { %3893 = dma.hbm_to_vmem [thread:$0]  (!%p5513_p11), %s4577_s22, 128, %s4581_s17, %s4585_s18  }
  0x65   : > { %s5515_s23 = sshll.u32 %s4358_s21, 7  ;;  %s5516_s20 = sld [smem:[#allocation23_spill]] }
  0x66   : > { %s5518_s19 = sshll.u32 %s4545_s25, 3  ;;  %s558_s12 = scalar_lea.sflag [#allocation3], %s4545_s25 }
  0x67   : > { %s561_s2 = scalar_lea.vmem [#allocation2], %s5518_s19 }
  0x68   : > { %s568_s28 = sshll.u32 %s561_s2, 4  ;;  %s569_s28 = int_to_ptr.vmem [resolvable:$true] %s568_s28 }
  0x6b   : > { %s5517_s27 = smov %s5516_s20  ;;  %s4620_s14 = scalar_lea.hbm %s5516_s20, %s5515_s23 }
  0x6c   : > { %s4190_s13 = scalar_lea.hbm %s4620_s14, 128  ;;  %s4195_s3 = scalar_lea.hbm %s5517_s27, 256 }
  0x6d   : > { %p4191_p1 = scmp.ne.s32.totalorder %s4620_s14, %s4190_s13  ;;  %p4196_p10 = scmp.lt.u32.totalorder %s4620_s14, %s5517_s27 }
  0x6e   : > { %p4197_p2 = scmp.lt.u32.totalorder %s4195_s3, %s4190_s13  ;;  %p4199_p4 = scmp.lt.u32.totalorder %s4190_s13, %s4620_s14 }
  0x6f   : > { %p4193_p8 = pnand %p4191_p1, %p4591_p12 }
  0x70   : > { %p4198_p0 = por %p4197_p2, %p4196_p10 }
  0x71   : > { %p4194_p9 = pneg %p4193_p8 }
  0x72   : > { %p4200_p5 = por %p4199_p4, %p4198_p0 }
  0x74   : > { %p4201_p6 = pnand %p4200_p5, %p4194_p9 }
  0x76   : > { %4204 = shalt.err (!%p4201_p6)
}
  0x77   : > { %s4205_s20 = scalar_lea.vmem %s569_s28, 128  ;;  %s4362_s19 = smov [#allocation2]  }
  0x78   : > { %p4206_p13 = scmp.ne.s32.totalorder %s569_s28, %s4205_s20  ;;  %s4210_s2 = sshll.u32 %s4362_s19, 4  ;;  %s4211_s2 = int_to_ptr.vmem [resolvable:$false] %s4210_s2 }
  0x79   : > { %s4212_s22 = scalar_lea.vmem %s4211_s2, 256  ;;  %p4213_p1 = scmp.lt.s32.totalorder %s569_s28, %s4211_s2 }
  0x7a   : > { %p4208_p7 = pnand %p4206_p13, %p4591_p12  ;;  %p4214_p8 = scmp.lt.s32.totalorder %s4212_s22, %s4205_s20 }
  0x7c   : > { %p4209_p3 = pneg %p4208_p7  ;;  %p4215_p11 = por %p4214_p8, %p4213_p1 }
  0x7e   : > { %p4216_p2 = pnand %p4215_p11, %p4209_p3 }
  0x80   : > { %4219 = shalt.err (!%p4216_p2)
}
  0x81   : > { %p5519_p10 = scmp.ne.s32.totalorder %s5509_s0, 0  ;;  %s3359_s13 = sshll.u32 %s4358_s21, 4 }
  0x82   : > { %s596_s17 = scalar_lea.vmem [#allocation7], %s4545_s25  ;;  %s5520_s19 = sld [smem:[#allocation25_spill]] }
  0x83   : > { %3890 = dma.hbm_to_vmem [thread:$0]  (!%p5519_p10), %s4620_s14, 128, %s569_s28, %s558_s12  }
  0x84   : > { %s603_s3 = sshll.u32 %s596_s17, 4  ;;  %s604_s3 = int_to_ptr.vmem [resolvable:$true] %s603_s3 }
  0x88   : > { %s601_s2 = scalar_lea.hbm %s5520_s19, %s3359_s13  ;;  %s4225_s11 = scalar_lea.hbm %s5520_s19, 32 }
  0x89   : > { %s4220_s20 = scalar_lea.hbm %s601_s2, 16  ;;  %p4226_p4 = scmp.lt.u32.totalorder %s601_s2, %s5520_s19 }
  0x8a   : > { %p4221_p11 = scmp.ne.s32.totalorder %s601_s2, %s4220_s20  ;;  %p4227_p5 = scmp.lt.u32.totalorder %s4225_s11, %s4220_s20 }
  0x8b   : > { %p4229_p13 = scmp.lt.u32.totalorder %s4220_s20, %s601_s2 }
  0x8c   : > { %p4223_p9 = pnand %p4221_p11, %p4591_p12  ;;  %p4228_p6 = por %p4227_p5, %p4226_p4 }
  0x8e   : > { %p4224_p0 = pneg %p4223_p9  ;;  %p4230_p7 = por %p4229_p13, %p4228_p6 }
  0x90   : > { %p4231_p3 = pnand %p4230_p7, %p4224_p0 }
  0x92   : > { %4234 = shalt.err (!%p4231_p3)
}
  0x93   : > { %s4235_s14 = scalar_lea.vmem %s604_s3, 16  ;;  %s4363_s28 = smov [#allocation7]  }
  0x94   : > { %p4236_p1 = scmp.ne.s32.totalorder %s604_s3, %s4235_s14  ;;  %s4240_s17 = sshll.u32 %s4363_s28, 4  ;;  %s4241_s17 = int_to_ptr.vmem [resolvable:$false] %s4240_s17 }
  0x95   : > { %s4242_s27 = scalar_lea.vmem %s4241_s17, 32  ;;  %p4243_p11 = scmp.lt.s32.totalorder %s604_s3, %s4241_s17 }
  0x96   : > { %p4238_p8 = pnand %p4236_p1, %p4591_p12  ;;  %p4244_p9 = scmp.lt.s32.totalorder %s4242_s27, %s4235_s14 }
  0x98   : > { %p4239_p2 = pneg %p4238_p8  ;;  %p4245_p10 = por %p4244_p9, %p4243_p11 }
  0x9a   : > { %p4246_p4 = pnand %p4245_p10, %p4239_p2 }
  0x9c   : > { %4249 = shalt.err (!%p4246_p4)
}
  0x9d   : > { %p5521_p5 = scmp.ne.s32.totalorder %s5509_s0, 0  ;;  %s5522_s23 = sld [smem:[#allocation26_spill]] }
  0x9e   : > { %s613_s20 = scalar_lea.vmem [#allocation8], %s4545_s25  ;;  %s5523_s12 = sand.u32 1, %s4358_s21  }
  0x9f   : > { %3896 = dma.hbm_to_vmem [thread:$0]  (!%p5521_p5), %s601_s2, 16, %s604_s3, %s4585_s18  }
  0xa0   : > { %s620_s22 = sshll.u32 %s613_s20, 4  ;;  %s611_s14 = scalar_lea.sflag [#allocation9], %s5523_s12  ;;  %s621_s22 = int_to_ptr.vmem [resolvable:$true] %s620_s22 }
  0xa3   : > { %s4667_s24 = scalar_lea.hbm %s5522_s23, %s3359_s13  ;;  %s4255_s2 = scalar_lea.hbm %s5522_s23, 32 }
  0xa4   : > { %s4250_s28 = scalar_lea.hbm %s4667_s24, 16  ;;  %p4256_p13 = scmp.lt.u32.totalorder %s4667_s24, %s5522_s23 }
  0xa5   : > { %p4251_p10 = scmp.ne.s32.totalorder %s4667_s24, %s4250_s28  ;;  %p4257_p7 = scmp.lt.u32.totalorder %s4255_s2, %s4250_s28 }
  0xa6   : > { %p4259_p1 = scmp.lt.u32.totalorder %s4250_s28, %s4667_s24 }
  0xa7   : > { %p4253_p0 = pnand %p4251_p10, %p4591_p12  ;;  %p4258_p3 = por %p4257_p7, %p4256_p13 }
  0xa9   : > { %p4254_p6 = pneg %p4253_p0  ;;  %p4260_p8 = por %p4259_p1, %p4258_p3 }
  0xab   : > { %p4261_p2 = pnand %p4260_p8, %p4254_p6 }
  0xad   : > { %4264 = shalt.err (!%p4261_p2)
}
  0xae   : > { %s4265_s25 = scalar_lea.vmem %s621_s22, 16  ;;  %s4364_s27 = smov [#allocation8]  }
  0xaf   : > { %p4266_p11 = scmp.ne.s32.totalorder %s621_s22, %s4265_s25  ;;  %s4270_s10 = sshll.u32 %s4364_s27, 4  ;;  %s4271_s10 = int_to_ptr.vmem [resolvable:$false] %s4270_s10 }
  0xb0   : > { %s4272_s11 = scalar_lea.vmem %s4271_s10, 32  ;;  %p4273_p10 = scmp.lt.s32.totalorder %s621_s22, %s4271_s10 }
  0xb1   : > { %p4268_p9 = pnand %p4266_p11, %p4591_p12  ;;  %p4274_p0 = scmp.lt.s32.totalorder %s4272_s11, %s4265_s25 }
  0xb3   : > { %p4269_p4 = pneg %p4268_p9  ;;  %p4275_p5 = por %p4274_p0, %p4273_p10 }
  0xb5   : > { %p4276_p7 = pnand %p4275_p5, %p4269_p4 }
  0xb7   : > { %4279 = shalt.err (!%p4276_p7)
}
  0xb8   : > { %p5524_p13 = scmp.ne.s32.totalorder %s5509_s0, 0  ;;  %p5525_p6 = scmp.ne.s32.totalorder %s5506_s29, 0 }
  0xb9   : > { %s4692_s5 = sand.u32 (!%p5525_p6), 1, %s4350_s30   ;;  %p5526_p12 = scmp.ne.s32.totalorder (!%p5525_p6), %s5501_s26, 0 }
  0xba   : > { %3899 = dma.hbm_to_vmem [thread:$0]  (!%p5524_p13), %s4667_s24, 16, %s621_s22, %s611_s14  }
  0xbb   : > { %629 = sbr.rel (%p5525_p6) target bundleno = 9459 (0x24f3), region = 96  ;;  %s4695_s20 = sshll.u32 (!%p5525_p6), %s4692_s5, 3 }
  0xbc   : > { %s632_s12 = scalar_lea.sflag (!%p5525_p6), [#allocation3], %s4692_s5  ;;  %s635_s28 = scalar_lea.vmem (!%p5525_p6), [#allocation2], %s4695_s20 }
  0xc2   : > { %4325 = dma.done.wait (%p5526_p12), %s632_s12, 128  }
  0xc3   : > { %4327 = vsyncadd (%p5526_p12), %s632_s12, 4294967168  ;;  %s640_s0 = sand.u32 1, %s4491_s1   ;;  %s644_s24 = scalar_lea.vmem [#allocation5], %s4695_s20 }
  0xc4   : > { %s641_s29 = scalar_lea.sflag [#allocation6], %s640_s0 }
  0xc5   : > { %4329 = dma.done.wait (%p5526_p12), %s641_s29, 144  }
  0xc6   : > { %4331 = vsyncadd (%p5526_p12), %s641_s29, 4294967152  ;;  %s652_s22 = scalar_lea.vmem [#allocation7], %s4692_s5  ;;  %s658_s14 = scalar_lea.sflag [#allocation9], %s640_s0 }
  0xc7   : > { %s660_s18 = scalar_lea.vmem [#allocation8], %s4692_s5 }
  0xc8   : > { %4333 = dma.done.wait (%p5526_p12), %s658_s14, 16  }
  0xc9   : > { %4335 = vsyncadd (%p5526_p12), %s658_s14, 4294967280  ;;  %p5527_p5 = scmp.eq.s32.totalorder %s4491_s1, 0 }
  0xcb   : > { %4337 = dma.done.wait (%p5527_p5), [#allocation9], 64   ;;  %p5528_p3 = pmov %p5527_p5 }
  0xcc   : > { %v4365_v0 = vmov 0.0   ;;  %vm4366_vm0 = vmmov 0   ;;  %v3945_v1 = vld [vmem:[%s5440_s6] sm:$0xff]   ;;  %v3946_v2 = vld [vmem:[%s5440_s6 + $0x8] sm:$0xff]   ;;  %vm789_vm1 = vcmask 261120   ;;  %s5529_s4 = sld [smem:[#allocation27_spill]]  ;;  %v749_v33 = vlaneseq }
  0xcd   : > { %4339 = vsyncadd (%p5528_p3), [#allocation9], 4294967232  ;;  %3605 = vmatprep.subr.bf16.mxu0 %v4365_v0  ;;  %3609 = vmatprep.mubr.msk.bf16.mxu0 %vm4366_vm0, %v4365_v0  ;;  %v4728_v3 = vld [vmem:[%s635_s28] sm:$0xff]  ;;  %s4367_s11 = smov 96   ;;  %vm934_vm4 = vcmask 64512   ;;  %vm1041_vm5 = vcmask 1043456  }
  0xce   : > { %3606 = vmatpush3.bf16.msra.mxu0 %v3945_v1  ;;  %v772_v4 = vpack.c.bf16 %v4728_v3, %v4728_v3  ;;  %v745_v34 = vld [vmem:[%s652_s22] sm:$0x1]  ;;  %v4797_v35 = vshrl.u32 %v749_v33, 7  ;;  %v757_v36 = vand.u32 127, %v749_v33  ;;  %s4368_s22 = smov 64   ;;  %vm1122_vm6 = vcmask 523264  }
  0xcf   : > { %3607 = vmatprep.subr.bf16.mxu0 %v4365_v0  ;;  %vm746_vm2 = vcmp.gt.f32.partialorder %v745_v34, 0.5  ;;  %s5530_s0 = sld [smem:[#allocation29_spill]]  ;;  %s5532_s26 = sld [smem:[#allocation30_spill]]  ;;  %vm3185_vm8 = vcmask 130048  }
  0xd0   : > { %v4800_v37 = vsub.s32 0, %v4797_v35  ;;  %v747_v38 = vsel %vm746_vm2, -1e+30, %v4365_v0  ;;  %vm758_vm3 = vcmp.gt.s32.totalorder %v757_v36, %v4797_v35  ;;  %s5534_s17 = sld [smem:[#allocation31_spill]]  ;;  %s5535_s10 = sld [smem:[#allocation33_spill]] }
  0xd1   : > { %v759_v40 = vsel %vm758_vm3, -1e+30, %v4365_v0  ;;  %s5536_s28 = sld [smem:[#allocation34_spill]]  ;;  %s5537_s2 = sld [smem:[#allocation35_spill]] }
  0xd2   : > { %3608 = vmatpush3.bf16.msra.mxu0 %v3946_v2  ;;  %v4737_v6 = vld [vmem:[%s5529_s4] sm:$0xff]  ;;  %v4742_v7 = vld [vmem:[%s5529_s4 + $0x8] sm:$0xff]  ;;  %v4754_v17 = vld [vmem:[%s5529_s4 + $0x10] sm:$0xff]  ;;  %v752_v39 = vrot.slane %v747_v38, %v4800_v37  ;;  %s5538_s13 = sld [smem:[#allocation21_spill]]  ;;  %s3493_s25 = sshll.u32 %s4491_s1, 7 }
  0xd3   : > { %v4759_v18 = vld [vmem:[%s5529_s4 + $0x18] sm:$0xff]  ;;  %v4766_v20 = vld [vmem:[%s5529_s4 + $0x20] sm:$0xff]  ;;  %v4771_v21 = vld [vmem:[%s5529_s4 + $0x28] sm:$0xff]  ;;  %s731_s27 = scalar_lea.vmem [#allocation11], %s4695_s20  ;;  %s3199_s3 = scalar_lea.sflag [#allocation4], %s4692_s5 }
  0xd4   : > { %v4781_v28 = vld [vmem:[%s5529_s4 + $0x30] sm:$0xff]  ;;  %v4786_v29 = vld [vmem:[%s5529_s4 + $0x38] sm:$0xff]  ;;  %v4806_v41 = vadd.f32 %v759_v40, %v752_v39  ;;  %s4369_s1 = smov [#allocation11]  }
  0xd5   : > { %3610 = vmatmul.mubr.msk.bf16.vlgmr.msra.gmra.mrb[0].mxu0 %vm789_vm1, %v772_v4  ;;  %s5531_s29 = smov %s5530_s0  ;;  %s4284_s20 = sshll.u32 %s4369_s1, 4  ;;  %s4285_s20 = int_to_ptr.vmem [resolvable:$false] %s4284_s20 }
  0xd8   : > { %p5541_p8 = scmp.ne.s32.totalorder %s5538_s13, 0 }
 0x1a8   : > { %v827_v5 = vpop.f32.mrb[0].mxu0 }
 0x1a9   : > { %v833_v8 = vmul.f32 0.5, %v827_v5  ;;  %v3611_v9 = vpop.f32.mrb[1].mxu0  ;;  %v4744_v10 = vpack.c.bf16 %v827_v5, %v827_v5 }
 0x1aa   : > { %v830_v11 = vpop.f32.mrb[2].mxu0 }
 0x1ab   : > { %852 = vrot.lane.b32.xlu0 %v4744_v10, %s4367_s11  ;;  %v3612_v12 = vpop.f32.mrb[3].mxu0  ;;  %v838_v13 = vmul.f32 %v833_v8, %v4737_v6  ;;  %v839_v14 = vmul.f32 %v833_v8, %v4742_v7  ;;  %v840_v22 = vmul.f32 %v833_v8, %v4754_v17  ;;  %v841_v23 = vmul.f32 %v833_v8, %v4759_v18 }
 0x1ac   : > { %v842_v24 = vmul.f32 %v833_v8, %v4766_v20  ;;  %v843_v25 = vmul.f32 %v833_v8, %v4771_v21  ;;  %v844_v30 = vmul.f32 %v833_v8, %v4781_v28  ;;  %v845_v31 = vmul.f32 %v833_v8, %v4786_v29 }
 0x1ad   : > { %v846_v15 = vpack.c.bf16 %v839_v14, %v838_v13  ;;  %v847_v26 = vpack.c.bf16 %v841_v23, %v840_v22 }
 0x1ae   : > { %v848_v27 = vpack.c.bf16 %v843_v25, %v842_v24  ;;  %v849_v32 = vpack.c.bf16 %v845_v31, %v844_v30 }
 0x1af   : > { %3615 = vmatprep.mubr.msk.bf16.mxu1 %vm789_vm1, %v846_v15 }
 0x21d   : > { %v853_v16 = vpop.permute.xlu0 %852 }
 0x21e   : > { %3861 = vmatprep.subr.msk.bf16.mxu1 %vm789_vm1, %v853_v16  ;;  %v867_v19 = vsel %vm789_vm1, %v853_v16, 0 }
 0x21f   : > { %3614 = vmatpush3.bf16.xpose.msra.mxu1 %v867_v19 }
 0x220   : > { %3633 = vmatprep.subr.bf16.mxu1 %v4365_v0 }
 0x226   : > { %3616 = vmatmul.mubr.msk.bf16.vlgmr.msra.gmra.mrb[0].mxu1 %vm789_vm1, %v847_v26 }
 0x227   : > { %3619 = vmatprep.mubr.msk.bf16.mxu1 %vm789_vm1, %v848_v27 }
 0x22e   : > { %3620 = vmatmul.mubr.msk.bf16.gmra.mrb[4].mxu1 %vm789_vm1, %v849_v32 }
 0x22f   : > { %3641 = vmatprep.mubr.msk.bf16.mxu1 %vm4366_vm0, %v4365_v0 }
 0x2f9   : > { %v3617_v42 = vpop.f32.mrb[0].mxu1 }
 0x2fa   : > { %v912_v43 = vadd.f32 %v3617_v42, %v4806_v41  ;;  %v903_v44 = vpop.f32.mrb[1].mxu1 }
 0x2fb   : > { %v904_v45 = vadd.f32 %v903_v44, %v4806_v41  ;;  %v3618_v46 = vpop.f32.mrb[2].mxu1 }
 0x2fc   : > { %v915_v47 = vadd.f32 %v3618_v46, %v4806_v41  ;;  %v906_v48 = vpop.f32.mrb[3].mxu1  ;;  %v941_v49 = vsel %vm934_vm4, %v912_v43, -inf }
 0x2fd   : > { %942 = vmax.xlane.f32.xlu1 %v941_v49  ;;  %v935_v50 = vsel %vm934_vm4, %v904_v45, -inf  ;;  %v907_v51 = vadd.f32 %v906_v48, %v4806_v41 }
 0x2fe   : > { %936 = vmax.xlane.f32.xlu0 %v935_v50  ;;  %v944_v52 = vsel %vm934_vm4, %v915_v47, -inf }
 0x2ff   : > { %v938_v58 = vsel %vm934_vm4, %v907_v51, -inf }
 0x301   : > { %945 = vmax.xlane.f32.xlu1 %v944_v52  ;;  %v3621_v53 = vpop.f32.mrb[4].mxu1 }
 0x302   : > { %v919_v54 = vpop.f32.mrb[5].mxu1  ;;  %v928_v56 = vadd.f32 %v3621_v53, %v4806_v41 }
 0x303   : > { %v3622_v55 = vpop.f32.mrb[6].mxu1  ;;  %v920_v59 = vadd.f32 %v919_v54, %v4806_v41 }
 0x304   : > { %v922_v57 = vpop.f32.mrb[7].mxu1  ;;  %v953_v60 = vsel %vm934_vm4, %v928_v56, -inf  ;;  %v931_v63 = vadd.f32 %v3622_v55, %v4806_v41 }
 0x305   : > { %939 = vmax.xlane.f32.xlu1 %v938_v58  ;;  %v923_v61 = vadd.f32 %v922_v57, %v4806_v41  ;;  %v947_v62 = vsel %vm934_vm4, %v920_v59, -inf }
 0x306   : > { %v956_v2 = vsel %vm934_vm4, %v931_v63, -inf }
 0x307   : > { %v950_v1 = vsel %vm934_vm4, %v923_v61, -inf }
 0x309   : > { %954 = vmax.xlane.f32.xlu1 %v953_v60 }
 0x30d   : > { %948 = vmax.xlane.f32.xlu1 %v947_v62 }
 0x311   : > { %951 = vmax.xlane.f32.xlu1 %v950_v1 }
 0x315   : > { %957 = vmax.xlane.f32.xlu1 %v956_v2 }
 0x38a   : > { %v943_v4 = vpop.xlane.xlu1 %942 }
 0x38b   : > { %v961_v5 = vsub.f32 %v912_v43, %v943_v4  ;;  %v937_v8 = vpop.xlane.xlu0 %936 }
 0x38c   : > { %v959_v9 = vsub.f32 %v904_v45, %v937_v8 }
 0x38d   : > { %v971_v11 = vmul.f32 1.442695, %v961_v5 }
 0x38e   : > { %v967_v12 = vmul.f32 1.442695, %v959_v9  ;;  %v946_v13 = vpop.xlane.xlu1 %945 }
 0x38f   : > { %3979 = vpow2.f32 %v971_v11  ;;  %v962_v14 = vsub.f32 %v915_v47, %v946_v13 }
 0x390   : > { %3981 = vpow2.f32 %v967_v12 }
 0x391   : > { %v973_v19 = vmul.f32 1.442695, %v962_v14 }
 0x392   : > { %v940_v15 = vpop.xlane.xlu1 %939 }
 0x393   : > { %v960_v16 = vsub.f32 %v907_v51, %v940_v15 }
 0x395   : > { %v969_v22 = vmul.f32 1.442695, %v960_v16 }
 0x396   : > { %v955_v23 = vpop.xlane.xlu1 %954 }
 0x397   : > { %3983 = vpow2.f32 %v969_v22  ;;  %v965_v24 = vsub.f32 %v928_v56, %v955_v23 }
 0x398   : > { %3985 = vpow2.f32 %v973_v19 }
 0x399   : > { %v4824_v25 = vpop.eup %3979  ;;  %v979_v26 = vmul.f32 1.442695, %v965_v24 }
 0x39a   : > { %v3982_v27 = vpop.eup %3981  ;;  %v949_v30 = vpop.xlane.xlu1 %948  ;;  %v989_v31 = vsel %vm934_vm4, %v4824_v25, 0.0 }
 0x39b   : > { %3987 = vpow2.f32 %v979_v26  ;;  %v963_v32 = vsub.f32 %v920_v59, %v949_v30  ;;  %990 = vadd.xlane.f32.xlu0 %v989_v31  ;;  %v983_v33 = vsel %vm934_vm4, %v3982_v27, 0.0 }
 0x39c   : > { %984 = vadd.xlane.f32.xlu1 %v983_v33 }
 0x39d   : > { %v975_v34 = vmul.f32 1.442695, %v963_v32  ;;  %v3947_v32 = vld [vmem:[%s5441_s7] sm:$0xff]  }
 0x39e   : > { %v952_v36 = vpop.xlane.xlu1 %951 }
 0x39f   : > { %3989 = vpow2.f32 %v975_v34  ;;  %v964_v38 = vsub.f32 %v923_v61, %v952_v36 }
 0x3a1   : > { %v3984_v39 = vpop.eup %3983  ;;  %v977_v40 = vmul.f32 1.442695, %v964_v38 }
 0x3a2   : > { %v958_v42 = vpop.xlane.xlu1 %957  ;;  %v986_v43 = vsel %vm934_vm4, %v3984_v39, 0.0  ;;  %v3986_v44 = vpop.eup %3985 }
 0x3a3   : > { %3991 = vpow2.f32 %v977_v40  ;;  %v966_v45 = vsub.f32 %v931_v63, %v958_v42  ;;  %987 = vadd.xlane.f32.xlu1 %v986_v43  ;;  %v992_v49 = vsel %vm934_vm4, %v3986_v44, 0.0 }
 0x3a5   : > { %v3988_v46 = vpop.eup %3987  ;;  %v981_v47 = vmul.f32 1.442695, %v966_v45 }
 0x3a6   : > { %v1001_v48 = vsel %vm934_vm4, %v3988_v46, 0.0 }
 0x3a7   : > { %3993 = vpow2.f32 %v981_v47  ;;  %1002 = vadd.xlane.f32.xlu0 %v1001_v48  ;;  %993 = vadd.xlane.f32.xlu1 %v992_v49 }
 0x3a9   : > { %v3990_v50 = vpop.eup %3989 }
 0x3aa   : > { %v995_v51 = vsel %vm934_vm4, %v3990_v50, 0.0 }
 0x3ab   : > { %996 = vadd.xlane.f32.xlu0 %v995_v51 }
 0x3ad   : > { %v3992_v52 = vpop.eup %3991 }
 0x3ae   : > { %v998_v53 = vsel %vm934_vm4, %v3992_v52, 0.0 }
 0x3af   : > { %999 = vadd.xlane.f32.xlu1 %v998_v53 }
 0x3b1   : > { %v3994_v54 = vpop.eup %3993 }
 0x3b2   : > { %v1004_v55 = vsel %vm934_vm4, %v3994_v54, 0.0 }
 0x3b3   : > { %1005 = vadd.xlane.f32.xlu1 %v1004_v55 }
 0x3c1   : > { %1027 = vrot.lane.b32.xlu0 %v4744_v10, %s4368_s22 }
 0x428   : > { %v991_v57 = vpop.xlane.xlu0 %990 }
 0x429   : > { %v985_v56 = vpop.xlane.xlu1 %984 }
 0x42a   : > { %3995 = vrcp.f32 %v985_v56  ;;  %v4862_v56 = vld [vmem:[#allocation10] sm:$0xf] }
 0x430   : > { %v988_v58 = vpop.xlane.xlu1 %987 }
 0x431   : > { %3997 = vrcp.f32 %v988_v58 }
 0x432   : > { %3999 = vrcp.f32 %v991_v57  ;;  %v3948_v57 = vld [vmem:[%s5441_s7 + $0x8] sm:$0xff]  }
 0x434   : > { %v994_v59 = vpop.xlane.xlu1 %993  ;;  %v1003_v60 = vpop.xlane.xlu0 %1002 }
 0x435   : > { %4001 = vrcp.f32 %v994_v59  ;;  %v3996_v62 = vpop.eup %3995 }
 0x436   : > { %v1015_v4 = vmul.f32 %v3996_v62, %v3982_v27 }
 0x438   : > { %v997_v61 = vpop.xlane.xlu0 %996 }
 0x439   : > { %4003 = vrcp.f32 %v997_v61 }
 0x43b   : > { %v3998_v63 = vpop.eup %3997 }
 0x43c   : > { %v1000_v1 = vpop.xlane.xlu1 %999  ;;  %v1028_v2 = vpop.permute.xlu0 %1027  ;;  %v1016_v5 = vmul.f32 %v3998_v63, %v3984_v39 }
 0x43d   : > { %v4000_v8 = vpop.eup %3999  ;;  %4005 = vrcp.f32 %v1000_v1  ;;  %v1043_v10 = vsel %vm1041_vm5, %v1028_v2, 0  ;;  %3862 = vmatprep.subr.msk.bf16.mxu0 %vm1041_vm5, %v1028_v2 }
 0x43e   : > { %3624 = vmatpush3.bf16.msra.mxu0 %v1043_v10  ;;  %v1023_v9 = vpack.c.bf16 %v1016_v5, %v1015_v4  ;;  %4007 = vrcp.f32 %v1003_v60  ;;  %v1017_v12 = vmul.f32 %v4000_v8, %v4824_v25 }
 0x43f   : > { %v4002_v11 = vpop.eup %4001  ;;  %3645 = vmatprep.subr.bf16.mxu0 %v4365_v0 }
 0x440   : > { %v1018_v13 = vmul.f32 %v4002_v11, %v3986_v44  ;;  %3625 = vmatprep.mubr.msk.bf16.mxu0 %vm934_vm4, %v1023_v9  ;;  %v1006_v14 = vpop.xlane.xlu1 %1005 }
 0x441   : > { %4009 = vrcp.f32 %v1006_v14  ;;  %v3949_v14 = vld [vmem:[%s5443_s9] sm:$0xff]  }
 0x442   : > { %v1024_v15 = vpack.c.bf16 %v1018_v13, %v1017_v12 }
 0x443   : > { %v4004_v16 = vpop.eup %4003 }
 0x444   : > { %3626 = vmatmul.mubr.msk.bf16.vlgmr.msra.gmra.mrb[4].mxu0 %vm934_vm4, %v1024_v15  ;;  %v1019_v22 = vmul.f32 %v4004_v16, %v3990_v50  ;;  %v3951_v15 = vld [vmem:[%s5442_s8] sm:$0xff]   ;;  %v734_v16 = vld [vmem:[%s644_s24] sm:$0xff]  ;;  %s5533_s24 = sld [smem:[#allocation32_spill]] }
 0x445   : > { %3646 = vmatpush3.bf16.msra.mxu0 %v3947_v32 }
 0x446   : > { %3647 = vmatprep.subr.bf16.mxu0 %v4365_v0 }
 0x447   : > { %v4006_v19 = vpop.eup %4005 }
 0x448   : > { %v1020_v23 = vmul.f32 %v4006_v19, %v3992_v52  ;;  %v4008_v24 = vpop.eup %4007  ;;  %v4891_v19 = vpack.c.bf16 %v734_v16, %v734_v16 }
 0x449   : > { %v1021_v30 = vmul.f32 %v4008_v24, %v3988_v46  ;;  %3648 = vmatpush3.bf16.msra.mxu0 %v3948_v57 }
 0x44a   : > { %v1025_v26 = vpack.c.bf16 %v1020_v23, %v1019_v22  ;;  %3661 = vmatprep.subr.bf16.mxu0 %v4365_v0  ;;  %v3952_v22 = vld [vmem:[%s5442_s8 + $0x8] sm:$0xff]  }
 0x44b   : > { %v4010_v27 = vpop.eup %4009 }
 0x44c   : > { %3629 = vmatprep.mubr.msk.bf16.mxu0 %vm934_vm4, %v1025_v26  ;;  %v1022_v31 = vmul.f32 %v4010_v27, %v3994_v54  ;;  %v4902_v27 = vld [vmem:[%s5449_s15] sm:$0x7] }
 0x44e   : > { %v1026_v25 = vpack.c.bf16 %v1022_v31, %v1021_v30  ;;  %v4907_v30 = vld [vmem:[%s5450_s16] sm:$0x7]  ;;  %v1239_v31 = vrot.slane %v4902_v27, %v4800_v37 }
 0x450   : > { %3630 = vmatmul.mubr.msk.bf16.gmra.mrb[8].mxu0 %vm934_vm4, %v1026_v25 }
 0x451   : > { %3649 = vmatprep.mubr.msk.bf16.mxu0 %vm4366_vm0, %v4365_v0 }
 0x517   : > { %v3627_v33 = vpop.f32.mrb[4].mxu0 }
 0x518   : > { %v1079_v34 = vpop.f32.mrb[5].mxu0  ;;  %v1112_v38 = vmul.f32 %v3627_v33, %v4754_v17  ;;  %v1244_v33 = vrot.slane %v4907_v30, %v4800_v37 }
 0x519   : > { %v3628_v36 = vpop.f32.mrb[6].mxu0  ;;  %v1110_v42 = vmul.f32 %v1079_v34, %v4737_v6 }
 0x51a   : > { %v1113_v39 = vmul.f32 %v3628_v36, %v4759_v18  ;;  %v1082_v40 = vpop.f32.mrb[7].mxu0 }
 0x51b   : > { %v1111_v43 = vmul.f32 %v1082_v40, %v4742_v7 }
 0x51c   : > { %v1119_v44 = vpack.c.bf16 %v1113_v39, %v1112_v38 }
 0x51d   : > { %v1118_v45 = vpack.c.bf16 %v1111_v43, %v1110_v42 }
 0x51f   : > { %3634 = vmatpush3.bf16.msra.mxu1 %v1118_v45 }
 0x520   : > { %3635 = vmatprep.subr.bf16.mxu1 %v4365_v0 }
 0x523   : > { %v3631_v46 = vpop.f32.mrb[8].mxu0  ;;  %3636 = vmatpush3.bf16.msra.mxu1 %v1119_v44 }
 0x524   : > { %v1095_v47 = vpop.f32.mrb[9].mxu0  ;;  %3637 = vmatprep.subr.bf16.mxu1 %v4365_v0  ;;  %v1116_v49 = vmul.f32 %v3631_v46, %v4781_v28 }
 0x525   : > { %v3632_v48 = vpop.f32.mrb[10].mxu0  ;;  %v1114_v52 = vmul.f32 %v1095_v47, %v4766_v20 }
 0x526   : > { %v1117_v50 = vmul.f32 %v3632_v48, %v4786_v29  ;;  %v1098_v51 = vpop.f32.mrb[11].mxu0 }
 0x527   : > { %v1115_v53 = vmul.f32 %v1098_v51, %v4771_v21 }
 0x528   : > { %v1121_v54 = vpack.c.bf16 %v1117_v50, %v1116_v49 }
 0x529   : > { %v1120_v55 = vpack.c.bf16 %v1115_v53, %v1114_v52 }
 0x52b   : > { %3638 = vmatpush3.bf16.msra.mxu1 %v1120_v55 }
 0x52c   : > { %3639 = vmatprep.subr.bf16.mxu1 %v4365_v0 }
 0x52f   : > { %3640 = vmatpush3.bf16.msra.mxu1 %v1121_v54 }
 0x530   : > { %3653 = vmatprep.subr.bf16.mxu1 %v4365_v0 }
 0x532   : > { %3642 = vmatmul.mubr.msk.bf16.vlgmr.msra.gmra.mrb[8].mxu1 %vm1122_vm6, %v4862_v56 }
 0x533   : > { %3657 = vmatprep.mubr.msk.bf16.mxu1 %vm4366_vm0, %v4365_v0  ;;  %3654 = vmatpush3.bf16.msra.mxu1 %v3951_v15 }
 0x534   : > { %3655 = vmatprep.subr.bf16.mxu1 %v4365_v0 }
 0x537   : > { %3656 = vmatpush3.bf16.msra.mxu1 %v3952_v22 }
 0x605   : > { %v1160_v58 = vpop.f32.mrb[8].mxu1 }
 0x606   : > { %v1166_v59 = vpack.c.bf16 %v1160_v58, %v1160_v58  ;;  %v3643_v60 = vpop.f32.mrb[9].mxu1 }
 0x607   : > { %v1163_v61 = vpop.f32.mrb[10].mxu1 }
 0x608   : > { %v3644_v62 = vpop.f32.mrb[11].mxu1  ;;  %3650 = vmatmul.mubr.msk.bf16.vlgmr.msra.gmra.mrb[12].mxu0 %vm789_vm1, %v1166_v59 }
 0x609   : > { %3665 = vmatprep.mubr.msk.bf16.mxu0 %vm4366_vm0, %v4365_v0  ;;  %3662 = vmatpush3.bf16.msra.mxu0 %v3949_v14 }
 0x60a   : > { %3663 = vmatprep.subr.bf16.mxu0 %v4365_v0 }
 0x6db   : > { %v1216_v63 = vpop.f32.mrb[12].mxu0 }
 0x6dc   : > { %v1217_v1 = vadd.f32 %v1216_v63, %v4728_v3  ;;  %v3651_v2 = vpop.f32.mrb[13].mxu0  ;;  %v3950_v3 = vld [vmem:[%s5443_s9 + $0x8] sm:$0xff]  }
 0x6dd   : > { %v1219_v4 = vpop.f32.mrb[14].mxu0  ;;  %3664 = vmatpush3.bf16.msra.mxu0 %v3950_v3 }
 0x6de   : > { %v3652_v5 = vpop.f32.mrb[15].mxu0  ;;  %v1222_v8 = vsel %vm789_vm1, %v1217_v1, 0.0 }
 0x6df   : > { %1223 = vadd.xlane.f32.xlu1 %v1222_v8 }
 0x6e0   : > { %3666 = vmatmul.mubr.msk.bf16.vlgmr.msra.gmra.mrb[16].mxu0 %vm789_vm1, %v4891_v19 }
 0x76c   : > { %v1224_v10 = vpop.xlane.xlu1 %1223 }
 0x76d   : > { %v1226_v9 = vmul.f32 0.03125, %v1224_v10 }
 0x76f   : > { %v1227_v11 = vsub.f32 %v1217_v1, %v1226_v9  ;;  %v761_v1 = vld [vmem:[%s660_s18] sm:$0x1] }
 0x770   : > { %vm762_vm7 = vcmp.gt.f32.partialorder %v761_v1, 0.5 }
 0x771   : > { %v1228_v12 = vmul.f32 %v1227_v11, %v1227_v11  ;;  %v763_v2 = vsel %vm762_vm7, -1e+30, %v4365_v0 }
 0x772   : > { %v4943_v4 = vrot.slane %v763_v2, %v4800_v37 }
 0x773   : > { %v1229_v13 = vsel %vm789_vm1, %v1228_v12, 0.0 }
 0x774   : > { %1230 = vadd.xlane.f32.xlu1 %v1229_v13 }
 0x7b3   : > { %v1360_v39 = vpop.f32.mrb[16].mxu0 }
 0x7b4   : > { %v4918_v40 = vpack.c.bf16 %v1360_v39, %v1360_v39  ;;  %v3667_v42 = vpop.f32.mrb[17].mxu0 }
 0x7b5   : > { %v1363_v43 = vpop.f32.mrb[18].mxu0 }
 0x7b6   : > { %v3668_v44 = vpop.f32.mrb[19].mxu0  ;;  %3863 = vmatprep.subr.msk.bf16.mxu1 %vm789_vm1, %v4918_v40  ;;  %v1396_v45 = vsel %vm789_vm1, %v4918_v40, 0 }
 0x801   : > { %v1231_v23 = vpop.xlane.xlu1 %1230 }
 0x802   : > { %v1232_v24 = vmul.f32 0.03125, %v1231_v23 }
 0x804   : > { %v1233_v26 = vadd.f32 1e-05, %v1232_v24 }
 0x806   : > { %4011 = vrsqrt.f32 %v1233_v26 }
 0x810   : > { %v4012_v25 = vpop.eup %4011 }
 0x811   : > { %v1235_v32 = vmul.f32 %v4012_v25, %v1227_v11 }
 0x813   : > { %v1240_v34 = vmul.f32 %v1239_v31, %v1235_v32 }
 0x815   : > { %v4913_v36 = vadd.f32 %v1244_v33, %v1240_v34 }
 0x817   : > { %v1246_v38 = vpack.c.bf16 %v4913_v36, %v4913_v36 }
 0x819   : > { %3658 = vmatmul.mubr.msk.bf16.vlgmr.msra.gmra.mrb[12].mxu1 %vm789_vm1, %v1246_v38 }
 0x81a   : > { %3670 = vmatpush3.bf16.xpose.msra.mxu1 %v1396_v45 }
 0x81b   : > { %3689 = vmatprep.subr.bf16.mxu1 %v4365_v0 }
 0x8ec   : > { %v1300_v46 = vpop.f32.mrb[12].mxu1 }
 0x8ed   : > { %v1306_v47 = vmul.f32 0.5, %v1300_v46  ;;  %v3659_v48 = vpop.f32.mrb[13].mxu1 }
 0x8ee   : > { %v1303_v49 = vpop.f32.mrb[14].mxu1 }
 0x8ef   : > { %v3660_v50 = vpop.f32.mrb[15].mxu1  ;;  %v1370_v51 = vmul.f32 %v1306_v47, %v4737_v6  ;;  %v1371_v52 = vmul.f32 %v1306_v47, %v4742_v7  ;;  %v1372_v53 = vmul.f32 %v1306_v47, %v4754_v17  ;;  %v1373_v54 = vmul.f32 %v1306_v47, %v4759_v18 }
 0x8f0   : > { %v1374_v55 = vmul.f32 %v1306_v47, %v4766_v20  ;;  %v1375_v57 = vmul.f32 %v1306_v47, %v4771_v21  ;;  %v1376_v61 = vmul.f32 %v1306_v47, %v4781_v28  ;;  %v1377_v62 = vmul.f32 %v1306_v47, %v4786_v29 }
 0x8f1   : > { %v1378_v58 = vpack.c.bf16 %v1371_v52, %v1370_v51  ;;  %v1379_v59 = vpack.c.bf16 %v1373_v54, %v1372_v53 }
 0x8f2   : > { %v1380_v60 = vpack.c.bf16 %v1375_v57, %v1374_v55  ;;  %v1381_v63 = vpack.c.bf16 %v1377_v62, %v1376_v61 }
 0x8f3   : > { %3671 = vmatprep.mubr.msk.bf16.mxu1 %vm789_vm1, %v1378_v58 }
 0x8f4   : > { %3672 = vmatmul.mubr.msk.bf16.vlgmr.msra.gmra.mrb[16].mxu1 %vm789_vm1, %v1379_v59 }
 0x8f5   : > { %3675 = vmatprep.mubr.msk.bf16.mxu1 %vm789_vm1, %v1380_v60 }
 0x8fc   : > { %3676 = vmatmul.mubr.msk.bf16.gmra.mrb[20].mxu1 %vm789_vm1, %v1381_v63 }
 0x8fd   : > { %3697 = vmatprep.mubr.msk.bf16.mxu1 %vm4366_vm0, %v4365_v0 }
 0x9c7   : > { %v3673_v5 = vpop.f32.mrb[16].mxu1 }
 0x9c8   : > { %v1441_v8 = vadd.f32 %v3673_v5, %v4943_v4  ;;  %v1432_v10 = vpop.f32.mrb[17].mxu1 }
 0x9c9   : > { %v3674_v9 = vpop.f32.mrb[18].mxu1  ;;  %v1433_v11 = vadd.f32 %v1432_v10, %v4943_v4 }
 0x9ca   : > { %v1435_v12 = vpop.f32.mrb[19].mxu1  ;;  %v1469_v13 = vsel %vm934_vm4, %v1441_v8, -inf  ;;  %v1444_v14 = vadd.f32 %v3674_v9, %v4943_v4 }
 0x9cb   : > { %1470 = vmax.xlane.f32.xlu1 %v1469_v13  ;;  %v1463_v3 = vsel %vm934_vm4, %v1433_v11, -inf  ;;  %v1436_v24 = vadd.f32 %v1435_v12, %v4943_v4 }
 0x9cc   : > { %v1472_v31 = vsel %vm934_vm4, %v1444_v14, -inf }
 0x9cd   : > { %v1466_v33 = vsel %vm934_vm4, %v1436_v24, -inf }
 0x9cf   : > { %v3677_v15 = vpop.f32.mrb[20].mxu1  ;;  %1464 = vmax.xlane.f32.xlu1 %v1463_v3 }
 0x9d0   : > { %v1448_v16 = vpop.f32.mrb[21].mxu1  ;;  %v1457_v32 = vadd.f32 %v3677_v15, %v4943_v4 }
 0x9d1   : > { %v1449_v22 = vadd.f32 %v1448_v16, %v4943_v4  ;;  %v3678_v23 = vpop.f32.mrb[22].mxu1 }
 0x9d2   : > { %v1451_v26 = vpop.f32.mrb[23].mxu1  ;;  %v1481_v38 = vsel %vm934_vm4, %v1457_v32, -inf  ;;  %v1460_v39 = vadd.f32 %v3678_v23, %v4943_v4 }
 0x9d3   : > { %1473 = vmax.xlane.f32.xlu1 %v1472_v31  ;;  %v1475_v25 = vsel %vm934_vm4, %v1449_v22, -inf  ;;  %v1452_v34 = vadd.f32 %v1451_v26, %v4943_v4 }
 0x9d4   : > { %1476 = vmax.xlane.f32.xlu0 %v1475_v25  ;;  %v1484_v43 = vsel %vm934_vm4, %v1460_v39, -inf }
 0x9d5   : > { %v1478_v42 = vsel %vm934_vm4, %v1452_v34, -inf }
 0x9d7   : > { %1467 = vmax.xlane.f32.xlu1 %v1466_v33 }
 0x9db   : > { %1482 = vmax.xlane.f32.xlu1 %v1481_v38 }
 0x9df   : > { %1479 = vmax.xlane.f32.xlu1 %v1478_v42 }
 0x9e3   : > { %1485 = vmax.xlane.f32.xlu1 %v1484_v43 }
 0xa58   : > { %v1471_v44 = vpop.xlane.xlu1 %1470 }
 0xa59   : > { %v1489_v45 = vsub.f32 %v1441_v8, %v1471_v44 }
 0xa5b   : > { %v1499_v46 = vmul.f32 1.442695, %v1489_v45 }
 0xa5c   : > { %v1465_v47 = vpop.xlane.xlu1 %1464 }
 0xa5d   : > { %4013 = vpow2.f32 %v1499_v46  ;;  %v1487_v48 = vsub.f32 %v1433_v11, %v1465_v47 }
 0xa5f   : > { %v1495_v49 = vmul.f32 1.442695, %v1487_v48 }
 0xa60   : > { %v1474_v50 = vpop.xlane.xlu1 %1473 }
 0xa61   : > { %4015 = vpow2.f32 %v1495_v49  ;;  %v1490_v51 = vsub.f32 %v1444_v14, %v1474_v50  ;;  %v1477_v52 = vpop.xlane.xlu0 %1476 }
 0xa62   : > { %v1491_v58 = vsub.f32 %v1449_v22, %v1477_v52 }
 0xa63   : > { %v1501_v57 = vmul.f32 1.442695, %v1490_v51 }
 0xa64   : > { %v1468_v53 = vpop.xlane.xlu1 %1467  ;;  %v1503_v1 = vmul.f32 1.442695, %v1491_v58 }
 0xa65   : > { %v1488_v54 = vsub.f32 %v1436_v24, %v1468_v53 }
 0xa67   : > { %v4961_v55 = vpop.eup %4013  ;;  %v1497_v59 = vmul.f32 1.442695, %v1488_v54 }
 0xa68   : > { %v1483_v60 = vpop.xlane.xlu1 %1482  ;;  %v1517_v61 = vsel %vm934_vm4, %v4961_v55, 0.0 }
 0xa69   : > { %4017 = vpow2.f32 %v1497_v59  ;;  %v1493_v62 = vsub.f32 %v1457_v32, %v1483_v60  ;;  %1518 = vadd.xlane.f32.xlu1 %v1517_v61 }
 0xa6a   : > { %4019 = vpow2.f32 %v1501_v57 }
 0xa6b   : > { %v4016_v63 = vpop.eup %4015  ;;  %v1507_v2 = vmul.f32 1.442695, %v1493_v62 }
 0xa6c   : > { %v1480_v5 = vpop.xlane.xlu1 %1479  ;;  %v1511_v8 = vsel %vm934_vm4, %v4016_v63, 0.0 }
 0xa6d   : > { %4021 = vpow2.f32 %v1507_v2  ;;  %v1492_v10 = vsub.f32 %v1452_v34, %v1480_v5  ;;  %1512 = vadd.xlane.f32.xlu1 %v1511_v8 }
 0xa6e   : > { %4023 = vpow2.f32 %v1503_v1 }
 0xa6f   : > { %v1505_v9 = vmul.f32 1.442695, %v1492_v10 }
 0xa70   : > { %v1486_v11 = vpop.xlane.xlu1 %1485 }
 0xa71   : > { %4025 = vpow2.f32 %v1505_v9  ;;  %v1494_v12 = vsub.f32 %v1460_v39, %v1486_v11 }
 0xa73   : > { %v4018_v13 = vpop.eup %4017  ;;  %v1509_v14 = vmul.f32 1.442695, %v1494_v12 }
 0xa74   : > { %v1514_v3 = vsel %vm934_vm4, %v4018_v13, 0.0  ;;  %v4020_v15 = vpop.eup %4019 }
 0xa75   : > { %4027 = vpow2.f32 %v1509_v14  ;;  %1515 = vadd.xlane.f32.xlu1 %v1514_v3  ;;  %v1520_v22 = vsel %vm934_vm4, %v4020_v15, 0.0 }
 0xa77   : > { %v4022_v16 = vpop.eup %4021 }
 0xa78   : > { %v1529_v23 = vsel %vm934_vm4, %v4022_v16, 0.0  ;;  %v4024_v24 = vpop.eup %4023 }
 0xa79   : > { %1521 = vadd.xlane.f32.xlu1 %v1520_v22  ;;  %1530 = vadd.xlane.f32.xlu0 %v1529_v23  ;;  %v1523_v31 = vsel %vm934_vm4, %v4024_v24, 0.0 }
 0xa7b   : > { %v4026_v26 = vpop.eup %4025 }
 0xa7c   : > { %v1526_v25 = vsel %vm934_vm4, %v4026_v26, 0.0 }
 0xa7d   : > { %1524 = vadd.xlane.f32.xlu0 %v1523_v31  ;;  %1527 = vadd.xlane.f32.xlu1 %v1526_v25 }
 0xa7f   : > { %v4028_v32 = vpop.eup %4027 }
 0xa80   : > { %v1532_v33 = vsel %vm934_vm4, %v4028_v32, 0.0 }
 0xa81   : > { %1533 = vadd.xlane.f32.xlu1 %v1532_v33 }
 0xa93   : > { %1556 = vrot.lane.b32.xlu0 %v4918_v40, %s4367_s11 }
 0xaf6   : > { %v1519_v34 = vpop.xlane.xlu1 %1518 }
 0xafa   : > { %v1513_v38 = vpop.xlane.xlu1 %1512 }
 0xafb   : > { %4029 = vrcp.f32 %v1513_v38 }
 0xb02   : > { %v1516_v39 = vpop.xlane.xlu1 %1515 }
 0xb03   : > { %4031 = vrcp.f32 %v1516_v39 }
 0xb04   : > { %4033 = vrcp.f32 %v1519_v34 }
 0xb05   : > { %v4030_v46 = vpop.eup %4029 }
 0xb06   : > { %v1531_v42 = vpop.xlane.xlu0 %1530  ;;  %v1522_v43 = vpop.xlane.xlu1 %1521  ;;  %v1543_v50 = vmul.f32 %v4030_v46, %v4016_v63 }
 0xb07   : > { %4035 = vrcp.f32 %v1522_v43 }
 0xb0a   : > { %v1525_v44 = vpop.xlane.xlu0 %1524  ;;  %v1528_v45 = vpop.xlane.xlu1 %1527 }
 0xb0b   : > { %4037 = vrcp.f32 %v1525_v44 }
 0xb0c   : > { %4039 = vrcp.f32 %v1528_v45 }
 0xb0d   : > { %v4032_v47 = vpop.eup %4031  ;;  %4041 = vrcp.f32 %v1531_v42 }
 0xb0e   : > { %v1557_v48 = vpop.permute.xlu0 %1556  ;;  %v1534_v49 = vpop.xlane.xlu1 %1533  ;;  %v1544_v40 = vmul.f32 %v4032_v47, %v4018_v13 }
 0xb0f   : > { %v1571_v51 = vsel %vm1041_vm5, %v1557_v48, 0  ;;  %4043 = vrcp.f32 %v1534_v49  ;;  %3864 = vmatprep.subr.msk.bf16.mxu0 %vm1041_vm5, %v1557_v48  ;;  %v4034_v52 = vpop.eup %4033 }
 0xb10   : > { %3680 = vmatpush3.bf16.msra.mxu0 %v1571_v51  ;;  %v1551_v53 = vpack.c.bf16 %v1544_v40, %v1543_v50  ;;  %v1545_v57 = vmul.f32 %v4034_v52, %v4961_v55  ;;  %v3953_v55 = vld [vmem:[%s5530_s0] sm:$0xff]   ;;  %s5539_s0 = sld [smem:[#allocation36_spill]] }
 0xb11   : > { %3701 = vmatprep.subr.bf16.mxu0 %v4365_v0  ;;  %v4036_v54 = vpop.eup %4035  ;;  %v3955_v51 = vld [vmem:[%s5532_s26] sm:$0xff]  }
 0xb12   : > { %3681 = vmatprep.mubr.msk.bf16.mxu0 %vm934_vm4, %v1551_v53  ;;  %v1546_v58 = vmul.f32 %v4036_v54, %v4020_v15  ;;  %v3957_v52 = vld [vmem:[%s5533_s24] sm:$0xff]   ;;  %v3958_v53 = vld [vmem:[%s5533_s24 + $0x8] sm:$0xff]  }
 0xb14   : > { %v1552_v60 = vpack.c.bf16 %v1546_v58, %v1545_v57 }
 0xb15   : > { %v4038_v59 = vpop.eup %4037 }
 0xb16   : > { %v4040_v61 = vpop.eup %4039  ;;  %v1547_v62 = vmul.f32 %v4038_v59, %v4024_v24  ;;  %3682 = vmatmul.mubr.msk.bf16.vlgmr.msra.gmra.mrb[20].mxu0 %vm934_vm4, %v1552_v60  ;;  %v5031_v59 = vsub.s32 1, %v4797_v35  ;;  %s5389_s14 = scalar_lea.hbm %s5539_s0, %s3493_s25 }
 0xb17   : > { %v4042_v63 = vpop.eup %4041  ;;  %v1548_v1 = vmul.f32 %v4040_v61, %v4026_v26  ;;  %3702 = vmatpush3.bf16.msra.mxu0 %v3953_v55 }
 0xb18   : > { %v1549_v8 = vmul.f32 %v4042_v63, %v4022_v16  ;;  %3703 = vmatprep.subr.bf16.mxu0 %v4365_v0  ;;  %v1762_v60 = vrot.slane %v4902_v27, %v5031_v59  ;;  %v1767_v63 = vrot.slane %v4907_v30, %v5031_v59 }
 0xb19   : > { %v4044_v2 = vpop.eup %4043  ;;  %v1553_v5 = vpack.c.bf16 %v1548_v1, %v1547_v62 }
 0xb1a   : > { %v1550_v10 = vmul.f32 %v4044_v2, %v4028_v32 }
 0xb1b   : > { %3685 = vmatprep.mubr.msk.bf16.mxu0 %vm934_vm4, %v1553_v5 }
 0xb1c   : > { %v1554_v9 = vpack.c.bf16 %v1550_v10, %v1549_v8  ;;  %v3959_v8 = vld [vmem:[%s5533_s24 + $0x10] sm:$0xff]   ;;  %v3960_v10 = vld [vmem:[%s5533_s24 + $0x18] sm:$0xff]  }
 0xb1e   : > { %3686 = vmatmul.mubr.msk.bf16.gmra.mrb[24].mxu0 %vm934_vm4, %v1554_v9  ;;  %v3399_v9 = vld [vmem:[%s5534_s17] ss:$0 sm:$0xff] }
 0xb1f   : > { %3705 = vmatprep.mubr.msk.bf16.mxu0 %vm4366_vm0, %v4365_v0 }
 0xbe9   : > { %v3683_v11 = vpop.f32.mrb[20].mxu0 }
 0xbea   : > { %v1607_v12 = vpop.f32.mrb[21].mxu0  ;;  %v1640_v14 = vmul.f32 %v3683_v11, %v4754_v17 }
 0xbeb   : > { %v3684_v13 = vpop.f32.mrb[22].mxu0  ;;  %v1638_v16 = vmul.f32 %v1607_v12, %v4737_v6 }
 0xbec   : > { %v1641_v3 = vmul.f32 %v3684_v13, %v4759_v18  ;;  %v1610_v15 = vpop.f32.mrb[23].mxu0 }
 0xbed   : > { %v1639_v22 = vmul.f32 %v1610_v15, %v4742_v7 }
 0xbee   : > { %v1647_v23 = vpack.c.bf16 %v1641_v3, %v1640_v14 }
 0xbef   : > { %v1646_v24 = vpack.c.bf16 %v1639_v22, %v1638_v16  ;;  %v3403_v16 = vld [vmem:[%s5535_s10] ss:$0 sm:$0xff] }
 0xbf1   : > { %v3687_v26 = vpop.f32.mrb[24].mxu0  ;;  %3690 = vmatpush3.bf16.msra.mxu1 %v1646_v24 }
 0xbf2   : > { %v1623_v31 = vpop.f32.mrb[25].mxu0  ;;  %3691 = vmatprep.subr.bf16.mxu1 %v4365_v0  ;;  %v1644_v32 = vmul.f32 %v3687_v26, %v4781_v28 }
 0xbf3   : > { %v3688_v25 = vpop.f32.mrb[26].mxu0  ;;  %v1642_v18 = vmul.f32 %v1623_v31, %v4766_v20  ;;  %v3954_v20 = vld [vmem:[%s5531_s29 + $0x8] sm:$0xff]  }
 0xbf4   : > { %v1645_v33 = vmul.f32 %v3688_v25, %v4786_v29  ;;  %v1626_v17 = vpop.f32.mrb[27].mxu0  ;;  %3704 = vmatpush3.bf16.msra.mxu0 %v3954_v20  ;;  %v3962_v20 = vld [vmem:[%s5440_s6 + $0x18] sm:$0xff]  }
 0xbf5   : > { %v1643_v34 = vmul.f32 %v1626_v17, %v4771_v21  ;;  %3692 = vmatpush3.bf16.msra.mxu1 %v1647_v23  ;;  %3717 = vmatprep.subr.bf16.mxu0 %v4365_v0 }
 0xbf6   : > { %v1649_v6 = vpack.c.bf16 %v1645_v33, %v1644_v32  ;;  %3693 = vmatprep.subr.bf16.mxu1 %v4365_v0 }
 0xbf7   : > { %v1648_v7 = vpack.c.bf16 %v1643_v34, %v1642_v18 }
 0xbf9   : > { %3694 = vmatpush3.bf16.msra.mxu1 %v1648_v7  ;;  %v3961_v7 = vld [vmem:[%s5440_s6 + $0x10] sm:$0xff]  }
 0xbfa   : > { %3695 = vmatprep.subr.bf16.mxu1 %v4365_v0 }
 0xbfd   : > { %3696 = vmatpush3.bf16.msra.mxu1 %v1649_v6 }
 0xbfe   : > { %3709 = vmatprep.subr.bf16.mxu1 %v4365_v0 }
 0xc00   : > { %3698 = vmatmul.mubr.msk.bf16.vlgmr.msra.gmra.mrb[24].mxu1 %vm1122_vm6, %v4862_v56 }
 0xc01   : > { %3713 = vmatprep.mubr.msk.bf16.mxu1 %vm4366_vm0, %v4365_v0  ;;  %3710 = vmatpush3.bf16.msra.mxu1 %v3955_v51  ;;  %v5088_v51 = vld [vmem:[%s5529_s4 + $0x8] sm:$0xff] }
 0xc02   : > { %3711 = vmatprep.subr.bf16.mxu1 %v4365_v0 }
 0xcd3   : > { %v1684_v21 = vpop.f32.mrb[24].mxu1 }
 0xcd4   : > { %v1690_v28 = vpack.c.bf16 %v1684_v21, %v1684_v21  ;;  %v3699_v29 = vpop.f32.mrb[25].mxu1 }
 0xcd5   : > { %v1687_v38 = vpop.f32.mrb[26].mxu1 }
 0xcd6   : > { %v3700_v39 = vpop.f32.mrb[27].mxu1  ;;  %3706 = vmatmul.mubr.msk.bf16.vlgmr.msra.gmra.mrb[28].mxu0 %vm789_vm1, %v1690_v28  ;;  %v5064_v38 = vsub.s32 2, %v4797_v35 }
 0xcd7   : > { %3725 = vmatprep.mubr.msk.bf16.mxu0 %vm4366_vm0, %v4365_v0  ;;  %3718 = vmatpush3.bf16.msra.mxu0 %v3957_v52 }
 0xcd8   : > { %3719 = vmatprep.subr.bf16.mxu0 %v4365_v0  ;;  %v1937_v39 = vrot.slane %v4902_v27, %v5064_v38 }
 0xcdb   : > { %3720 = vmatpush3.bf16.msra.mxu0 %v3958_v53 }
 0xcdc   : > { %3721 = vmatprep.subr.bf16.mxu0 %v4365_v0 }
 0xcdf   : > { %3722 = vmatpush3.bf16.msra.mxu0 %v3959_v8 }
 0xce0   : > { %3723 = vmatprep.subr.bf16.mxu0 %v4365_v0 }
 0xce3   : > { %3724 = vmatpush3.bf16.msra.mxu0 %v3960_v10  ;;  %v5124_v10 = vld [vmem:[%s5529_s4 + $0x30] sm:$0xff] }
 0xda9   : > { %v1740_v56 = vpop.f32.mrb[28].mxu0 }
 0xdaa   : > { %v1741_v42 = vadd.f32 %v1740_v56, %v4913_v36  ;;  %v3707_v43 = vpop.f32.mrb[29].mxu0  ;;  %v3956_v36 = vld [vmem:[%s5532_s26 + $0x8] sm:$0xff]  }
 0xdab   : > { %v1743_v44 = vpop.f32.mrb[30].mxu0  ;;  %3712 = vmatpush3.bf16.msra.mxu1 %v3956_v36  ;;  %v1942_v43 = vrot.slane %v4907_v30, %v5064_v38  ;;  %v5082_v30 = vld [vmem:[%s5529_s4] sm:$0xff] }
 0xdac   : > { %v3708_v45 = vpop.f32.mrb[31].mxu0  ;;  %v1746_v46 = vsel %vm789_vm1, %v1741_v42, 0.0  ;;  %3729 = vmatprep.subr.bf16.mxu1 %v4365_v0 }
 0xdad   : > { %1747 = vadd.xlane.f32.xlu1 %v1746_v46 }
 0xe3a   : > { %v1748_v47 = vpop.xlane.xlu1 %1747 }
 0xe3b   : > { %v1749_v48 = vmul.f32 0.03125, %v1748_v47 }
 0xe3d   : > { %v1750_v49 = vsub.f32 %v1741_v42, %v1749_v48 }
 0xe3f   : > { %v1751_v50 = vmul.f32 %v1750_v49, %v1750_v49 }
 0xe41   : > { %v1752_v40 = vsel %vm789_vm1, %v1751_v50, 0.0 }
 0xe42   : > { %1753 = vadd.xlane.f32.xlu1 %v1752_v40 }
 0xecf   : > { %v1754_v54 = vpop.xlane.xlu1 %1753 }
 0xed0   : > { %v1755_v57 = vmul.f32 0.03125, %v1754_v54 }
 0xed2   : > { %v1756_v58 = vadd.f32 1e-05, %v1755_v57  ;;  %v5097_v57 = vld [vmem:[%s5529_s4 + $0x10] sm:$0xff] }
 0xed4   : > { %4045 = vrsqrt.f32 %v1756_v58 }
 0xede   : > { %v4046_v61 = vpop.eup %4045 }
 0xedf   : > { %v1758_v62 = vmul.f32 %v4046_v61, %v1750_v49 }
 0xee1   : > { %v1763_v1 = vmul.f32 %v1762_v60, %v1758_v62  ;;  %v5103_v60 = vld [vmem:[%s5529_s4 + $0x18] sm:$0xff]  ;;  %v5110_v62 = vld [vmem:[%s5529_s4 + $0x20] sm:$0xff] }
 0xee3   : > { %v1768_v2 = vadd.f32 %v1767_v63, %v1763_v1  ;;  %v5116_v1 = vld [vmem:[%s5529_s4 + $0x28] sm:$0xff] }
 0xee5   : > { %v1769_v5 = vpack.c.bf16 %v1768_v2, %v1768_v2 }
 0xee7   : > { %3714 = vmatmul.mubr.msk.bf16.vlgmr.msra.gmra.mrb[28].mxu1 %vm789_vm1, %v1769_v5 }
 0xee8   : > { %3733 = vmatprep.mubr.msk.bf16.mxu1 %vm4366_vm0, %v4365_v0  ;;  %3730 = vmatpush3.bf16.msra.mxu1 %v3961_v7 }
 0xee9   : > { %3731 = vmatprep.subr.bf16.mxu1 %v4365_v0 }
 0xeec   : > { %3732 = vmatpush3.bf16.msra.mxu1 %v3962_v20 }
 0xfba   : > { %v1830_v55 = vpop.f32.mrb[28].mxu1 }
 0xfbb   : > { %v1831_v11 = vadd.f32 %v3399_v9, %v1830_v55  ;;  %v3715_v12 = vpop.f32.mrb[29].mxu1  ;;  %v5130_v55 = vld [vmem:[%s5529_s4 + $0x38] sm:$0xff]  ;;  %s4286_s4 = scalar_lea.vmem %s4285_s20, 256 }
 0xfbc   : > { %v1833_v13 = vpop.f32.mrb[30].mxu1 }
 0xfbd   : > { %v1836_v14 = vmax.f32 %v1831_v11, 0.0  ;;  %v3716_v3 = vpop.f32.mrb[31].mxu1 }
 0xfbf   : > { %v1837_v15 = vpack.c.bf16 %v1836_v14, %v1836_v14 }
 0xfc1   : > { %3726 = vmatmul.mubr.msk.bf16.vlgmr.msra.gmra.mrb[32].mxu0 %vm1122_vm6, %v1837_v15 }
0x1094   : > { %v1914_v22 = vpop.f32.mrb[32].mxu0 }
0x1095   : > { %v1915_v23 = vadd.f32 %v3403_v16, %v1914_v22  ;;  %v3727_v24 = vpop.f32.mrb[33].mxu0 }
0x1096   : > { %v1917_v26 = vpop.f32.mrb[34].mxu0 }
0x1097   : > { %v3728_v31 = vpop.f32.mrb[35].mxu0  ;;  %v1920_v25 = vadd.f32 %v1915_v23, %v1768_v2 }
0x1099   : > { %v1921_v32 = vsel %vm789_vm1, %v1920_v25, 0.0 }
0x109a   : > { %1922 = vadd.xlane.f32.xlu1 %v1921_v32 }
0x1127   : > { %v1923_v33 = vpop.xlane.xlu1 %1922 }
0x1128   : > { %v1924_v17 = vmul.f32 0.03125, %v1923_v33 }
0x112a   : > { %v1925_v18 = vsub.f32 %v1920_v25, %v1924_v17 }
0x112c   : > { %v1926_v34 = vmul.f32 %v1925_v18, %v1925_v18 }
0x112e   : > { %v1927_v6 = vsel %vm789_vm1, %v1926_v34, 0.0 }
0x112f   : > { %1928 = vadd.xlane.f32.xlu1 %v1927_v6 }
0x11bc   : > { %v1929_v21 = vpop.xlane.xlu1 %1928 }
0x11bd   : > { %v1930_v28 = vmul.f32 0.03125, %v1929_v21 }
0x11bf   : > { %v1931_v29 = vadd.f32 1e-05, %v1930_v28 }
0x11c1   : > { %4047 = vrsqrt.f32 %v1931_v29 }
0x11cb   : > { %v4048_v56 = vpop.eup %4047 }
0x11cc   : > { %v1933_v42 = vmul.f32 %v4048_v56, %v1925_v18 }
0x11ce   : > { %v1938_v44 = vmul.f32 %v1937_v39, %v1933_v42 }
0x11d0   : > { %v5070_v45 = vadd.f32 %v1942_v43, %v1938_v44 }
0x11d2   : > { %v1948_v46 = vpack.c.bf16 %v5070_v45, %v5070_v45 }
0x11d4   : > { %3734 = vmatmul.mubr.msk.bf16.vlgmr.msra.gmra.mrb[32].mxu1 %vm789_vm1, %v1948_v46 }
0x12a7   : > { %v2003_v47 = vpop.f32.mrb[32].mxu1 }
0x12a8   : > { %v2009_v48 = vmul.f32 0.5, %v2003_v47  ;;  %v5075_v35 = vpack.c.bf16 %v2003_v47, %v2003_v47  ;;  %v3735_v49 = vpop.f32.mrb[33].mxu1 }
0x12a9   : > { %v2006_v50 = vpop.f32.mrb[34].mxu1 }
0x12aa   : > { %2029 = vrot.lane.b32.xlu1 %v5075_v35, %s4367_s11  ;;  %v3736_v27 = vpop.f32.mrb[35].mxu1  ;;  %v2015_v40 = vmul.f32 %v5082_v30, %v2009_v48  ;;  %v2016_v36 = vmul.f32 %v5088_v51, %v2009_v48  ;;  %v2017_v58 = vmul.f32 %v5097_v57, %v2009_v48  ;;  %v2018_v61 = vmul.f32 %v5103_v60, %v2009_v48 }
0x12ab   : > { %v2019_v63 = vmul.f32 %v5110_v62, %v2009_v48  ;;  %v2020_v2 = vmul.f32 %v5116_v1, %v2009_v48  ;;  %v2021_v9 = vmul.f32 %v5124_v10, %v2009_v48  ;;  %v2022_v11 = vmul.f32 %v5130_v55, %v2009_v48 }
0x12ac   : > { %v2023_v52 = vpack.c.bf16 %v2016_v36, %v2015_v40  ;;  %v2024_v5 = vpack.c.bf16 %v2018_v61, %v2017_v58 }
0x12ad   : > { %v2025_v8 = vpack.c.bf16 %v2020_v2, %v2019_v63  ;;  %v2026_v12 = vpack.c.bf16 %v2022_v11, %v2021_v9 }
0x12ae   : > { %3739 = vmatprep.mubr.msk.bf16.mxu1 %vm789_vm1, %v2023_v52 }
0x131c   : > { %v2030_v53 = vpop.permute.xlu1 %2029 }
0x131d   : > { %v2044_v54 = vsel %vm789_vm1, %v2030_v53, 0  ;;  %3865 = vmatprep.subr.msk.bf16.mxu1 %vm789_vm1, %v2030_v53 }
0x131e   : > { %3738 = vmatpush3.bf16.xpose.msra.mxu1 %v2044_v54 }
0x131f   : > { %3757 = vmatprep.subr.bf16.mxu1 %v4365_v0 }
0x1325   : > { %3740 = vmatmul.mubr.msk.bf16.vlgmr.msra.gmra.mrb[36].mxu1 %vm789_vm1, %v2024_v5 }
0x1326   : > { %3743 = vmatprep.mubr.msk.bf16.mxu1 %vm789_vm1, %v2025_v8 }
0x132d   : > { %3744 = vmatmul.mubr.msk.bf16.gmra.mrb[40].mxu1 %vm789_vm1, %v2026_v12 }
0x132e   : > { %3765 = vmatprep.mubr.msk.bf16.mxu1 %vm4366_vm0, %v4365_v0 }
0x13f8   : > { %v3741_v13 = vpop.f32.mrb[36].mxu1 }
0x13f9   : > { %v2080_v14 = vpop.f32.mrb[37].mxu1  ;;  %v2089_v22 = vadd.f32 %v3741_v13, %v4806_v41 }
0x13fa   : > { %v2081_v3 = vadd.f32 %v2080_v14, %v4806_v41  ;;  %v3742_v15 = vpop.f32.mrb[38].mxu1 }
0x13fb   : > { %v2083_v16 = vpop.f32.mrb[39].mxu1  ;;  %v2092_v31 = vadd.f32 %v3742_v15, %v4806_v41  ;;  %v2117_v32 = vsel %vm934_vm4, %v2089_v22, -inf }
0x13fc   : > { %v2084_v23 = vadd.f32 %v2083_v16, %v4806_v41  ;;  %v2111_v24 = vsel %vm934_vm4, %v2081_v3, -inf }
0x13fd   : > { %2112 = vmax.xlane.f32.xlu0 %v2111_v24  ;;  %v2120_v7 = vsel %vm934_vm4, %v2092_v31, -inf }
0x13fe   : > { %v2114_v26 = vsel %vm934_vm4, %v2084_v23, -inf }
0x13ff   : > { %2115 = vmax.xlane.f32.xlu1 %v2114_v26 }
0x1400   : > { %v3745_v25 = vpop.f32.mrb[40].mxu1 }
0x1401   : > { %v2096_v33 = vpop.f32.mrb[41].mxu1  ;;  %2118 = vmax.xlane.f32.xlu0 %v2117_v32  ;;  %v2105_v29 = vadd.f32 %v3745_v25, %v4806_v41 }
0x1402   : > { %v3746_v17 = vpop.f32.mrb[42].mxu1  ;;  %v2097_v6 = vadd.f32 %v2096_v33, %v4806_v41 }
0x1403   : > { %v2108_v18 = vadd.f32 %v3746_v17, %v4806_v41  ;;  %v2099_v34 = vpop.f32.mrb[43].mxu1  ;;  %v2129_v56 = vsel %vm934_vm4, %v2105_v29, -inf }
0x1404   : > { %v2100_v21 = vadd.f32 %v2099_v34, %v4806_v41  ;;  %v2123_v28 = vsel %vm934_vm4, %v2097_v6, -inf }
0x1405   : > { %2121 = vmax.xlane.f32.xlu0 %v2120_v7  ;;  %v2132_v20 = vsel %vm934_vm4, %v2108_v18, -inf }
0x1406   : > { %2133 = vmax.xlane.f32.xlu1 %v2132_v20  ;;  %v2126_v39 = vsel %vm934_vm4, %v2100_v21, -inf }
0x1409   : > { %2124 = vmax.xlane.f32.xlu0 %v2123_v28 }
0x140d   : > { %2127 = vmax.xlane.f32.xlu0 %v2126_v39 }
0x1411   : > { %2130 = vmax.xlane.f32.xlu0 %v2129_v56 }
0x148a   : > { %v2113_v42 = vpop.xlane.xlu0 %2112 }
0x148b   : > { %v2135_v44 = vsub.f32 %v2081_v3, %v2113_v42 }
0x148c   : > { %v2116_v43 = vpop.xlane.xlu1 %2115 }
0x148d   : > { %v2136_v46 = vsub.f32 %v2084_v23, %v2116_v43  ;;  %v2143_v50 = vmul.f32 1.442695, %v2135_v44 }
0x148e   : > { %v2119_v47 = vpop.xlane.xlu0 %2118 }
0x148f   : > { %v2145_v48 = vmul.f32 1.442695, %v2136_v46  ;;  %v2137_v49 = vsub.f32 %v2089_v22, %v2119_v47 }
0x1491   : > { %4049 = vpow2.f32 %v2145_v48  ;;  %v2147_v27 = vmul.f32 1.442695, %v2137_v49 }
0x1492   : > { %v2122_v40 = vpop.xlane.xlu0 %2121 }
0x1493   : > { %4051 = vpow2.f32 %v2147_v27  ;;  %v2138_v36 = vsub.f32 %v2092_v31, %v2122_v40  ;;  %v2134_v52 = vpop.xlane.xlu1 %2133 }
0x1494   : > { %4053 = vpow2.f32 %v2143_v50  ;;  %v2142_v54 = vsub.f32 %v2108_v18, %v2134_v52 }
0x1495   : > { %v2149_v41 = vmul.f32 1.442695, %v2138_v36 }
0x1496   : > { %v2125_v53 = vpop.xlane.xlu0 %2124  ;;  %v2157_v8 = vmul.f32 1.442695, %v2142_v54 }
0x1497   : > { %4055 = vpow2.f32 %v2149_v41  ;;  %v2139_v9 = vsub.f32 %v2097_v6, %v2125_v53 }
0x1499   : > { %v2151_v16 = vmul.f32 1.442695, %v2139_v9  ;;  %v3963_v9 = vld [vmem:[%s5441_s7 + $0x10] sm:$0xff]  }
0x149a   : > { %v2128_v58 = vpop.xlane.xlu0 %2127 }
0x149b   : > { %v4050_v61 = vpop.eup %4049  ;;  %v2140_v63 = vsub.f32 %v2100_v21, %v2128_v58 }
0x149c   : > { %v2162_v2 = vsel %vm934_vm4, %v4050_v61, 0.0 }
0x149d   : > { %v4052_v5 = vpop.eup %4051  ;;  %v2153_v11 = vmul.f32 1.442695, %v2140_v63  ;;  %2163 = vadd.xlane.f32.xlu1 %v2162_v2 }
0x149e   : > { %v2131_v12 = vpop.xlane.xlu0 %2130  ;;  %v2165_v13 = vsel %vm934_vm4, %v4052_v5, 0.0  ;;  %v4054_v14 = vpop.eup %4053 }
0x149f   : > { %4057 = vpow2.f32 %v2153_v11  ;;  %v2141_v3 = vsub.f32 %v2105_v29, %v2131_v12  ;;  %2166 = vadd.xlane.f32.xlu0 %v2165_v13  ;;  %v2159_v23 = vsel %vm934_vm4, %v4054_v14, 0.0 }
0x14a0   : > { %4059 = vpow2.f32 %v2157_v8 }
0x14a1   : > { %v4056_v15 = vpop.eup %4055  ;;  %v2155_v22 = vmul.f32 1.442695, %v2141_v3 }
0x14a2   : > { %v2168_v24 = vsel %vm934_vm4, %v4056_v15, 0.0 }
0x14a3   : > { %4061 = vpow2.f32 %v2155_v22  ;;  %2160 = vadd.xlane.f32.xlu0 %v2159_v23  ;;  %2169 = vadd.xlane.f32.xlu1 %v2168_v24 }
0x14a4   : > { %4063 = vpow2.f32 %v2151_v16 }
0x14a9   : > { %v4058_v26 = vpop.eup %4057 }
0x14aa   : > { %v2174_v31 = vsel %vm934_vm4, %v4058_v26, 0.0  ;;  %v4060_v25 = vpop.eup %4059 }
0x14ab   : > { %2175 = vadd.xlane.f32.xlu1 %v2174_v31  ;;  %v2180_v33 = vsel %vm934_vm4, %v4060_v25, 0.0 }
0x14ad   : > { %v4062_v32 = vpop.eup %4061 }
0x14ae   : > { %v2177_v17 = vsel %vm934_vm4, %v4062_v32, 0.0  ;;  %v4064_v18 = vpop.eup %4063 }
0x14af   : > { %2181 = vadd.xlane.f32.xlu1 %v2180_v33  ;;  %2178 = vadd.xlane.f32.xlu0 %v2177_v17  ;;  %v2171_v34 = vsel %vm934_vm4, %v4064_v18, 0.0 }
0x14b3   : > { %2172 = vadd.xlane.f32.xlu0 %v2171_v34 }
0x14c9   : > { %2203 = vrot.lane.b32.xlu0 %v5075_v35, %s4368_s22  ;;  %s3212_s22 = sshll.u32 %s731_s27, 4  ;;  %s5391_s22 = int_to_ptr.vmem [resolvable:$true] %s3212_s22 }
0x14ca   : > { %p4287_p9 = scmp.lt.s32.totalorder %s5391_s22, %s4285_s20 }
0x152a   : > { %v2164_v7 = vpop.xlane.xlu1 %2163 }
0x152b   : > { %4065 = vrcp.f32 %v2164_v7 }
0x152c   : > { %v2167_v6 = vpop.xlane.xlu0 %2166 }
0x1530   : > { %v2161_v20 = vpop.xlane.xlu0 %2160  ;;  %v2170_v21 = vpop.xlane.xlu1 %2169 }
0x1531   : > { %4067 = vrcp.f32 %v2161_v20  ;;  %v5187_v20 = vld [vmem:[#allocation10] sm:$0xf] }
0x1532   : > { %4069 = vrcp.f32 %v2170_v21  ;;  %v3964_v21 = vld [vmem:[%s5441_s7 + $0x18] sm:$0xff]  }
0x1533   : > { %4071 = vrcp.f32 %v2167_v6 }
0x1535   : > { %v4066_v29 = vpop.eup %4065 }
0x1536   : > { %v2192_v44 = vmul.f32 %v4066_v29, %v4050_v61 }
0x1538   : > { %v2176_v28 = vpop.xlane.xlu1 %2175 }
0x153b   : > { %v4068_v39 = vpop.eup %4067 }
0x153c   : > { %v2182_v56 = vpop.xlane.xlu1 %2181  ;;  %v2179_v42 = vpop.xlane.xlu0 %2178  ;;  %v2191_v43 = vmul.f32 %v4068_v39, %v4054_v14 }
0x153d   : > { %4073 = vrcp.f32 %v2182_v56  ;;  %v4070_v35 = vpop.eup %4069 }
0x153e   : > { %4075 = vrcp.f32 %v2179_v42  ;;  %v2199_v46 = vpack.c.bf16 %v2192_v44, %v2191_v43  ;;  %v4072_v48 = vpop.eup %4071  ;;  %v2194_v49 = vmul.f32 %v4070_v35, %v4056_v15 }
0x153f   : > { %4077 = vrcp.f32 %v2176_v28  ;;  %v2193_v27 = vmul.f32 %v4072_v48, %v4052_v5 }
0x1540   : > { %v2173_v47 = vpop.xlane.xlu0 %2172  ;;  %3749 = vmatprep.mubr.msk.bf16.mxu0 %vm934_vm4, %v2199_v46 }
0x1541   : > { %4079 = vrcp.f32 %v2173_v47  ;;  %v2200_v41 = vpack.c.bf16 %v2194_v49, %v2193_v27 }
0x1544   : > { %v2204_v50 = vpop.permute.xlu0 %2203 }
0x1545   : > { %v2218_v40 = vsel %vm1041_vm5, %v2204_v50, 0  ;;  %3866 = vmatprep.subr.msk.bf16.mxu0 %vm1041_vm5, %v2204_v50 }
0x1546   : > { %3748 = vmatpush3.bf16.msra.mxu0 %v2218_v40 }
0x1547   : > { %v4074_v36 = vpop.eup %4073  ;;  %3769 = vmatprep.subr.bf16.mxu0 %v4365_v0 }
0x1548   : > { %v4076_v52 = vpop.eup %4075  ;;  %v2198_v61 = vmul.f32 %v4074_v36, %v4060_v25 }
0x1549   : > { %v4078_v53 = vpop.eup %4077  ;;  %3750 = vmatmul.mubr.msk.bf16.vlgmr.msra.gmra.mrb[36].mxu0 %vm934_vm4, %v2200_v41  ;;  %v2197_v58 = vmul.f32 %v4076_v52, %v4062_v32  ;;  %v3965_v41 = vld [vmem:[%s5443_s9 + $0x10] sm:$0xff]  }
0x154a   : > { %v2196_v2 = vmul.f32 %v4078_v53, %v4058_v26  ;;  %3770 = vmatpush3.bf16.msra.mxu0 %v3963_v9  ;;  %v3966_v52 = vld [vmem:[%s5442_s8 + $0x10] sm:$0xff]   ;;  %v3968_v53 = vld [vmem:[%s5442_s8 + $0x18] sm:$0xff]  }
0x154b   : > { %v4080_v54 = vpop.eup %4079  ;;  %v2202_v5 = vpack.c.bf16 %v2198_v61, %v2197_v58  ;;  %3771 = vmatprep.subr.bf16.mxu0 %v4365_v0 }
0x154c   : > { %v2195_v63 = vmul.f32 %v4080_v54, %v4064_v18 }
0x154e   : > { %v2201_v8 = vpack.c.bf16 %v2196_v2, %v2195_v63  ;;  %3772 = vmatpush3.bf16.msra.mxu0 %v3964_v21  ;;  %v5222_v63 = vld [vmem:[%s5449_s15 + $0x4] sm:$0x7] }
0x154f   : > { %3785 = vmatprep.subr.bf16.mxu0 %v4365_v0  ;;  %v5227_v2 = vld [vmem:[%s5450_s16 + $0x4] sm:$0x7] }
0x1550   : > { %3753 = vmatprep.mubr.msk.bf16.mxu0 %vm934_vm4, %v2201_v8  ;;  %v2409_v8 = vrot.slane %v5222_v63, %v4800_v37  ;;  %v2414_v9 = vrot.slane %v5227_v2, %v4800_v37 }
0x1551   : > { %3754 = vmatmul.mubr.msk.bf16.gmra.mrb[40].mxu0 %vm934_vm4, %v2202_v5 }
0x1552   : > { %3773 = vmatprep.mubr.msk.bf16.mxu0 %vm4366_vm0, %v4365_v0 }
0x161c   : > { %v3751_v11 = vpop.f32.mrb[36].mxu0 }
0x161d   : > { %v2254_v12 = vpop.f32.mrb[37].mxu0  ;;  %v2287_v14 = vmul.f32 %v5097_v57, %v3751_v11 }
0x161e   : > { %v3752_v13 = vpop.f32.mrb[38].mxu0  ;;  %v2285_v16 = vmul.f32 %v5082_v30, %v2254_v12 }
0x161f   : > { %v2288_v3 = vmul.f32 %v5103_v60, %v3752_v13  ;;  %v2257_v15 = vpop.f32.mrb[39].mxu0 }
0x1620   : > { %v2286_v22 = vmul.f32 %v5088_v51, %v2257_v15 }
0x1621   : > { %v2294_v23 = vpack.c.bf16 %v2288_v3, %v2287_v14 }
0x1622   : > { %v2293_v24 = vpack.c.bf16 %v2286_v22, %v2285_v16 }
0x1624   : > { %v3755_v26 = vpop.f32.mrb[40].mxu0  ;;  %3758 = vmatpush3.bf16.msra.mxu1 %v2293_v24 }
0x1625   : > { %v2270_v31 = vpop.f32.mrb[41].mxu0  ;;  %3759 = vmatprep.subr.bf16.mxu1 %v4365_v0  ;;  %v2291_v32 = vmul.f32 %v5124_v10, %v3755_v26 }
0x1626   : > { %v3756_v25 = vpop.f32.mrb[42].mxu0  ;;  %v2289_v18 = vmul.f32 %v5110_v62, %v2270_v31 }
0x1627   : > { %v2292_v33 = vmul.f32 %v5130_v55, %v3756_v25  ;;  %v2273_v17 = vpop.f32.mrb[43].mxu0 }
0x1628   : > { %v2290_v34 = vmul.f32 %v5116_v1, %v2273_v17  ;;  %3760 = vmatpush3.bf16.msra.mxu1 %v2294_v23 }
0x1629   : > { %v2296_v6 = vpack.c.bf16 %v2292_v33, %v2291_v32  ;;  %3761 = vmatprep.subr.bf16.mxu1 %v4365_v0 }
0x162a   : > { %v2295_v7 = vpack.c.bf16 %v2290_v34, %v2289_v18 }
0x162c   : > { %3762 = vmatpush3.bf16.msra.mxu1 %v2295_v7 }
0x162d   : > { %3763 = vmatprep.subr.bf16.mxu1 %v4365_v0 }
0x1630   : > { %3764 = vmatpush3.bf16.msra.mxu1 %v2296_v6 }
0x1631   : > { %3777 = vmatprep.subr.bf16.mxu1 %v4365_v0 }
0x1633   : > { %3766 = vmatmul.mubr.msk.bf16.vlgmr.msra.gmra.mrb[44].mxu1 %vm1122_vm6, %v5187_v20 }
0x1634   : > { %3781 = vmatprep.mubr.msk.bf16.mxu1 %vm4366_vm0, %v4365_v0  ;;  %3778 = vmatpush3.bf16.msra.mxu1 %v3966_v52 }
0x1635   : > { %3779 = vmatprep.subr.bf16.mxu1 %v4365_v0 }
0x1638   : > { %3780 = vmatpush3.bf16.msra.mxu1 %v3968_v53 }
0x1706   : > { %v2331_v28 = vpop.f32.mrb[44].mxu1 }
0x1707   : > { %v2337_v29 = vpack.c.bf16 %v2331_v28, %v2331_v28  ;;  %v3767_v39 = vpop.f32.mrb[45].mxu1 }
0x1708   : > { %v2334_v56 = vpop.f32.mrb[46].mxu1 }
0x1709   : > { %v3768_v42 = vpop.f32.mrb[47].mxu1  ;;  %3774 = vmatmul.mubr.msk.bf16.vlgmr.msra.gmra.mrb[44].mxu0 %vm789_vm1, %v2337_v29 }
0x170a   : > { %3789 = vmatprep.mubr.msk.bf16.mxu0 %vm4366_vm0, %v4365_v0  ;;  %3786 = vmatpush3.bf16.msra.mxu0 %v3965_v41 }
0x170b   : > { %3787 = vmatprep.subr.bf16.mxu0 %v4365_v0 }
0x17dc   : > { %v2387_v43 = vpop.f32.mrb[44].mxu0 }
0x17dd   : > { %v2388_v44 = vadd.f32 %v2387_v43, %v5070_v45  ;;  %v3775_v46 = vpop.f32.mrb[45].mxu0  ;;  %v3967_v45 = vld [vmem:[%s5443_s9 + $0x18] sm:$0xff]  }
0x17de   : > { %v2390_v35 = vpop.f32.mrb[46].mxu0  ;;  %3788 = vmatpush3.bf16.msra.mxu0 %v3967_v45 }
0x17df   : > { %v3776_v47 = vpop.f32.mrb[47].mxu0  ;;  %v2393_v48 = vsel %vm789_vm1, %v2388_v44, 0.0 }
0x17e0   : > { %2394 = vadd.xlane.f32.xlu1 %v2393_v48 }
0x17e1   : > { %3790 = vmatmul.mubr.msk.bf16.vlgmr.msra.gmra.mrb[48].mxu0 %vm789_vm1, %v4891_v19 }
0x186d   : > { %v2395_v49 = vpop.xlane.xlu1 %2394 }
0x186e   : > { %v2396_v50 = vmul.f32 0.03125, %v2395_v49 }
0x1870   : > { %v2397_v27 = vsub.f32 %v2388_v44, %v2396_v50 }
0x1872   : > { %v2398_v40 = vmul.f32 %v2397_v27, %v2397_v27 }
0x1874   : > { %v2399_v36 = vsel %vm789_vm1, %v2398_v40, 0.0 }
0x1875   : > { %2400 = vadd.xlane.f32.xlu1 %v2399_v36 }
0x18b4   : > { %v2529_v14 = vpop.f32.mrb[48].mxu0 }
0x18b5   : > { %v5238_v3 = vpack.c.bf16 %v2529_v14, %v2529_v14  ;;  %v3791_v15 = vpop.f32.mrb[49].mxu0 }
0x18b6   : > { %v2532_v16 = vpop.f32.mrb[50].mxu0 }
0x18b7   : > { %v3792_v22 = vpop.f32.mrb[51].mxu0  ;;  %3867 = vmatprep.subr.msk.bf16.mxu1 %vm789_vm1, %v5238_v3  ;;  %v2566_v37 = vsel %vm789_vm1, %v5238_v3, 0 }
0x1902   : > { %v2401_v54 = vpop.xlane.xlu1 %2400 }
0x1903   : > { %v2402_v58 = vmul.f32 0.03125, %v2401_v54 }
0x1905   : > { %v2403_v61 = vadd.f32 1e-05, %v2402_v58 }
0x1907   : > { %4081 = vrsqrt.f32 %v2403_v61 }
0x1911   : > { %v4082_v5 = vpop.eup %4081 }
0x1912   : > { %v2405_v19 = vmul.f32 %v4082_v5, %v2397_v27 }
0x1914   : > { %v2410_v11 = vmul.f32 %v2409_v8, %v2405_v19 }
0x1916   : > { %v5233_v12 = vadd.f32 %v2414_v9, %v2410_v11 }
0x1918   : > { %v2416_v13 = vpack.c.bf16 %v5233_v12, %v5233_v12 }
0x191a   : > { %3782 = vmatmul.mubr.msk.bf16.vlgmr.msra.gmra.mrb[48].mxu1 %vm789_vm1, %v2416_v13 }
0x191b   : > { %3794 = vmatpush3.bf16.xpose.msra.mxu1 %v2566_v37 }
0x191c   : > { %3813 = vmatprep.subr.bf16.mxu1 %v4365_v0 }
0x19ed   : > { %v2471_v23 = vpop.f32.mrb[48].mxu1 }
0x19ee   : > { %v2477_v24 = vmul.f32 0.5, %v2471_v23  ;;  %v3783_v26 = vpop.f32.mrb[49].mxu1 }
0x19ef   : > { %v2474_v31 = vpop.f32.mrb[50].mxu1 }
0x19f0   : > { %v3784_v25 = vpop.f32.mrb[51].mxu1  ;;  %v2540_v32 = vmul.f32 %v5082_v30, %v2477_v24  ;;  %v2541_v33 = vmul.f32 %v5088_v51, %v2477_v24  ;;  %v2542_v17 = vmul.f32 %v5097_v57, %v2477_v24  ;;  %v2543_v18 = vmul.f32 %v5103_v60, %v2477_v24 }
0x19f1   : > { %v2544_v34 = vmul.f32 %v5110_v62, %v2477_v24  ;;  %v2545_v6 = vmul.f32 %v5116_v1, %v2477_v24  ;;  %v2546_v29 = vmul.f32 %v5124_v10, %v2477_v24  ;;  %v2547_v39 = vmul.f32 %v5130_v55, %v2477_v24 }
0x19f2   : > { %v2548_v7 = vpack.c.bf16 %v2541_v33, %v2540_v32  ;;  %v2549_v21 = vpack.c.bf16 %v2543_v18, %v2542_v17 }
0x19f3   : > { %v2550_v28 = vpack.c.bf16 %v2545_v6, %v2544_v34  ;;  %v2551_v56 = vpack.c.bf16 %v2547_v39, %v2546_v29 }
0x19f4   : > { %3795 = vmatprep.mubr.msk.bf16.mxu1 %vm789_vm1, %v2548_v7 }
0x19f5   : > { %3796 = vmatmul.mubr.msk.bf16.vlgmr.msra.gmra.mrb[52].mxu1 %vm789_vm1, %v2549_v21 }
0x19f6   : > { %3799 = vmatprep.mubr.msk.bf16.mxu1 %vm789_vm1, %v2550_v28 }
0x19fd   : > { %3800 = vmatmul.mubr.msk.bf16.gmra.mrb[56].mxu1 %vm789_vm1, %v2551_v56 }
0x19fe   : > { %3821 = vmatprep.mubr.msk.bf16.mxu1 %vm4366_vm0, %v4365_v0 }
0x1ac8   : > { %v3797_v42 = vpop.f32.mrb[52].mxu1 }
0x1ac9   : > { %v2611_v43 = vadd.f32 %v3797_v42, %v4943_v4  ;;  %v2602_v44 = vpop.f32.mrb[53].mxu1 }
0x1aca   : > { %v3798_v46 = vpop.f32.mrb[54].mxu1  ;;  %v2603_v35 = vadd.f32 %v2602_v44, %v4943_v4 }
0x1acb   : > { %v2605_v47 = vpop.f32.mrb[55].mxu1  ;;  %v2639_v48 = vsel %vm934_vm4, %v2611_v43, -inf  ;;  %v2614_v49 = vadd.f32 %v3798_v46, %v4943_v4 }
0x1acc   : > { %2640 = vmax.xlane.f32.xlu1 %v2639_v48  ;;  %v2633_v50 = vsel %vm934_vm4, %v2603_v35, -inf  ;;  %v2606_v45 = vadd.f32 %v2605_v47, %v4943_v4 }
0x1acd   : > { %v2642_v53 = vsel %vm934_vm4, %v2614_v49, -inf }
0x1ace   : > { %v2636_v61 = vsel %vm934_vm4, %v2606_v45, -inf }
0x1ad0   : > { %v3801_v27 = vpop.f32.mrb[56].mxu1  ;;  %2634 = vmax.xlane.f32.xlu1 %v2633_v50 }
0x1ad1   : > { %v2618_v40 = vpop.f32.mrb[57].mxu1  ;;  %v2627_v58 = vadd.f32 %v3801_v27, %v4943_v4 }
0x1ad2   : > { %v2619_v36 = vadd.f32 %v2618_v40, %v4943_v4  ;;  %v3802_v41 = vpop.f32.mrb[58].mxu1 }
0x1ad3   : > { %v2621_v52 = vpop.f32.mrb[59].mxu1  ;;  %v2651_v5 = vsel %vm934_vm4, %v2627_v58, -inf  ;;  %v2630_v19 = vadd.f32 %v3802_v41, %v4943_v4 }
0x1ad4   : > { %2643 = vmax.xlane.f32.xlu1 %v2642_v53  ;;  %v2645_v54 = vsel %vm934_vm4, %v2619_v36, -inf  ;;  %v2622_v8 = vadd.f32 %v2621_v52, %v4943_v4 }
0x1ad5   : > { %2646 = vmax.xlane.f32.xlu0 %v2645_v54  ;;  %v2654_v11 = vsel %vm934_vm4, %v2630_v19, -inf }
0x1ad6   : > { %v2648_v9 = vsel %vm934_vm4, %v2622_v8, -inf }
0x1ad8   : > { %2637 = vmax.xlane.f32.xlu1 %v2636_v61 }
0x1adc   : > { %2652 = vmax.xlane.f32.xlu1 %v2651_v5 }
0x1ae0   : > { %2649 = vmax.xlane.f32.xlu1 %v2648_v9 }
0x1ae4   : > { %2655 = vmax.xlane.f32.xlu1 %v2654_v11 }
0x1b59   : > { %v2641_v13 = vpop.xlane.xlu1 %2640 }
0x1b5a   : > { %v2659_v14 = vsub.f32 %v2611_v43, %v2641_v13 }
0x1b5c   : > { %v2669_v15 = vmul.f32 1.442695, %v2659_v14 }
0x1b5d   : > { %v2635_v16 = vpop.xlane.xlu1 %2634 }
0x1b5e   : > { %4083 = vpow2.f32 %v2669_v15  ;;  %v2657_v22 = vsub.f32 %v2603_v35, %v2635_v16 }
0x1b60   : > { %v2665_v37 = vmul.f32 1.442695, %v2657_v22 }
0x1b61   : > { %v2644_v23 = vpop.xlane.xlu1 %2643 }
0x1b62   : > { %4085 = vpow2.f32 %v2665_v37  ;;  %v2660_v24 = vsub.f32 %v2614_v49, %v2644_v23  ;;  %v2647_v31 = vpop.xlane.xlu0 %2646 }
0x1b63   : > { %v2661_v33 = vsub.f32 %v2619_v36, %v2647_v31 }
0x1b64   : > { %v2671_v26 = vmul.f32 1.442695, %v2660_v24 }
0x1b65   : > { %v2638_v25 = vpop.xlane.xlu1 %2637  ;;  %v2673_v21 = vmul.f32 1.442695, %v2661_v33 }
0x1b66   : > { %4087 = vpow2.f32 %v2671_v26  ;;  %v2658_v4 = vsub.f32 %v2606_v45, %v2638_v25 }
0x1b68   : > { %v5275_v32 = vpop.eup %4083  ;;  %v2667_v17 = vmul.f32 1.442695, %v2658_v4 }
0x1b69   : > { %v2653_v18 = vpop.xlane.xlu1 %2652  ;;  %v2687_v34 = vsel %vm934_vm4, %v5275_v32, 0.0 }
0x1b6a   : > { %4089 = vpow2.f32 %v2667_v17  ;;  %v2663_v6 = vsub.f32 %v2627_v58, %v2653_v18  ;;  %2688 = vadd.xlane.f32.xlu1 %v2687_v34 }
0x1b6c   : > { %v4086_v7 = vpop.eup %4085  ;;  %v2677_v28 = vmul.f32 1.442695, %v2663_v6 }
0x1b6d   : > { %v2650_v29 = vpop.xlane.xlu1 %2649  ;;  %v2681_v39 = vsel %vm934_vm4, %v4086_v7, 0.0 }
0x1b6e   : > { %4091 = vpow2.f32 %v2677_v28  ;;  %v2662_v56 = vsub.f32 %v2622_v8, %v2650_v29  ;;  %2682 = vadd.xlane.f32.xlu1 %v2681_v39  ;;  %v3969_v29 = vld [vmem:[%s5531_s29 + $0x10] sm:$0xff]  }
0x1b6f   : > { %4093 = vpow2.f32 %v2673_v21 }
0x1b70   : > { %v4088_v42 = vpop.eup %4087  ;;  %v2675_v43 = vmul.f32 1.442695, %v2662_v56 }
0x1b71   : > { %v2656_v44 = vpop.xlane.xlu1 %2655  ;;  %v2690_v46 = vsel %vm934_vm4, %v4088_v42, 0.0 }
0x1b72   : > { %4095 = vpow2.f32 %v2675_v43  ;;  %v2664_v35 = vsub.f32 %v2630_v19, %v2656_v44  ;;  %2691 = vadd.xlane.f32.xlu1 %v2690_v46 }
0x1b74   : > { %v4090_v47 = vpop.eup %4089  ;;  %v2679_v48 = vmul.f32 1.442695, %v2664_v35 }
0x1b75   : > { %v2684_v49 = vsel %vm934_vm4, %v4090_v47, 0.0 }
0x1b76   : > { %4097 = vpow2.f32 %v2679_v48  ;;  %2685 = vadd.xlane.f32.xlu1 %v2684_v49 }
0x1b78   : > { %v4092_v50 = vpop.eup %4091 }
0x1b79   : > { %v2699_v27 = vsel %vm934_vm4, %v4092_v50, 0.0  ;;  %v4094_v40 = vpop.eup %4093 }
0x1b7a   : > { %2700 = vadd.xlane.f32.xlu1 %v2699_v27  ;;  %v2693_v41 = vsel %vm934_vm4, %v4094_v40, 0.0 }
0x1b7c   : > { %v4096_v36 = vpop.eup %4095 }
0x1b7d   : > { %v2696_v45 = vsel %vm934_vm4, %v4096_v36, 0.0 }
0x1b7e   : > { %2694 = vadd.xlane.f32.xlu1 %v2693_v41  ;;  %2697 = vadd.xlane.f32.xlu0 %v2696_v45 }
0x1b80   : > { %v4098_v52 = vpop.eup %4097 }
0x1b81   : > { %v2702_v53 = vsel %vm934_vm4, %v4098_v52, 0.0 }
0x1b82   : > { %2703 = vadd.xlane.f32.xlu0 %v2702_v53 }
0x1b8f   : > { %2726 = vrot.lane.b32.xlu1 %v5238_v3, %s4367_s11  ;;  %s5540_s11 = smov %s5539_s0 }
0x1bf7   : > { %v2689_v54 = vpop.xlane.xlu1 %2688 }
0x1bfb   : > { %v2683_v58 = vpop.xlane.xlu1 %2682 }
0x1bff   : > { %v2692_v61 = vpop.xlane.xlu1 %2691 }
0x1c00   : > { %4099 = vrcp.f32 %v2692_v61 }
0x1c01   : > { %4101 = vrcp.f32 %v2683_v58 }
0x1c02   : > { %4103 = vrcp.f32 %v2689_v54 }
0x1c03   : > { %v2686_v8 = vpop.xlane.xlu1 %2685 }
0x1c04   : > { %4105 = vrcp.f32 %v2686_v8 }
0x1c07   : > { %v2701_v5 = vpop.xlane.xlu1 %2700 }
0x1c0a   : > { %v4100_v19 = vpop.eup %4099 }
0x1c0b   : > { %v2698_v9 = vpop.xlane.xlu0 %2697  ;;  %v2695_v11 = vpop.xlane.xlu1 %2694  ;;  %v2716_v16 = vmul.f32 %v4100_v19, %v4088_v42 }
0x1c0c   : > { %v4102_v13 = vpop.eup %4101  ;;  %4107 = vrcp.f32 %v2698_v9 }
0x1c0d   : > { %v4104_v14 = vpop.eup %4103  ;;  %4109 = vrcp.f32 %v2695_v11  ;;  %v2713_v37 = vmul.f32 %v4102_v13, %v4086_v7 }
0x1c0e   : > { %v4106_v15 = vpop.eup %4105  ;;  %4111 = vrcp.f32 %v2701_v5  ;;  %v2715_v24 = vmul.f32 %v4104_v14, %v5275_v32 }
0x1c0f   : > { %v2704_v3 = vpop.xlane.xlu0 %2703  ;;  %v2727_v22 = vpop.permute.xlu1 %2726  ;;  %v2714_v23 = vmul.f32 %v4106_v15, %v4090_v47  ;;  %v3971_v15 = vld [vmem:[%s5532_s26 + $0x10] sm:$0xff]  }
0x1c10   : > { %4113 = vrcp.f32 %v2704_v3  ;;  %v2741_v26 = vsel %vm1041_vm5, %v2727_v22, 0  ;;  %3868 = vmatprep.subr.msk.bf16.mxu0 %vm1041_vm5, %v2727_v22  ;;  %v2722_v25 = vpack.c.bf16 %v2716_v16, %v2715_v24  ;;  %v3973_v16 = vld [vmem:[%s5533_s24 + $0x20] sm:$0xff]   ;;  %v3974_v3 = vld [vmem:[%s5533_s24 + $0x28] sm:$0xff]   ;;  %v2932_v24 = vrot.slane %v5222_v63, %v5031_v59 }
0x1c11   : > { %3804 = vmatpush3.bf16.msra.mxu0 %v2741_v26  ;;  %v2721_v31 = vpack.c.bf16 %v2714_v23, %v2713_v37 }
0x1c12   : > { %3825 = vmatprep.subr.bf16.mxu0 %v4365_v0 }
0x1c13   : > { %3805 = vmatprep.mubr.msk.bf16.mxu0 %vm934_vm4, %v2721_v31 }
0x1c14   : > { %3806 = vmatmul.mubr.msk.bf16.vlgmr.msra.gmra.mrb[52].mxu0 %vm934_vm4, %v2722_v25  ;;  %v2937_v25 = vrot.slane %v5227_v2, %v5031_v59  ;;  %v3469_v59 = vld [vmem:[%s5534_s17 + $0x1] ss:$0 sm:$0xff] }
0x1c15   : > { %3826 = vmatpush3.bf16.msra.mxu0 %v3969_v29 }
0x1c16   : > { %v4108_v4 = vpop.eup %4107  ;;  %3827 = vmatprep.subr.bf16.mxu0 %v4365_v0 }
0x1c17   : > { %v4110_v33 = vpop.eup %4109  ;;  %v2718_v17 = vmul.f32 %v4108_v4, %v4096_v36 }
0x1c18   : > { %v4112_v18 = vpop.eup %4111  ;;  %v2717_v34 = vmul.f32 %v4110_v33, %v4094_v40 }
0x1c19   : > { %v2719_v7 = vmul.f32 %v4112_v18, %v4092_v50  ;;  %v3975_v18 = vld [vmem:[%s5533_s24 + $0x30] sm:$0xff]  }
0x1c1a   : > { %v4114_v32 = vpop.eup %4113  ;;  %v2723_v6 = vpack.c.bf16 %v2718_v17, %v2717_v34  ;;  %v3976_v34 = vld [vmem:[%s5533_s24 + $0x38] sm:$0xff]  }
0x1c1b   : > { %v2720_v21 = vmul.f32 %v4114_v32, %v4098_v52 }
0x1c1c   : > { %3809 = vmatprep.mubr.msk.bf16.mxu0 %vm934_vm4, %v2723_v6 }
0x1c1d   : > { %v2724_v28 = vpack.c.bf16 %v2720_v21, %v2719_v7 }
0x1c1f   : > { %3810 = vmatmul.mubr.msk.bf16.gmra.mrb[56].mxu0 %vm934_vm4, %v2724_v28 }
0x1c20   : > { %3829 = vmatprep.mubr.msk.bf16.mxu0 %vm4366_vm0, %v4365_v0 }
0x1ce7   : > { %v3807_v39 = vpop.f32.mrb[52].mxu0 }
0x1ce8   : > { %v2777_v56 = vpop.f32.mrb[53].mxu0  ;;  %v2810_v43 = vmul.f32 %v5097_v57, %v3807_v39 }
0x1ce9   : > { %v3808_v42 = vpop.f32.mrb[54].mxu0  ;;  %v2808_v35 = vmul.f32 %v5082_v30, %v2777_v56  ;;  %v3482_v56 = vld [vmem:[%s5535_s10 + $0x1] ss:$0 sm:$0xff] }
0x1cea   : > { %v2811_v44 = vmul.f32 %v5103_v60, %v3808_v42  ;;  %v2780_v46 = vpop.f32.mrb[55].mxu0 }
0x1ceb   : > { %v2809_v47 = vmul.f32 %v5088_v51, %v2780_v46 }
0x1cec   : > { %v2817_v48 = vpack.c.bf16 %v2811_v44, %v2810_v43 }
0x1ced   : > { %v2816_v49 = vpack.c.bf16 %v2809_v47, %v2808_v35 }
0x1cef   : > { %3814 = vmatpush3.bf16.msra.mxu1 %v2816_v49 }
0x1cf0   : > { %3815 = vmatprep.subr.bf16.mxu1 %v4365_v0 }
0x1cf2   : > { %v3811_v50 = vpop.f32.mrb[56].mxu0 }
0x1cf3   : > { %v2793_v27 = vpop.f32.mrb[57].mxu0  ;;  %3816 = vmatpush3.bf16.msra.mxu1 %v2817_v48  ;;  %v2814_v57 = vmul.f32 %v5124_v10, %v3811_v50 }
0x1cf4   : > { %v3812_v40 = vpop.f32.mrb[58].mxu0  ;;  %3817 = vmatprep.subr.bf16.mxu1 %v4365_v0  ;;  %v2812_v30 = vmul.f32 %v5110_v62, %v2793_v27  ;;  %v3970_v62 = vld [vmem:[%s5531_s29 + $0x18] sm:$0xff]  }
0x1cf5   : > { %v2815_v60 = vmul.f32 %v5130_v55, %v3812_v40  ;;  %v2796_v36 = vpop.f32.mrb[59].mxu0  ;;  %3828 = vmatpush3.bf16.msra.mxu0 %v3970_v62 }
0x1cf6   : > { %v2813_v51 = vmul.f32 %v5116_v1, %v2796_v36  ;;  %3841 = vmatprep.subr.bf16.mxu0 %v4365_v0  ;;  %v3978_v36 = vld [vmem:[%s5536_s28 + $0x8] sm:$0xff]  }
0x1cf7   : > { %v2819_v41 = vpack.c.bf16 %v2815_v60, %v2814_v57  ;;  %v3977_v60 = vld [vmem:[%s5536_s28] sm:$0xff]  }
0x1cf8   : > { %v2818_v45 = vpack.c.bf16 %v2813_v51, %v2812_v30 }
0x1cfa   : > { %3818 = vmatpush3.bf16.msra.mxu1 %v2818_v45  ;;  %v3111_v45 = vrot.slane %v5222_v63, %v5064_v38 }
0x1cfb   : > { %3819 = vmatprep.subr.bf16.mxu1 %v4365_v0 }
0x1cfe   : > { %3820 = vmatpush3.bf16.msra.mxu1 %v2819_v41 }
0x1cff   : > { %3833 = vmatprep.subr.bf16.mxu1 %v4365_v0 }
0x1d01   : > { %3822 = vmatmul.mubr.msk.bf16.vlgmr.msra.gmra.mrb[60].mxu1 %vm1122_vm6, %v5187_v20 }
0x1d02   : > { %3837 = vmatprep.mubr.msk.bf16.mxu1 %vm4366_vm0, %v4365_v0  ;;  %3834 = vmatpush3.bf16.msra.mxu1 %v3971_v15 }
0x1d03   : > { %3835 = vmatprep.subr.bf16.mxu1 %v4365_v0 }
0x1dd4   : > { %v2854_v1 = vpop.f32.mrb[60].mxu1 }
0x1dd5   : > { %v2860_v10 = vpack.c.bf16 %v2854_v1, %v2854_v1  ;;  %v3823_v55 = vpop.f32.mrb[61].mxu1 }
0x1dd6   : > { %v2857_v52 = vpop.f32.mrb[62].mxu1 }
0x1dd7   : > { %3830 = vmatmul.mubr.msk.bf16.vlgmr.msra.gmra.mrb[60].mxu0 %vm789_vm1, %v2860_v10  ;;  %v3824_v53 = vpop.f32.mrb[63].mxu1  ;;  %v3116_v10 = vrot.slane %v5227_v2, %v5064_v38 }
0x1dd8   : > { %3849 = vmatprep.mubr.msk.bf16.mxu0 %vm4366_vm0, %v4365_v0  ;;  %3842 = vmatpush3.bf16.msra.mxu0 %v3973_v16 }
0x1dd9   : > { %3843 = vmatprep.subr.bf16.mxu0 %v4365_v0 }
0x1ddc   : > { %3844 = vmatpush3.bf16.msra.mxu0 %v3974_v3 }
0x1ddd   : > { %3845 = vmatprep.subr.bf16.mxu0 %v4365_v0 }
0x1de0   : > { %3846 = vmatpush3.bf16.msra.mxu0 %v3975_v18 }
0x1de1   : > { %3847 = vmatprep.subr.bf16.mxu0 %v4365_v0 }
0x1de4   : > { %3848 = vmatpush3.bf16.msra.mxu0 %v3976_v34 }
0x1eaa   : > { %v2910_v20 = vpop.f32.mrb[60].mxu0 }
0x1eab   : > { %v2911_v54 = vadd.f32 %v2910_v20, %v5233_v12  ;;  %v3831_v58 = vpop.f32.mrb[61].mxu0  ;;  %v3972_v12 = vld [vmem:[%s5532_s26 + $0x18] sm:$0xff]  }
0x1eac   : > { %v2913_v61 = vpop.f32.mrb[62].mxu0  ;;  %3836 = vmatpush3.bf16.msra.mxu1 %v3972_v12 }
0x1ead   : > { %v2916_v8 = vsel %vm789_vm1, %v2911_v54, 0.0  ;;  %v3832_v5 = vpop.f32.mrb[63].mxu0  ;;  %3853 = vmatprep.subr.bf16.mxu1 %v4365_v0 }
0x1eae   : > { %2917 = vadd.xlane.f32.xlu0 %v2916_v8 }
0x1f3b   : > { %v2918_v19 = vpop.xlane.xlu0 %2917 }
0x1f3c   : > { %v2919_v9 = vmul.f32 0.03125, %v2918_v19 }
0x1f3e   : > { %v2920_v11 = vsub.f32 %v2911_v54, %v2919_v9 }
0x1f40   : > { %v2921_v13 = vmul.f32 %v2920_v11, %v2920_v11 }
0x1f42   : > { %v2922_v14 = vsel %vm789_vm1, %v2921_v13, 0.0 }
0x1f43   : > { %2923 = vadd.xlane.f32.xlu0 %v2922_v14 }
0x1fd0   : > { %v2924_v22 = vpop.xlane.xlu0 %2923 }
0x1fd1   : > { %v2925_v37 = vmul.f32 0.03125, %v2924_v22 }
0x1fd3   : > { %v2926_v23 = vadd.f32 1e-05, %v2925_v37 }
0x1fd5   : > { %4115 = vrsqrt.f32 %v2926_v23 }
0x1fdf   : > { %v4116_v26 = vpop.eup %4115 }
0x1fe0   : > { %v2928_v31 = vmul.f32 %v4116_v26, %v2920_v11 }
0x1fe2   : > { %v2933_v4 = vmul.f32 %v2932_v24, %v2928_v31 }
0x1fe4   : > { %v2938_v33 = vadd.f32 %v2937_v25, %v2933_v4 }
0x1fe6   : > { %v2939_v17 = vpack.c.bf16 %v2938_v33, %v2938_v33 }
0x1fe8   : > { %3838 = vmatmul.mubr.msk.bf16.vlgmr.msra.gmra.mrb[64].mxu1 %vm789_vm1, %v2939_v17 }
0x1fe9   : > { %3857 = vmatprep.mubr.msk.bf16.mxu1 %vm4366_vm0, %v4365_v0  ;;  %3854 = vmatpush3.bf16.msra.mxu1 %v3977_v60 }
0x1fea   : > { %3855 = vmatprep.subr.bf16.mxu1 %v4365_v0  ;;  %v3488_v0 = vld [vmem:[%s5537_s2] ss:$0 sm:$0xff]  ;;  %s4280_s2 = scalar_lea.vmem %s5391_s22, 128 }
0x1feb   : > { %p4281_p1 = scmp.ne.s32.totalorder %s5391_s22, %s4280_s2  ;;  %p4288_p4 = scmp.lt.s32.totalorder %s4286_s4, %s4280_s2 }
0x1fed   : > { %3856 = vmatpush3.bf16.msra.mxu1 %v3978_v36  ;;  %p4282_p2 = pnand %p4281_p1, %p5541_p8  ;;  %p4289_p10 = por %p4288_p4, %p4287_p9 }
0x1fef   : > { %p4283_p11 = pneg %p4282_p2 }
0x1ff1   : > { %p4290_p0 = pnand %p4289_p10, %p4283_p11 }
0x20bb   : > { %v3002_v32 = vpop.f32.mrb[64].mxu1 }
0x20bc   : > { %v3003_v6 = vadd.f32 %v3469_v59, %v3002_v32  ;;  %v3839_v7 = vpop.f32.mrb[65].mxu1 }
0x20bd   : > { %v3005_v21 = vpop.f32.mrb[66].mxu1 }
0x20be   : > { %v3008_v28 = vmax.f32 %v3003_v6, 0.0  ;;  %v3840_v29 = vpop.f32.mrb[67].mxu1 }
0x20c0   : > { %v3009_v39 = vpack.c.bf16 %v3008_v28, %v3008_v28 }
0x20c2   : > { %3850 = vmatmul.mubr.msk.bf16.vlgmr.msra.gmra.mrb[64].mxu0 %vm1122_vm6, %v3009_v39 }
0x2195   : > { %v3088_v42 = vpop.f32.mrb[64].mxu0 }
0x2196   : > { %v3089_v43 = vadd.f32 %v3482_v56, %v3088_v42  ;;  %v3851_v44 = vpop.f32.mrb[65].mxu0 }
0x2197   : > { %v3091_v46 = vpop.f32.mrb[66].mxu0 }
0x2198   : > { %v3852_v35 = vpop.f32.mrb[67].mxu0  ;;  %v3094_v47 = vadd.f32 %v3089_v43, %v2938_v33 }
0x219a   : > { %v3095_v48 = vsel %vm789_vm1, %v3094_v47, 0.0 }
0x219b   : > { %3096 = vadd.xlane.f32.xlu0 %v3095_v48 }
0x2228   : > { %v3097_v49 = vpop.xlane.xlu0 %3096 }
0x2229   : > { %v3098_v50 = vmul.f32 0.03125, %v3097_v49 }
0x222b   : > { %v3099_v27 = vsub.f32 %v3094_v47, %v3098_v50 }
0x222d   : > { %v3100_v40 = vmul.f32 %v3099_v27, %v3099_v27 }
0x222f   : > { %v3101_v57 = vsel %vm789_vm1, %v3100_v40, 0.0 }
0x2230   : > { %3102 = vadd.xlane.f32.xlu0 %v3101_v57 }
0x22bd   : > { %v3103_v30 = vpop.xlane.xlu0 %3102 }
0x22be   : > { %v3104_v51 = vmul.f32 0.03125, %v3103_v30 }
0x22c0   : > { %v3105_v41 = vadd.f32 1e-05, %v3104_v51 }
0x22c2   : > { %4117 = vrsqrt.f32 %v3105_v41 }
0x22cc   : > { %v4118_v62 = vpop.eup %4117 }
0x22cd   : > { %v3107_v1 = vmul.f32 %v4118_v62, %v3099_v27 }
0x22cf   : > { %v3112_v55 = vmul.f32 %v3111_v45, %v3107_v1 }
0x22d1   : > { %v3117_v52 = vadd.f32 %v3116_v10, %v3112_v55 }
0x22d3   : > { %v3118_v53 = vpack.c.bf16 %v3117_v52, %v3117_v52 }
0x22d5   : > { %3858 = vmatmul.mubr.msk.bf16.vlgmr.msra.gmra.mrb[68].mxu1 %vm789_vm1, %v3118_v53 }
0x23a8   : > { %v3179_v20 = vpop.f32.mrb[68].mxu1 }
0x23a9   : > { %v3180_v54 = vadd.f32 %v3488_v0, %v3179_v20  ;;  %v3859_v63 = vpop.f32.mrb[69].mxu1 }
0x23aa   : > { %v3182_v58 = vpop.f32.mrb[70].mxu1 }
0x23ab   : > { %v3860_v61 = vpop.f32.mrb[71].mxu1  ;;  %v3186_v8 = vsel %vm3185_vm8, %v3180_v54, -inf }
0x23ac   : > { %3187 = vmax.xlane.f32.xlu0 %v3186_v8 }
0x2439   : > { %v3188_v38 = vpop.xlane.xlu0 %3187 }
0x243a   : > { %v3189_v2 = vsub.f32 %v3180_v54, %v3188_v38 }
0x243c   : > { %v3190_v5 = vmul.f32 1.442695, %v3189_v2 }
0x243e   : > { %4119 = vpow2.f32 %v3190_v5 }
0x2448   : > { %v4120_v19 = vpop.eup %4119 }
0x2449   : > { %v3192_v9 = vsel %vm3185_vm8, %v4120_v19, 0.0 }
0x244a   : > { %3193 = vadd.xlane.f32.xlu1 %v3192_v9 }
0x24d7   : > { %v3194_v11 = vpop.xlane.xlu1 %3193 }
0x24d8   : > { %4121 = vrcp.f32 %v3194_v11 }
0x24e2   : > { %v4122_v13 = vpop.eup %4121 }
0x24e3   : > { %v3196_v14 = vmul.f32 %v4122_v13, %v4120_v19 }
0x24e5   : > { %3197 = vst.msk [vmem:[%s731_s27] sm:$0xff] %vm3185_vm8, %v3196_v14 }
0x24e6   : > { %4293 = shalt.err (!%p4290_p0)
}
0x24e7   : > { %s4294_s5 = scalar_lea.hbm %s5389_s14, 128  ;;  %s4298_s12 = scalar_lea.hbm %s5540_s11, 256 }
0x24e8   : > { %p4295_p7 = scmp.ne.s32.totalorder %s5389_s14, %s4294_s5  ;;  %p4299_p12 = scmp.lt.u32.totalorder %s5389_s14, %s5540_s11 }
0x24e9   : > { %p4300_p5 = scmp.lt.u32.totalorder %s4298_s12, %s4294_s5  ;;  %p4302_p1 = scmp.lt.u32.totalorder %s4294_s5, %s5389_s14 }
0x24ea   : > { %p4296_p13 = pnand %p4295_p7, %p5541_p8 }
0x24eb   : > { %p4301_p3 = por %p4300_p5, %p4299_p12 }
0x24ec   : > { %p4297_p6 = pneg %p4296_p13 }
0x24ed   : > { %p4303_p2 = por %p4302_p1, %p4301_p3 }
0x24ef   : > { %p4304_p11 = pnand %p4303_p2, %p4297_p6 }
0x24f1   : > { %4307 = shalt.err (!%p4304_p11)
}
0x24f2   : > { %3881 = dma.vmem_to_hbm [thread:$0]  (%p5541_p8), %s5391_s22, 128, %s5389_s14, %s3199_s3  }
0x24f3 PF: > { %s5542_s4 = sld [smem:[#allocation17_spill]]  ;;  %s5543_s2 = sld [smem:[#allocation22_spill]] }
0x24f4   : > { %p5545_p4 = scmp.ge.s32.totalorder %s4358_s21, 2 }
0x24f9   : > { %s3224_s1 = sand.u32 1, %s5542_s4   ;;  %p5544_p9 = scmp.ne.s32.totalorder %s5543_s2, 0 }
0x24fa   : > { %s3225_s20 = scalar_lea.sflag [#allocation4], %s3224_s1 }
0x24fb   : > { %p3901_p10 = pnand %p5545_p4, %p5544_p9 }
0x24fd   : > { %4341 = dma.done.wait (!%p3901_p10), %s3225_s20, 128  }
0x24fe   : > { %4343 = vsyncadd (!%p3901_p10), %s3225_s20, 4294967168  ;;  %s5546_s21 = sld [smem:[#allocation19_spill]]  ;;  %s5547_s5 = sld [smem:[#allocation18_spill]] }
0x24ff   : > { %s5548_s20 = sld [smem:[#allocation20_spill]]  ;;  %s5549_s0 = smov %s4350_s30 }
0x2504   : > { %p38_p0 = scmp.ge.s32.totalorder %s5546_s21, 4   ;;  %s5550_s30 = smov %s5547_s5 }
0x2506   :  { %40 = sbr.rel (!%p38_p0) target bundleno = 24 (0x18), region = 193 }
0x250d   :  { %3230 = vsyncpa [#allocation3], 1 }
0x250e   :  { %3232 = vsyncpa [#allocation3 + $0x1], 1 }
0x250f   :  { %3233 = vsyncpa [#allocation6], 1 }
0x2510   :  { %3235 = vsyncpa [#allocation6 + $0x1], 1 }
0x2511   :  { %3236 = vsyncpa [#allocation9], 1 }
0x2512   :  { %3238 = vsyncpa [#allocation9 + $0x1], 1 }
0x2513   :  { %3239 = vsyncpa [#allocation4], 1 }
0x2514   :  { %3241 = vsyncpa [#allocation4 + $0x1], 1 }

</bundles_post_ra>
